<compile_context>
chip_gen: v7x
topology: tpu7x:2x2x1
jax: 0.10.0
libtpu: 0.0.40
codegen_flags: <defaults>
</compile_context>

<pallas_src>
import functools

import jax
import jax.numpy as jnp
from jax.experimental import pallas as pl
from jax.experimental.pallas import tpu as pltpu

EPS = 1e-5
KSIZE = 3
MXU_DTYPE = jnp.bfloat16


def _round_up(v, m):
    return -(-v // m) * m


def _cparams(n_axes=1):
    # 64 MiB scoped VMEM: well above the 16/32 MiB defaults so production-size
    # tiles can double-buffer; on v7x (64 MiB physical) re-derive with headroom.
    return pltpu.CompilerParams(
        dimension_semantics=("parallel",) * n_axes,
        vmem_limit_bytes=64 * 1024 * 1024)


# ----------------------------- Pallas kernels ------------------------------ #
def _matmul_stats_kernel(p_ref, w_ref, z_ref, st_ref):
    """Fused conv_1||conv_3 tile: one MXU matmul + partial BN statistics.

    z is stored bf16; stats come from the f32 accumulator and are written with
    a single (8, C2) store (row 0 = sum, row 1 = sum of squares).
    """
    y = jnp.dot(p_ref[...], w_ref[...], preferred_element_type=jnp.float32)
    z_ref[...] = y.astype(z_ref.dtype)
    c2 = y.shape[1]
    s = jnp.sum(y, axis=0, keepdims=True)
    ss = jnp.sum(y * y, axis=0, keepdims=True)
    st_ref[...] = jnp.concatenate([s, ss, jnp.zeros((6, c2), jnp.float32)], 0)


def _conv_bn_stats_kernel(ksize, ho, wo, wp, cout, band_rows,
                          z1_ref, ab_ref, w_ref, z2_ref, st_ref, hpad_ref):
    """conv_2 for one image with BN1+ReLU+pad fused in-kernel.

    z1_ref   : (Ho*Wo, C2) bf16 raw conv_1(||conv_3) block from stage 1.
    ab_ref   : (8, Cout) f32, row 0 = a1 (BN1 scale), row 1 = b1 (BN1 shift).
    w_ref    : (K*K, Ci_p, Cout) bf16 conv_2 taps.
    z2_ref   : (Ho*Wp, Cout) bf16 raw conv_2 output over the padded width.
    st_ref   : (8, Cout) f32 partial BN2 stats (junk columns masked).
    hpad_ref : VMEM scratch (Hp*Wp + K-1, Ci_p) bf16, zero-padded feature map.
    """
    pad = ksize // 2
    ci_p = hpad_ref.shape[1]
    co = w_ref.shape[2]

    # 1) zero the padded scratch: border, junk columns and channel padding.
    hpad_ref[...] = jnp.zeros_like(hpad_ref)

    # 2) BN1 + ReLU applied in VMEM (fused: h never round-trips HBM), then
    #    scattered row-by-row into the zero-padded map.
    a1 = ab_ref[0:1, :]
    b1 = ab_ref[1:2, :]
    z_full = z1_ref[...].astype(jnp.float32)[:, :cout]          # (Ho*Wo, Cout)
    h_full = jnp.maximum(z_full * a1 + b1, 0.0).astype(hpad_ref.dtype)
    if ci_p > cout:                                              # pad channels
        h_full = jnp.concatenate(
            [h_full, jnp.zeros((h_full.shape[0], ci_p - cout), h_full.dtype)],
            axis=1)
    for r in range(ho):                                          # static loop
        hpad_ref[pl.ds((r + pad) * wp + pad, wo), :] = \
            h_full[r * wo:(r + 1) * wo, :]

    # 3) 9-tap conv as shifted row-slices + MXU dots, banded over output rows
    #    so the f32 accumulator stays small (all offsets static; kh*Wp is
    #    sublane aligned because Wp % 8 == 0).
    # TODO(synk): add a row-band *grid* axis (with halo) so both v7x
    # TensorCores get work when the per-chip batch is 1-2.
    sum_acc = jnp.zeros((1, co), jnp.float32)
    ssq_acc = jnp.zeros((1, co), jnp.float32)
    r0 = 0
    while r0 < ho:
        rows = min(band_rows, ho - r0)
        m_off = r0 * wp
        m_len = rows * wp
        acc = jnp.zeros((m_len, co), jnp.float32)
        for kh in range(ksize):
            for kw in range(ksize):
                tap = hpad_ref[pl.ds(m_off + kh * wp + kw, m_len), :]
                acc = acc + jnp.dot(tap, w_ref[kh * ksize + kw],
                                    preferred_element_type=jnp.float32)
        z2_ref[pl.ds(m_off, m_len), :] = acc.astype(z2_ref.dtype)
        # In-kernel junk-column mask (columns >= Wo are cross-row garbage).
        col = jax.lax.broadcasted_iota(jnp.int32, (m_len, co), 0) % wp
        mask = col < wo
        sum_acc = sum_acc + jnp.sum(jnp.where(mask, acc, 0.0), 0, keepdims=True)
        ssq_acc = ssq_acc + jnp.sum(jnp.where(mask, acc * acc, 0.0), 0,
                                    keepdims=True)
        r0 += rows
    st_ref[...] = jnp.concatenate(
        [sum_acc, ssq_acc, jnp.zeros((6, co), jnp.float32)], axis=0)


def _epilogue_kernel(ho, wo, wp, cout, res_off,
                     z2_ref, res_ref, coef_ref, o_ref):
    """relu(a2 * conv2_raw + a3 * residual_raw + (b2 + b3)) for one image.

    Rows are ref-sliced directly (no load-then-slice of the padded block);
    the residual is read from the stage-1 slab at column offset `res_off`.
    coef_ref rows: 0 = a2, 1 = a3, 2 = b2 + b3.
    """
    a2 = coef_ref[0:1, :]
    a3 = coef_ref[1:2, :]
    bsum = coef_ref[2:3, :]
    for r in range(ho):                                          # static loop
        z_row = z2_ref[pl.ds(r * wp, wo), :].astype(jnp.float32)
        r_row = res_ref[pl.ds(r * wo, wo), :].astype(jnp.float32)
        r_row = r_row[:, res_off:res_off + cout]
        y = z_row * a2 + r_row * a3 + bsum
        o_ref[pl.ds(r * wo, wo), :] = jnp.maximum(y, 0.0).astype(o_ref.dtype)


# ------------------------------ kernel wrappers ----------------------------- #
def fused_matmul_stats(patches, w_mat, *, tm):
    """(Mp, K) @ (K, C2) -> z (Mp, C2) bf16 and per-tile (sum, sumsq) stats."""
    mp, k = patches.shape
    c2 = w_mat.shape[1]
    nt = mp // tm
    return pl.pallas_call(
        _matmul_stats_kernel,
        grid=(nt,),
        in_specs=[pl.BlockSpec((tm, k), lambda i: (i, 0)),
                  pl.BlockSpec((k, c2), lambda i: (0, 0))],
        out_specs=[pl.BlockSpec((tm, c2), lambda i: (i, 0)),
                   pl.BlockSpec((None, 8, c2), lambda i: (i, 0, 0))],
        out_shape=[jax.ShapeDtypeStruct((mp, c2), MXU_DTYPE),
                   jax.ShapeDtypeStruct((nt, 8, c2), jnp.float32)],
        compiler_params=_cparams(1),
    )(patches, w_mat)


def conv2_bn_stats(z1, ab, w_taps, *, n, ksize, ho, wo, wp, cout, band_rows):
    """Per-image conv_2 with fused BN1/ReLU/pad + partial BN2 statistics."""
    how = ho * wo
    m_ext = ho * wp
    c2 = z1.shape[1]
    kk, ci_p, co = w_taps.shape
    hp = ho + 2 * (ksize // 2)
    kernel = functools.partial(_conv_bn_stats_kernel,
                               ksize, ho, wo, wp, cout, band_rows)
    return pl.pallas_call(
        kernel,
        grid=(n,),
        in_specs=[pl.BlockSpec((how, c2), lambda i: (i, 0)),
                  pl.BlockSpec((8, cout), lambda i: (0, 0)),
                  pl.BlockSpec((kk, ci_p, co), lambda i: (0, 0, 0))],
        out_specs=[pl.BlockSpec((None, m_ext, co), lambda i: (i, 0, 0)),
                   pl.BlockSpec((None, 8, co), lambda i: (i, 0, 0))],
        out_shape=[jax.ShapeDtypeStruct((n, m_ext, co), MXU_DTYPE),
                   jax.ShapeDtypeStruct((n, 8, co), jnp.float32)],
        scratch_shapes=[pltpu.VMEM((hp * wp + ksize - 1, ci_p), MXU_DTYPE)],
        compiler_params=_cparams(1),
    )(z1, ab, w_taps)


def epilogue(z2, res_slab, coef, *, n, ho, wo, wp, cout, res_off):
    """relu(a2*z2 + a3*res + bsum) per image, dropping the junk columns."""
    how = ho * wo
    m_ext = ho * wp
    rc = res_slab.shape[1]
    kernel = functools.partial(_epilogue_kernel, ho, wo, wp, cout, res_off)
    return pl.pallas_call(
        kernel,
        grid=(n,),
        in_specs=[pl.BlockSpec((None, m_ext, cout), lambda i: (i, 0, 0)),
                  pl.BlockSpec((how, rc), lambda i: (i, 0)),
                  pl.BlockSpec((8, cout), lambda i: (0, 0))],
        out_specs=pl.BlockSpec((None, how, cout), lambda i: (i, 0, 0)),
        out_shape=jax.ShapeDtypeStruct((n, how, cout), jnp.float32),
        compiler_params=_cparams(1),
    )(z2, res_slab, coef)


# --------------------------------- JAX glue --------------------------------- #
def extract_patches(x_nhwc, ksize, stride, pad):
    """im2col: (N,H,W,C) -> (N*Ho*Wo, K*K*C), tap-major / channel-minor."""
    # TODO(synk): move the stride-2 patch extraction in-kernel (pl.ANY +
    # make_async_copy row bands) to drop the 9/stride^2 HBM amplification.
    n, h, w, c = x_nhwc.shape
    xp = jnp.pad(x_nhwc, ((0, 0), (pad, pad), (pad, pad), (0, 0)))
    ho = (h + 2 * pad - ksize) // stride + 1
    wo = (w + 2 * pad - ksize) // stride + 1
    cols = []
    for kh in range(ksize):
        for kw in range(ksize):
            cols.append(xp[:, kh:kh + (ho - 1) * stride + 1:stride,
                           kw:kw + (wo - 1) * stride + 1:stride, :])
    pmat = jnp.concatenate(cols, axis=-1).reshape(n * ho * wo, ksize * ksize * c)
    return pmat, ho, wo


def _finalize_bn(s, ss, count, gamma, beta):
    """Fold per-channel batch statistics + BN affine into scale/shift (f32).

    TODO(synk): for production-scale activations switch to a shifted /
    Welford-style sumsq accumulation (E[x^2]-E[x]^2 is cancellation-prone).
    """
    mean = s / count
    var = jnp.maximum(ss / count - mean * mean, 0.0)
    a = gamma * jax.lax.rsqrt(var + EPS)
    return a, beta - mean * a


def residual_conv2d_forward(x_nchw, params, *, stride=2, ksize=KSIZE, tm=512):
    pad = ksize // 2
    n, cin, h, w = x_nchw.shape
    cout = params["w1"].shape[-1]
    diff = (stride != 1) or (cin != cout)

    x_nhwc = jnp.transpose(x_nchw, (0, 2, 3, 1))       # NCHW -> NHWC

    # ---- stage 1: fused conv_1 || conv_3 matmul + partial BN statistics ---- #
    p1, ho, wo = extract_patches(x_nhwc.astype(MXU_DTYPE), ksize, stride, pad)
    how = ho * wo
    m1 = n * how
    k1 = ksize * ksize * cin
    tm_eff = min(_round_up(tm, 8), _round_up(m1, 8))   # big tile, clamped
    m1p = _round_up(m1, tm_eff)
    k1p = _round_up(k1, 128)                           # lane-dense contraction
    p1 = jnp.pad(p1, ((0, m1p - m1), (0, k1p - k1)))   # zero rows/cols: exact
    w1m = params["w1"].reshape(-1, cout)
    wf = (jnp.concatenate([w1m, params["w3"].reshape(-1, cout)], axis=1)
          if diff else w1m)
    wf = jnp.pad(wf, ((0, k1p - k1), (0, 0))).astype(MXU_DTYPE)
    # NOTE: conv biases are intentionally unused -- training-mode BN subtracts
    # the batch mean, so they cancel exactly.
    z1, st1 = fused_matmul_stats(p1, wf, tm=tm_eff)    # z1 is bf16
    st1 = jnp.sum(st1, axis=0)                         # (8, C2): rows 0/1 used

    a1, b1 = _finalize_bn(st1[0, :cout], st1[1, :cout], m1,
                          params["g1"], params["be1"])

    if diff:
        a3, b3 = _finalize_bn(st1[0, cout:], st1[1, cout:], m1,
                              params["g3"], params["be3"])
        res_slab, res_off = z1, cout                   # raw conv_3 columns
    else:
        a3 = jnp.ones((cout,), jnp.float32)
        b3 = jnp.zeros((cout,), jnp.float32)
        res_slab = jnp.pad(x_nhwc.reshape(m1, cout), ((0, m1p - m1), (0, 0)))
        res_off = 0                                    # identity shortcut

    # ---- stage 2: conv_2 with fused BN1/ReLU/pad + partial BN2 stats ------- #
    wp = _round_up(wo + 2 * pad, 8)                    # sublane-aligned taps
    ci_p = _round_up(cout, 16)                         # bf16 contraction pack
    w2t = jnp.pad(params["w2"].reshape(ksize * ksize, cout, cout),
                  ((0, 0), (0, ci_p - cout), (0, 0))).astype(MXU_DTYPE)
    ab = jnp.concatenate([a1[None], b1[None],
                          jnp.zeros((6, cout), jnp.float32)], axis=0)
    band_rows = max(1, min(ho, 512 // wp))             # small f32 accumulator
    z2, st2 = conv2_bn_stats(z1, ab, w2t, n=n, ksize=ksize, ho=ho, wo=wo,
                             wp=wp, cout=cout, band_rows=band_rows)
    st2 = jnp.sum(st2, axis=0)
    a2, b2 = _finalize_bn(st2[0], st2[1], m1, params["g2"], params["be2"])

    # ---- stage 3: BN2/BN3 affine + residual add + ReLU --------------------- #
    coef = jnp.concatenate([a2[None], a3[None], (b2 + b3)[None],
                            jnp.zeros((5, cout), jnp.float32)], axis=0)
    out_flat = epilogue(z2, res_slab, coef, n=n, ho=ho, wo=wo, wp=wp,
                        cout=cout, res_off=res_off)
    out_nhwc = out_flat.reshape(n, ho, wo, cout)
    # TODO(synk): fold the NHWC->NCHW layout change into the epilogue out_spec
    # (or keep NHWC for the consumer) to avoid one extra HBM pass.
    return jnp.transpose(out_nhwc, (0, 3, 1, 2))       # NHWC -> NCHW


# ------------------------------ parameter init ------------------------------ #
def init_params(key, cin, cout, ksize=KSIZE):
    ks = jax.random.split(key, 12)

    def conv_w(k, ci, co):
        fan_in = ci * ksize * ksize
        bound = 1.0 / (fan_in ** 0.5)
        return jax.random.uniform(k, (ksize, ksize, ci, co), jnp.float32,
                                  -bound, bound)

    def conv_b(k, ci, co):
        fan_in = ci * ksize * ksize
        bound = 1.0 / (fan_in ** 0.5)
        return jax.random.uniform(k, (co,), jnp.float32, -bound, bound)

    return dict(
        w1=conv_w(ks[0], cin, cout),  b1=conv_b(ks[1], cin, cout),
        g1=1.0 + 0.1 * jax.random.normal(ks[2], (cout,), jnp.float32),
        be1=0.1 * jax.random.normal(ks[3], (cout,), jnp.float32),
        w2=conv_w(ks[4], cout, cout), b2=conv_b(ks[5], cout, cout),
        g2=1.0 + 0.1 * jax.random.normal(ks[6], (cout,), jnp.float32),
        be2=0.1 * jax.random.normal(ks[7], (cout,), jnp.float32),
        w3=conv_w(ks[8], cin, cout),  b3=conv_b(ks[9], cin, cout),
        g3=1.0 + 0.1 * jax.random.normal(ks[10], (cout,), jnp.float32),
        be3=0.1 * jax.random.normal(ks[11], (cout,), jnp.float32),
    )


# ----------------------------- pure-JAX reference --------------------------- #
def _ref_forward(x_nchw, params, *, stride=2, ksize=KSIZE,
                 conv_dtype=jnp.float32):
    """PyTorch-equivalent forward (biases included -- they cancel under BN)."""
    pad = ksize // 2
    cin, cout = x_nchw.shape[1], params["w1"].shape[-1]
    diff = (stride != 1) or (cin != cout)

    def conv(x, w_hwio, b, s):
        y = jax.lax.conv_general_dilated(
            x.astype(conv_dtype), w_hwio.astype(conv_dtype), (s, s),
            ((pad, pad), (pad, pad)),
            dimension_numbers=("NCHW", "HWIO", "NCHW"),
            preferred_element_type=jnp.float32)
        return y + b[None, :, None, None]

    def bn(y, g, be):
        mean = jnp.mean(y, axis=(0, 2, 3), keepdims=True)
        var = jnp.mean((y - mean) ** 2, axis=(0, 2, 3), keepdims=True)
        return ((y - mean) / jnp.sqrt(var + EPS)) * g[None, :, None, None] \
            + be[None, :, None, None]

    h = jax.nn.relu(bn(conv(x_nchw, params["w1"], params["b1"], stride),
                       params["g1"], params["be1"]))
    out = bn(conv(h, params["w2"], params["b2"], 1), params["g2"], params["be2"])
    res = bn(conv(x_nchw, params["w3"], params["b3"], stride),
             params["g3"], params["be3"]) if diff else x_nchw
    return jax.nn.relu(res + out)


# ----------------------------------- main ----------------------------------- #
if __name__ == "__main__":
    key = jax.random.PRNGKey(0)
    k_x, k_p = jax.random.split(key)

    N, Cin, H, W = 2, 4, 16, 16
    Cout, STRIDE = 8, 2

    x = jax.random.normal(k_x, (N, Cin, H, W), jnp.float32)
    params = init_params(k_p, Cin, Cout)

    fwd = jax.jit(functools.partial(residual_conv2d_forward, stride=STRIDE))
    y = jax.block_until_ready(fwd(x, params))
    assert y.shape == (N, Cout, H // STRIDE, W // STRIDE), y.shape

    # Precision-matched reference: identical PyTorch forward semantics with
    # conv operands cast to bf16 exactly like the kernel's MXU inputs.
    y_ref = jax.block_until_ready(
        _ref_forward(x, params, stride=STRIDE, conv_dtype=MXU_DTYPE))
    max_err = float(jnp.max(jnp.abs(y - y_ref)))
    assert jnp.allclose(y, y_ref, rtol=2e-2, atol=2e-2), max_err

    print("KERNEL_OK")
</pallas_src>

<mosaic_0001>
module attributes {stable_mosaic.version = 11 : i64} {
  func.func @_matmul_stats_kernel(%arg0: i32, %arg1: memref<128x128xbf16, #tpu.memory_space<vmem>>, %arg2: memref<128x16xbf16, #tpu.memory_space<vmem>>, %arg3: memref<128x16xbf16, #tpu.memory_space<vmem>>, %arg4: memref<1x8x16xf32, #tpu.memory_space<vmem>>) attributes {dimension_semantics = [#tpu.dimension_semantics<parallel>], iteration_bounds = array<i64: 1>, scalar_prefetch = 0 : i64, scratch_operands = 0 : i64, tpu.core_type = #tpu.core_type<tc>, window_params = [{transform_indices = @transform_0, window_bounds = array<i64: 128, 128>}, {pipeline_mode = #tpu.pipeline_mode<synchronous>, transform_indices = @transform_1, window_bounds = array<i64: 128, 16>}, {transform_indices = @transform_2, window_bounds = array<i64: 128, 16>}, {transform_indices = @transform_3, window_bounds = array<i64: 1, 8, 16>}]} {
    %c0 = arith.constant 0 : index
    %c0_0 = arith.constant 0 : index
    %0 = vector.load %arg1[%c0, %c0_0] : memref<128x128xbf16, #tpu.memory_space<vmem>>, vector<128x128xbf16>
    %c0_1 = arith.constant 0 : index
    %c0_2 = arith.constant 0 : index
    %1 = vector.load %arg2[%c0_1, %c0_2] : memref<128x16xbf16, #tpu.memory_space<vmem>>, vector<128x16xbf16>
    %cst = arith.constant dense<0.000000e+00> : vector<128x16xf32>
    %2 = tpu.matmul %0, %1, %cst {dimension_numbers = #tpu.dot_dimension_numbers<[1], [0], [0], [1], [0, 0, 1, 1], [], []>} : vector<128x128xbf16>, vector<128x16xbf16>, vector<128x16xf32> -> vector<128x16xf32>
    %3 = arith.truncf %2 : vector<128x16xf32> to vector<128x16xbf16>
    %c0_3 = arith.constant 0 : index
    %c0_4 = arith.constant 0 : index
    %4 = vector.load %arg3[%c0_3, %c0_4] : memref<128x16xbf16, #tpu.memory_space<vmem>>, vector<128x16xbf16>
    tpu.vector_store %arg3[%c0_3, %c0_4], %3 {strides = array<i32>} : memref<128x16xbf16, #tpu.memory_space<vmem>>, vector<128x16xbf16>,
    %cst_5 = arith.constant dense<0.000000e+00> : vector<16xf32>
    %5 = vector.multi_reduction <add>, %2, %cst_5 [0] : vector<128x16xf32> to vector<16xf32>
    %6 = vector.shape_cast %5 : vector<16xf32> to vector<1x16xf32>
    %7 = arith.mulf %2, %2 : vector<128x16xf32>
    %cst_6 = arith.constant dense<0.000000e+00> : vector<16xf32>
    %8 = vector.multi_reduction <add>, %7, %cst_6 [0] : vector<128x16xf32> to vector<16xf32>
    %9 = vector.shape_cast %8 : vector<16xf32> to vector<1x16xf32>
    %cst_7 = arith.constant 0.000000e+00 : f32
    %10 = vector.broadcast %cst_7 : f32 to vector<6x16xf32>
    %11 = tpu.concatenate %6, %9, %10 in 0 : vector<1x16xf32>, vector<1x16xf32>, vector<6x16xf32> -> vector<8x16xf32>
    %c0_8 = arith.constant 0 : index
    %c0_9 = arith.constant 0 : index
    %c0_10 = arith.constant 0 : index
    %12 = vector.load %arg4[%c0_8, %c0_9, %c0_10] : memref<1x8x16xf32, #tpu.memory_space<vmem>>, vector<1x8x16xf32>
    %13 = vector.shape_cast %12 : vector<1x8x16xf32> to vector<8x16xf32>
    %14 = vector.shape_cast %11 : vector<8x16xf32> to vector<1x8x16xf32>
    tpu.vector_store %arg4[%c0_8, %c0_9, %c0_10], %14 {strides = array<i32>} : memref<1x8x16xf32, #tpu.memory_space<vmem>>, vector<1x8x16xf32>,
    return
  }
  func.func @transform_0(%arg0: i32) -> (i32, i32) {
    %c0_i32 = arith.constant 0 : i32
    %c0_i32_0 = arith.constant 0 : i32
    return %arg0, %c0_i32 : i32, i32
  }
  func.func @transform_1(%arg0: i32) -> (i32, i32) {
    %c0_i32 = arith.constant 0 : i32
    %c0_i32_0 = arith.constant 0 : i32
    %c0_i32_1 = arith.constant 0 : i32
    return %c0_i32, %c0_i32_0 : i32, i32
  }
  func.func @transform_2(%arg0: i32) -> (i32, i32) {
    %c0_i32 = arith.constant 0 : i32
    %c0_i32_0 = arith.constant 0 : i32
    return %arg0, %c0_i32 : i32, i32
  }
  func.func @transform_3(%arg0: i32) -> (i32, i32, i32) {
    %c0_i32 = arith.constant 0 : i32
    %c0_i32_0 = arith.constant 0 : i32
    %c0_i32_1 = arith.constant 0 : i32
    return %arg0, %c0_i32, %c0_i32_0 : i32, i32, i32
  }
}

module attributes {stable_mosaic.version = 11 : i64} {
  func.func @_epilogue_kernel(%arg0: i32, %arg1: memref<1x128x8xbf16, #tpu.memory_space<vmem>>, %arg2: memref<64x16xbf16, #tpu.memory_space<vmem>>, %arg3: memref<8x8xf32, #tpu.memory_space<vmem>>, %arg4: memref<1x64x8xf32, #tpu.memory_space<vmem>>) attributes {dimension_semantics = [#tpu.dimension_semantics<parallel>], iteration_bounds = array<i64: 2>, scalar_prefetch = 0 : i64, scratch_operands = 0 : i64, tpu.core_type = #tpu.core_type<tc>, window_params = [{transform_indices = @transform_0, window_bounds = array<i64: 1, 128, 8>}, {transform_indices = @transform_1, window_bounds = array<i64: 64, 16>}, {pipeline_mode = #tpu.pipeline_mode<synchronous>, transform_indices = @transform_2, window_bounds = array<i64: 8, 8>}, {transform_indices = @transform_3, window_bounds = array<i64: 1, 64, 8>}]} {
    %c0 = arith.constant 0 : index
    %c0_0 = arith.constant 0 : index
    %0 = vector.load %arg3[%c0, %c0_0] : memref<8x8xf32, #tpu.memory_space<vmem>>, vector<1x8xf32>
    %c1 = arith.constant 1 : index
    %c0_1 = arith.constant 0 : index
    %1 = vector.load %arg3[%c1, %c0_1] : memref<8x8xf32, #tpu.memory_space<vmem>>, vector<1x8xf32>
    %c2 = arith.constant 2 : index
    %c0_2 = arith.constant 0 : index
    %2 = vector.load %arg3[%c2, %c0_2] : memref<8x8xf32, #tpu.memory_space<vmem>>, vector<1x8xf32>
    %c0_3 = arith.constant 0 : index
    %c0_4 = arith.constant 0 : index
    %c0_5 = arith.constant 0 : index
    %3 = vector.load %arg1[%c0_3, %c0_4, %c0_5] : memref<1x128x8xbf16, #tpu.memory_space<vmem>>, vector<1x8x8xbf16>
    %4 = vector.shape_cast %3 : vector<1x8x8xbf16> to vector<8x8xbf16>
    %5 = arith.extf %4 : vector<8x8xbf16> to vector<8x8xf32>
    %c0_6 = arith.constant 0 : index
    %c0_7 = arith.constant 0 : index
    %6 = vector.load %arg2[%c0_6, %c0_7] : memref<64x16xbf16, #tpu.memory_space<vmem>>, vector<8x16xbf16>
    %7 = arith.extf %6 : vector<8x16xbf16> to vector<8x16xf32>
    %8 = vector.extract_strided_slice %7 {offsets = [0, 8], sizes = [8, 8], strides = [1, 1]} : vector<8x16xf32> to vector<8x8xf32>
    %9 = vector.broadcast %0 : vector<1x8xf32> to vector<8x8xf32>
    %10 = arith.mulf %5, %9 : vector<8x8xf32>
    %11 = vector.broadcast %1 : vector<1x8xf32> to vector<8x8xf32>
    %12 = arith.mulf %8, %11 : vector<8x8xf32>
    %13 = arith.addf %10, %12 : vector<8x8xf32>
    %14 = vector.broadcast %2 : vector<1x8xf32> to vector<8x8xf32>
    %15 = arith.addf %13, %14 : vector<8x8xf32>
    %cst = arith.constant 0.000000e+00 : f32
    %16 = vector.broadcast %cst : f32 to vector<8x8xf32>
    %17 = arith.maximumf %15, %16 : vector<8x8xf32>
    %c0_8 = arith.constant 0 : index
    %c0_9 = arith.constant 0 : index
    %c0_10 = arith.constant 0 : index
    %18 = vector.load %arg4[%c0_8, %c0_9, %c0_10] : memref<1x64x8xf32, #tpu.memory_space<vmem>>, vector<1x8x8xf32>
    %19 = vector.shape_cast %18 : vector<1x8x8xf32> to vector<8x8xf32>
    %20 = vector.shape_cast %17 : vector<8x8xf32> to vector<1x8x8xf32>
    tpu.vector_store %arg4[%c0_8, %c0_9, %c0_10], %20 {strides = array<i32>} : memref<1x64x8xf32, #tpu.memory_space<vmem>>, vector<1x8x8xf32>,
    %c0_11 = arith.constant 0 : index
    %c16 = arith.constant 16 : index
    %c0_12 = arith.constant 0 : index
    %21 = vector.load %arg1[%c0_11, %c16, %c0_12] : memref<1x128x8xbf16, #tpu.memory_space<vmem>>, vector<1x8x8xbf16>
    %22 = vector.shape_cast %21 : vector<1x8x8xbf16> to vector<8x8xbf16>
    %23 = arith.extf %22 : vector<8x8xbf16> to vector<8x8xf32>
    %c8 = arith.constant 8 : index
    %c0_13 = arith.constant 0 : index
    %24 = vector.load %arg2[%c8, %c0_13] : memref<64x16xbf16, #tpu.memory_space<vmem>>, vector<8x16xbf16>
    %25 = arith.extf %24 : vector<8x16xbf16> to vector<8x16xf32>
    %26 = vector.extract_strided_slice %25 {offsets = [0, 8], sizes = [8, 8], strides = [1, 1]} : vector<8x16xf32> to vector<8x8xf32>
    %27 = vector.broadcast %0 : vector<1x8xf32> to vector<8x8xf32>
    %28 = arith.mulf %23, %27 : vector<8x8xf32>
    %29 = vector.broadcast %1 : vector<1x8xf32> to vector<8x8xf32>
    %30 = arith.mulf %26, %29 : vector<8x8xf32>
    %31 = arith.addf %28, %30 : vector<8x8xf32>
    %32 = vector.broadcast %2 : vector<1x8xf32> to vector<8x8xf32>
    %33 = arith.addf %31, %32 : vector<8x8xf32>
    %cst_14 = arith.constant 0.000000e+00 : f32
    %34 = vector.broadcast %cst_14 : f32 to vector<8x8xf32>
    %35 = arith.maximumf %33, %34 : vector<8x8xf32>
    %c0_15 = arith.constant 0 : index
    %c8_16 = arith.constant 8 : index
    %c0_17 = arith.constant 0 : index
    %36 = vector.load %arg4[%c0_15, %c8_16, %c0_17] : memref<1x64x8xf32, #tpu.memory_space<vmem>>, vector<1x8x8xf32>
    %37 = vector.shape_cast %36 : vector<1x8x8xf32> to vector<8x8xf32>
    %38 = vector.shape_cast %35 : vector<8x8xf32> to vector<1x8x8xf32>
    tpu.vector_store %arg4[%c0_15, %c8_16, %c0_17], %38 {strides = array<i32>} : memref<1x64x8xf32, #tpu.memory_space<vmem>>, vector<1x8x8xf32>,
    %c0_18 = arith.constant 0 : index
    %c32 = arith.constant 32 : index
    %c0_19 = arith.constant 0 : index
    %39 = vector.load %arg1[%c0_18, %c32, %c0_19] : memref<1x128x8xbf16, #tpu.memory_space<vmem>>, vector<1x8x8xbf16>
    %40 = vector.shape_cast %39 : vector<1x8x8xbf16> to vector<8x8xbf16>
    %41 = arith.extf %40 : vector<8x8xbf16> to vector<8x8xf32>
    %c16_20 = arith.constant 16 : index
    %c0_21 = arith.constant 0 : index
    %42 = vector.load %arg2[%c16_20, %c0_21] : memref<64x16xbf16, #tpu.memory_space<vmem>>, vector<8x16xbf16>
    %43 = arith.extf %42 : vector<8x16xbf16> to vector<8x16xf32>
    %44 = vector.extract_strided_slice %43 {offsets = [0, 8], sizes = [8, 8], strides = [1, 1]} : vector<8x16xf32> to vector<8x8xf32>
    %45 = vector.broadcast %0 : vector<1x8xf32> to vector<8x8xf32>
    %46 = arith.mulf %41, %45 : vector<8x8xf32>
    %47 = vector.broadcast %1 : vector<1x8xf32> to vector<8x8xf32>
    %48 = arith.mulf %44, %47 : vector<8x8xf32>
    %49 = arith.addf %46, %48 : vector<8x8xf32>
    %50 = vector.broadcast %2 : vector<1x8xf32> to vector<8x8xf32>
    %51 = arith.addf %49, %50 : vector<8x8xf32>
    %cst_22 = arith.constant 0.000000e+00 : f32
    %52 = vector.broadcast %cst_22 : f32 to vector<8x8xf32>
    %53 = arith.maximumf %51, %52 : vector<8x8xf32>
    %c0_23 = arith.constant 0 : index
    %c16_24 = arith.constant 16 : index
    %c0_25 = arith.constant 0 : index
    %54 = vector.load %arg4[%c0_23, %c16_24, %c0_25] : memref<1x64x8xf32, #tpu.memory_space<vmem>>, vector<1x8x8xf32>
    %55 = vector.shape_cast %54 : vector<1x8x8xf32> to vector<8x8xf32>
    %56 = vector.shape_cast %53 : vector<8x8xf32> to vector<1x8x8xf32>
    tpu.vector_store %arg4[%c0_23, %c16_24, %c0_25], %56 {strides = array<i32>} : memref<1x64x8xf32, #tpu.memory_space<vmem>>, vector<1x8x8xf32>,
    %c0_26 = arith.constant 0 : index
    %c48 = arith.constant 48 : index
    %c0_27 = arith.constant 0 : index
    %57 = vector.load %arg1[%c0_26, %c48, %c0_27] : memref<1x128x8xbf16, #tpu.memory_space<vmem>>, vector<1x8x8xbf16>
    %58 = vector.shape_cast %57 : vector<1x8x8xbf16> to vector<8x8xbf16>
    %59 = arith.extf %58 : vector<8x8xbf16> to vector<8x8xf32>
    %c24 = arith.constant 24 : index
    %c0_28 = arith.constant 0 : index
    %60 = vector.load %arg2[%c24, %c0_28] : memref<64x16xbf16, #tpu.memory_space<vmem>>, vector<8x16xbf16>
    %61 = arith.extf %60 : vector<8x16xbf16> to vector<8x16xf32>
    %62 = vector.extract_strided_slice %61 {offsets = [0, 8], sizes = [8, 8], strides = [1, 1]} : vector<8x16xf32> to vector<8x8xf32>
    %63 = vector.broadcast %0 : vector<1x8xf32> to vector<8x8xf32>
    %64 = arith.mulf %59, %63 : vector<8x8xf32>
    %65 = vector.broadcast %1 : vector<1x8xf32> to vector<8x8xf32>
    %66 = arith.mulf %62, %65 : vector<8x8xf32>
    %67 = arith.addf %64, %66 : vector<8x8xf32>
    %68 = vector.broadcast %2 : vector<1x8xf32> to vector<8x8xf32>
    %69 = arith.addf %67, %68 : vector<8x8xf32>
    %cst_29 = arith.constant 0.000000e+00 : f32
    %70 = vector.broadcast %cst_29 : f32 to vector<8x8xf32>
    %71 = arith.maximumf %69, %70 : vector<8x8xf32>
    %c0_30 = arith.constant 0 : index
    %c24_31 = arith.constant 24 : index
    %c0_32 = arith.constant 0 : index
    %72 = vector.load %arg4[%c0_30, %c24_31, %c0_32] : memref<1x64x8xf32, #tpu.memory_space<vmem>>, vector<1x8x8xf32>
    %73 = vector.shape_cast %72 : vector<1x8x8xf32> to vector<8x8xf32>
    %74 = vector.shape_cast %71 : vector<8x8xf32> to vector<1x8x8xf32>
    tpu.vector_store %arg4[%c0_30, %c24_31, %c0_32], %74 {strides = array<i32>} : memref<1x64x8xf32, #tpu.memory_space<vmem>>, vector<1x8x8xf32>,
    %c0_33 = arith.constant 0 : index
    %c64 = arith.constant 64 : index
    %c0_34 = arith.constant 0 : index
    %75 = vector.load %arg1[%c0_33, %c64, %c0_34] : memref<1x128x8xbf16, #tpu.memory_space<vmem>>, vector<1x8x8xbf16>
    %76 = vector.shape_cast %75 : vector<1x8x8xbf16> to vector<8x8xbf16>
    %77 = arith.extf %76 : vector<8x8xbf16> to vector<8x8xf32>
    %c32_35 = arith.constant 32 : index
    %c0_36 = arith.constant 0 : index
    %78 = vector.load %arg2[%c32_35, %c0_36] : memref<64x16xbf16, #tpu.memory_space<vmem>>, vector<8x16xbf16>
    %79 = arith.extf %78 : vector<8x16xbf16> to vector<8x16xf32>
    %80 = vector.extract_strided_slice %79 {offsets = [0, 8], sizes = [8, 8], strides = [1, 1]} : vector<8x16xf32> to vector<8x8xf32>
    %81 = vector.broadcast %0 : vector<1x8xf32> to vector<8x8xf32>
    %82 = arith.mulf %77, %81 : vector<8x8xf32>
    %83 = vector.broadcast %1 : vector<1x8xf32> to vector<8x8xf32>
    %84 = arith.mulf %80, %83 : vector<8x8xf32>
    %85 = arith.addf %82, %84 : vector<8x8xf32>
    %86 = vector.broadcast %2 : vector<1x8xf32> to vector<8x8xf32>
    %87 = arith.addf %85, %86 : vector<8x8xf32>
    %cst_37 = arith.constant 0.000000e+00 : f32
    %88 = vector.broadcast %cst_37 : f32 to vector<8x8xf32>
    %89 = arith.maximumf %87, %88 : vector<8x8xf32>
    %c0_38 = arith.constant 0 : index
    %c32_39 = arith.constant 32 : index
    %c0_40 = arith.constant 0 : index
    %90 = vector.load %arg4[%c0_38, %c32_39, %c0_40] : memref<1x64x8xf32, #tpu.memory_space<vmem>>, vector<1x8x8xf32>
    %91 = vector.shape_cast %90 : vector<1x8x8xf32> to vector<8x8xf32>
    %92 = vector.shape_cast %89 : vector<8x8xf32> to vector<1x8x8xf32>
    tpu.vector_store %arg4[%c0_38, %c32_39, %c0_40], %92 {strides = array<i32>} : memref<1x64x8xf32, #tpu.memory_space<vmem>>, vector<1x8x8xf32>,
    %c0_41 = arith.constant 0 : index
    %c80 = arith.constant 80 : index
    %c0_42 = arith.constant 0 : index
    %93 = vector.load %arg1[%c0_41, %c80, %c0_42] : memref<1x128x8xbf16, #tpu.memory_space<vmem>>, vector<1x8x8xbf16>
    %94 = vector.shape_cast %93 : vector<1x8x8xbf16> to vector<8x8xbf16>
    %95 = arith.extf %94 : vector<8x8xbf16> to vector<8x8xf32>
    %c40 = arith.constant 40 : index
    %c0_43 = arith.constant 0 : index
    %96 = vector.load %arg2[%c40, %c0_43] : memref<64x16xbf16, #tpu.memory_space<vmem>>, vector<8x16xbf16>
    %97 = arith.extf %96 : vector<8x16xbf16> to vector<8x16xf32>
    %98 = vector.extract_strided_slice %97 {offsets = [0, 8], sizes = [8, 8], strides = [1, 1]} : vector<8x16xf32> to vector<8x8xf32>
    %99 = vector.broadcast %0 : vector<1x8xf32> to vector<8x8xf32>
    %100 = arith.mulf %95, %99 : vector<8x8xf32>
    %101 = vector.broadcast %1 : vector<1x8xf32> to vector<8x8xf32>
    %102 = arith.mulf %98, %101 : vector<8x8xf32>
    %103 = arith.addf %100, %102 : vector<8x8xf32>
    %104 = vector.broadcast %2 : vector<1x8xf32> to vector<8x8xf32>
    %105 = arith.addf %103, %104 : vector<8x8xf32>
    %cst_44 = arith.constant 0.000000e+00 : f32
    %106 = vector.broadcast %cst_44 : f32 to vector<8x8xf32>
    %107 = arith.maximumf %105, %106 : vector<8x8xf32>
    %c0_45 = arith.constant 0 : index
    %c40_46 = arith.constant 40 : index
    %c0_47 = arith.constant 0 : index
    %108 = vector.load %arg4[%c0_45, %c40_46, %c0_47] : memref<1x64x8xf32, #tpu.memory_space<vmem>>, vector<1x8x8xf32>
    %109 = vector.shape_cast %108 : vector<1x8x8xf32> to vector<8x8xf32>
    %110 = vector.shape_cast %107 : vector<8x8xf32> to vector<1x8x8xf32>
    tpu.vector_store %arg4[%c0_45, %c40_46, %c0_47], %110 {strides = array<i32>} : memref<1x64x8xf32, #tpu.memory_space<vmem>>, vector<1x8x8xf32>,
    %c0_48 = arith.constant 0 : index
    %c96 = arith.constant 96 : index
    %c0_49 = arith.constant 0 : index
    %111 = vector.load %arg1[%c0_48, %c96, %c0_49] : memref<1x128x8xbf16, #tpu.memory_space<vmem>>, vector<1x8x8xbf16>
    %112 = vector.shape_cast %111 : vector<1x8x8xbf16> to vector<8x8xbf16>
    %113 = arith.extf %112 : vector<8x8xbf16> to vector<8x8xf32>
    %c48_50 = arith.constant 48 : index
    %c0_51 = arith.constant 0 : index
    %114 = vector.load %arg2[%c48_50, %c0_51] : memref<64x16xbf16, #tpu.memory_space<vmem>>, vector<8x16xbf16>
    %115 = arith.extf %114 : vector<8x16xbf16> to vector<8x16xf32>
    %116 = vector.extract_strided_slice %115 {offsets = [0, 8], sizes = [8, 8], strides = [1, 1]} : vector<8x16xf32> to vector<8x8xf32>
    %117 = vector.broadcast %0 : vector<1x8xf32> to vector<8x8xf32>
    %118 = arith.mulf %113, %117 : vector<8x8xf32>
    %119 = vector.broadcast %1 : vector<1x8xf32> to vector<8x8xf32>
    %120 = arith.mulf %116, %119 : vector<8x8xf32>
    %121 = arith.addf %118, %120 : vector<8x8xf32>
    %122 = vector.broadcast %2 : vector<1x8xf32> to vector<8x8xf32>
    %123 = arith.addf %121, %122 : vector<8x8xf32>
    %cst_52 = arith.constant 0.000000e+00 : f32
    %124 = vector.broadcast %cst_52 : f32 to vector<8x8xf32>
    %125 = arith.maximumf %123, %124 : vector<8x8xf32>
    %c0_53 = arith.constant 0 : index
    %c48_54 = arith.constant 48 : index
    %c0_55 = arith.constant 0 : index
    %126 = vector.load %arg4[%c0_53, %c48_54, %c0_55] : memref<1x64x8xf32, #tpu.memory_space<vmem>>, vector<1x8x8xf32>
    %127 = vector.shape_cast %126 : vector<1x8x8xf32> to vector<8x8xf32>
    %128 = vector.shape_cast %125 : vector<8x8xf32> to vector<1x8x8xf32>
    tpu.vector_store %arg4[%c0_53, %c48_54, %c0_55], %128 {strides = array<i32>} : memref<1x64x8xf32, #tpu.memory_space<vmem>>, vector<1x8x8xf32>,
    %c0_56 = arith.constant 0 : index
    %c112 = arith.constant 112 : index
    %c0_57 = arith.constant 0 : index
    %129 = vector.load %arg1[%c0_56, %c112, %c0_57] : memref<1x128x8xbf16, #tpu.memory_space<vmem>>, vector<1x8x8xbf16>
    %130 = vector.shape_cast %129 : vector<1x8x8xbf16> to vector<8x8xbf16>
    %131 = arith.extf %130 : vector<8x8xbf16> to vector<8x8xf32>
    %c56 = arith.constant 56 : index
    %c0_58 = arith.constant 0 : index
    %132 = vector.load %arg2[%c56, %c0_58] : memref<64x16xbf16, #tpu.memory_space<vmem>>, vector<8x16xbf16>
    %133 = arith.extf %132 : vector<8x16xbf16> to vector<8x16xf32>
    %134 = vector.extract_strided_slice %133 {offsets = [0, 8], sizes = [8, 8], strides = [1, 1]} : vector<8x16xf32> to vector<8x8xf32>
    %135 = vector.broadcast %0 : vector<1x8xf32> to vector<8x8xf32>
    %136 = arith.mulf %131, %135 : vector<8x8xf32>
    %137 = vector.broadcast %1 : vector<1x8xf32> to vector<8x8xf32>
    %138 = arith.mulf %134, %137 : vector<8x8xf32>
    %139 = arith.addf %136, %138 : vector<8x8xf32>
    %140 = vector.broadcast %2 : vector<1x8xf32> to vector<8x8xf32>
    %141 = arith.addf %139, %140 : vector<8x8xf32>
    %cst_59 = arith.constant 0.000000e+00 : f32
    %142 = vector.broadcast %cst_59 : f32 to vector<8x8xf32>
    %143 = arith.maximumf %141, %142 : vector<8x8xf32>
    %c0_60 = arith.constant 0 : index
    %c56_61 = arith.constant 56 : index
    %c0_62 = arith.constant 0 : index
    %144 = vector.load %arg4[%c0_60, %c56_61, %c0_62] : memref<1x64x8xf32, #tpu.memory_space<vmem>>, vector<1x8x8xf32>
    %145 = vector.shape_cast %144 : vector<1x8x8xf32> to vector<8x8xf32>
    %146 = vector.shape_cast %143 : vector<8x8xf32> to vector<1x8x8xf32>
    tpu.vector_store %arg4[%c0_60, %c56_61, %c0_62], %146 {strides = array<i32>} : memref<1x64x8xf32, #tpu.memory_space<vmem>>, vector<1x8x8xf32>,
    return
  }
  func.func @transform_0(%arg0: i32) -> (i32, i32, i32) {
    %c0_i32 = arith.constant 0 : i32
    %c0_i32_0 = arith.constant 0 : i32
    %c0_i32_1 = arith.constant 0 : i32
    return %arg0, %c0_i32, %c0_i32_0 : i32, i32, i32
  }
  func.func @transform_1(%arg0: i32) -> (i32, i32) {
    %c0_i32 = arith.constant 0 : i32
    %c0_i32_0 = arith.constant 0 : i32
    return %arg0, %c0_i32 : i32, i32
  }
  func.func @transform_2(%arg0: i32) -> (i32, i32) {
    %c0_i32 = arith.constant 0 : i32
    %c0_i32_0 = arith.constant 0 : i32
    %c0_i32_1 = arith.constant 0 : i32
    return %c0_i32, %c0_i32_0 : i32, i32
  }
  func.func @transform_3(%arg0: i32) -> (i32, i32, i32) {
    %c0_i32 = arith.constant 0 : i32
    %c0_i32_0 = arith.constant 0 : i32
    %c0_i32_1 = arith.constant 0 : i32
    return %arg0, %c0_i32, %c0_i32_0 : i32, i32, i32
  }
}

module attributes {stable_mosaic.version = 11 : i64} {
  func.func @_conv_bn_stats_kernel(%arg0: i32, %arg1: memref<64x16xbf16, #tpu.memory_space<vmem>>, %arg2: memref<8x8xf32, #tpu.memory_space<vmem>>, %arg3: memref<9x16x8xbf16, #tpu.memory_space<vmem>>, %arg4: memref<1x128x8xbf16, #tpu.memory_space<vmem>>, %arg5: memref<1x8x8xf32, #tpu.memory_space<vmem>>, %arg6: memref<162x16xbf16, #tpu.memory_space<vmem>>) attributes {dimension_semantics = [#tpu.dimension_semantics<parallel>], iteration_bounds = array<i64: 2>, scalar_prefetch = 0 : i64, scratch_operands = 1 : i64, tpu.core_type = #tpu.core_type<tc>, window_params = [{transform_indices = @transform_0, window_bounds = array<i64: 64, 16>}, {pipeline_mode = #tpu.pipeline_mode<synchronous>, transform_indices = @transform_1, window_bounds = array<i64: 8, 8>}, {pipeline_mode = #tpu.pipeline_mode<synchronous>, transform_indices = @transform_2, window_bounds = array<i64: 9, 16, 8>}, {transform_indices = @transform_3, window_bounds = array<i64: 1, 128, 8>}, {transform_indices = @transform_4, window_bounds = array<i64: 1, 8, 8>}]} {
    %cst = arith.constant 0.000000e+00 : bf16
    %0 = vector.broadcast %cst : bf16 to vector<162x16xbf16>
    %c0 = arith.constant 0 : index
    %c0_0 = arith.constant 0 : index
    %1 = vector.load %arg6[%c0, %c0_0] : memref<162x16xbf16, #tpu.memory_space<vmem>>, vector<162x16xbf16>
    tpu.vector_store %arg6[%c0, %c0_0], %0 {strides = array<i32>} : memref<162x16xbf16, #tpu.memory_space<vmem>>, vector<162x16xbf16>,
    %c0_1 = arith.constant 0 : index
    %c0_2 = arith.constant 0 : index
    %2 = vector.load %arg2[%c0_1, %c0_2] : memref<8x8xf32, #tpu.memory_space<vmem>>, vector<1x8xf32>
    %c1 = arith.constant 1 : index
    %c0_3 = arith.constant 0 : index
    %3 = vector.load %arg2[%c1, %c0_3] : memref<8x8xf32, #tpu.memory_space<vmem>>, vector<1x8xf32>
    %c0_4 = arith.constant 0 : index
    %c0_5 = arith.constant 0 : index
    %4 = vector.load %arg1[%c0_4, %c0_5] : memref<64x16xbf16, #tpu.memory_space<vmem>>, vector<64x16xbf16>
    %5 = arith.extf %4 : vector<64x16xbf16> to vector<64x16xf32>
    %6 = vector.extract_strided_slice %5 {offsets = [0, 0], sizes = [64, 8], strides = [1, 1]} : vector<64x16xf32> to vector<64x8xf32>
    %7 = vector.broadcast %2 : vector<1x8xf32> to vector<64x8xf32>
    %8 = arith.mulf %6, %7 : vector<64x8xf32>
    %9 = vector.broadcast %3 : vector<1x8xf32> to vector<64x8xf32>
    %10 = arith.addf %8, %9 : vector<64x8xf32>
    %cst_6 = arith.constant 0.000000e+00 : f32
    %11 = vector.broadcast %cst_6 : f32 to vector<64x8xf32>
    %12 = arith.maximumf %10, %11 : vector<64x8xf32>
    %13 = arith.truncf %12 : vector<64x8xf32> to vector<64x8xbf16>
    %cst_7 = arith.constant 0.000000e+00 : bf16
    %14 = vector.broadcast %cst_7 : bf16 to vector<64x8xbf16>
    %15 = tpu.concatenate %13, %14 in 1 : vector<64x8xbf16>, vector<64x8xbf16> -> vector<64x16xbf16>
    %16 = vector.extract_strided_slice %15 {offsets = [0, 0], sizes = [8, 16], strides = [1, 1]} : vector<64x16xbf16> to vector<8x16xbf16>
    %c17 = arith.constant 17 : index
    %c0_8 = arith.constant 0 : index
    %17 = vector.load %arg6[%c17, %c0_8] : memref<162x16xbf16, #tpu.memory_space<vmem>>, vector<8x16xbf16>
    tpu.vector_store %arg6[%c17, %c0_8], %16 {strides = array<i32>} : memref<162x16xbf16, #tpu.memory_space<vmem>>, vector<8x16xbf16>,
    %18 = vector.extract_strided_slice %15 {offsets = [8, 0], sizes = [8, 16], strides = [1, 1]} : vector<64x16xbf16> to vector<8x16xbf16>
    %c33 = arith.constant 33 : index
    %c0_9 = arith.constant 0 : index
    %19 = vector.load %arg6[%c33, %c0_9] : memref<162x16xbf16, #tpu.memory_space<vmem>>, vector<8x16xbf16>
    tpu.vector_store %arg6[%c33, %c0_9], %18 {strides = array<i32>} : memref<162x16xbf16, #tpu.memory_space<vmem>>, vector<8x16xbf16>,
    %20 = vector.extract_strided_slice %15 {offsets = [16, 0], sizes = [8, 16], strides = [1, 1]} : vector<64x16xbf16> to vector<8x16xbf16>
    %c49 = arith.constant 49 : index
    %c0_10 = arith.constant 0 : index
    %21 = vector.load %arg6[%c49, %c0_10] : memref<162x16xbf16, #tpu.memory_space<vmem>>, vector<8x16xbf16>
    tpu.vector_store %arg6[%c49, %c0_10], %20 {strides = array<i32>} : memref<162x16xbf16, #tpu.memory_space<vmem>>, vector<8x16xbf16>,
    %22 = vector.extract_strided_slice %15 {offsets = [24, 0], sizes = [8, 16], strides = [1, 1]} : vector<64x16xbf16> to vector<8x16xbf16>
    %c65 = arith.constant 65 : index
    %c0_11 = arith.constant 0 : index
    %23 = vector.load %arg6[%c65, %c0_11] : memref<162x16xbf16, #tpu.memory_space<vmem>>, vector<8x16xbf16>
    tpu.vector_store %arg6[%c65, %c0_11], %22 {strides = array<i32>} : memref<162x16xbf16, #tpu.memory_space<vmem>>, vector<8x16xbf16>,
    %24 = vector.extract_strided_slice %15 {offsets = [32, 0], sizes = [8, 16], strides = [1, 1]} : vector<64x16xbf16> to vector<8x16xbf16>
    %c81 = arith.constant 81 : index
    %c0_12 = arith.constant 0 : index
    %25 = vector.load %arg6[%c81, %c0_12] : memref<162x16xbf16, #tpu.memory_space<vmem>>, vector<8x16xbf16>
    tpu.vector_store %arg6[%c81, %c0_12], %24 {strides = array<i32>} : memref<162x16xbf16, #tpu.memory_space<vmem>>, vector<8x16xbf16>,
    %26 = vector.extract_strided_slice %15 {offsets = [40, 0], sizes = [8, 16], strides = [1, 1]} : vector<64x16xbf16> to vector<8x16xbf16>
    %c97 = arith.constant 97 : index
    %c0_13 = arith.constant 0 : index
    %27 = vector.load %arg6[%c97, %c0_13] : memref<162x16xbf16, #tpu.memory_space<vmem>>, vector<8x16xbf16>
    tpu.vector_store %arg6[%c97, %c0_13], %26 {strides = array<i32>} : memref<162x16xbf16, #tpu.memory_space<vmem>>, vector<8x16xbf16>,
    %28 = vector.extract_strided_slice %15 {offsets = [48, 0], sizes = [8, 16], strides = [1, 1]} : vector<64x16xbf16> to vector<8x16xbf16>
    %c113 = arith.constant 113 : index
    %c0_14 = arith.constant 0 : index
    %29 = vector.load %arg6[%c113, %c0_14] : memref<162x16xbf16, #tpu.memory_space<vmem>>, vector<8x16xbf16>
    tpu.vector_store %arg6[%c113, %c0_14], %28 {strides = array<i32>} : memref<162x16xbf16, #tpu.memory_space<vmem>>, vector<8x16xbf16>,
    %30 = vector.extract_strided_slice %15 {offsets = [56, 0], sizes = [8, 16], strides = [1, 1]} : vector<64x16xbf16> to vector<8x16xbf16>
    %c129 = arith.constant 129 : index
    %c0_15 = arith.constant 0 : index
    %31 = vector.load %arg6[%c129, %c0_15] : memref<162x16xbf16, #tpu.memory_space<vmem>>, vector<8x16xbf16>
    tpu.vector_store %arg6[%c129, %c0_15], %30 {strides = array<i32>} : memref<162x16xbf16, #tpu.memory_space<vmem>>, vector<8x16xbf16>,
    %cst_16 = arith.constant 0.000000e+00 : f32
    %32 = vector.broadcast %cst_16 : f32 to vector<1x8xf32>
    %cst_17 = arith.constant 0.000000e+00 : f32
    %33 = vector.broadcast %cst_17 : f32 to vector<1x8xf32>
    %cst_18 = arith.constant 0.000000e+00 : f32
    %34 = vector.broadcast %cst_18 : f32 to vector<128x8xf32>
    %c0_19 = arith.constant 0 : index
    %c0_20 = arith.constant 0 : index
    %35 = vector.load %arg6[%c0_19, %c0_20] : memref<162x16xbf16, #tpu.memory_space<vmem>>, vector<128x16xbf16>
    %c0_21 = arith.constant 0 : index
    %c0_22 = arith.constant 0 : index
    %c0_23 = arith.constant 0 : index
    %36 = vector.load %arg3[%c0_21, %c0_22, %c0_23] : memref<9x16x8xbf16, #tpu.memory_space<vmem>>, vector<1x16x8xbf16>
    %37 = vector.shape_cast %36 : vector<1x16x8xbf16> to vector<16x8xbf16>
    %cst_24 = arith.constant dense<0.000000e+00> : vector<128x8xf32>
    %38 = tpu.matmul %35, %37, %cst_24 {dimension_numbers = #tpu.dot_dimension_numbers<[1], [0], [0], [1], [0, 0, 1, 1], [], []>} : vector<128x16xbf16>, vector<16x8xbf16>, vector<128x8xf32> -> vector<128x8xf32>
    %39 = arith.addf %34, %38 : vector<128x8xf32>
    %c1_25 = arith.constant 1 : index
    %c0_26 = arith.constant 0 : index
    %40 = vector.load %arg6[%c1_25, %c0_26] : memref<162x16xbf16, #tpu.memory_space<vmem>>, vector<128x16xbf16>
    %c1_27 = arith.constant 1 : index
    %c0_28 = arith.constant 0 : index
    %c0_29 = arith.constant 0 : index
    %41 = vector.load %arg3[%c1_27, %c0_28, %c0_29] : memref<9x16x8xbf16, #tpu.memory_space<vmem>>, vector<1x16x8xbf16>
    %42 = vector.shape_cast %41 : vector<1x16x8xbf16> to vector<16x8xbf16>
    %cst_30 = arith.constant dense<0.000000e+00> : vector<128x8xf32>
    %43 = tpu.matmul %40, %42, %cst_30 {dimension_numbers = #tpu.dot_dimension_numbers<[1], [0], [0], [1], [0, 0, 1, 1], [], []>} : vector<128x16xbf16>, vector<16x8xbf16>, vector<128x8xf32> -> vector<128x8xf32>
    %44 = arith.addf %39, %43 : vector<128x8xf32>
    %c2 = arith.constant 2 : index
    %c0_31 = arith.constant 0 : index
    %45 = vector.load %arg6[%c2, %c0_31] : memref<162x16xbf16, #tpu.memory_space<vmem>>, vector<128x16xbf16>
    %c2_32 = arith.constant 2 : index
    %c0_33 = arith.constant 0 : index
    %c0_34 = arith.constant 0 : index
    %46 = vector.load %arg3[%c2_32, %c0_33, %c0_34] : memref<9x16x8xbf16, #tpu.memory_space<vmem>>, vector<1x16x8xbf16>
    %47 = vector.shape_cast %46 : vector<1x16x8xbf16> to vector<16x8xbf16>
    %cst_35 = arith.constant dense<0.000000e+00> : vector<128x8xf32>
    %48 = tpu.matmul %45, %47, %cst_35 {dimension_numbers = #tpu.dot_dimension_numbers<[1], [0], [0], [1], [0, 0, 1, 1], [], []>} : vector<128x16xbf16>, vector<16x8xbf16>, vector<128x8xf32> -> vector<128x8xf32>
    %49 = arith.addf %44, %48 : vector<128x8xf32>
    %c16 = arith.constant 16 : index
    %c0_36 = arith.constant 0 : index
    %50 = vector.load %arg6[%c16, %c0_36] : memref<162x16xbf16, #tpu.memory_space<vmem>>, vector<128x16xbf16>
    %c3 = arith.constant 3 : index
    %c0_37 = arith.constant 0 : index
    %c0_38 = arith.constant 0 : index
    %51 = vector.load %arg3[%c3, %c0_37, %c0_38] : memref<9x16x8xbf16, #tpu.memory_space<vmem>>, vector<1x16x8xbf16>
    %52 = vector.shape_cast %51 : vector<1x16x8xbf16> to vector<16x8xbf16>
    %cst_39 = arith.constant dense<0.000000e+00> : vector<128x8xf32>
    %53 = tpu.matmul %50, %52, %cst_39 {dimension_numbers = #tpu.dot_dimension_numbers<[1], [0], [0], [1], [0, 0, 1, 1], [], []>} : vector<128x16xbf16>, vector<16x8xbf16>, vector<128x8xf32> -> vector<128x8xf32>
    %54 = arith.addf %49, %53 : vector<128x8xf32>
    %c17_40 = arith.constant 17 : index
    %c0_41 = arith.constant 0 : index
    %55 = vector.load %arg6[%c17_40, %c0_41] : memref<162x16xbf16, #tpu.memory_space<vmem>>, vector<128x16xbf16>
    %c4 = arith.constant 4 : index
    %c0_42 = arith.constant 0 : index
    %c0_43 = arith.constant 0 : index
    %56 = vector.load %arg3[%c4, %c0_42, %c0_43] : memref<9x16x8xbf16, #tpu.memory_space<vmem>>, vector<1x16x8xbf16>
    %57 = vector.shape_cast %56 : vector<1x16x8xbf16> to vector<16x8xbf16>
    %cst_44 = arith.constant dense<0.000000e+00> : vector<128x8xf32>
    %58 = tpu.matmul %55, %57, %cst_44 {dimension_numbers = #tpu.dot_dimension_numbers<[1], [0], [0], [1], [0, 0, 1, 1], [], []>} : vector<128x16xbf16>, vector<16x8xbf16>, vector<128x8xf32> -> vector<128x8xf32>
    %59 = arith.addf %54, %58 : vector<128x8xf32>
    %c18 = arith.constant 18 : index
    %c0_45 = arith.constant 0 : index
    %60 = vector.load %arg6[%c18, %c0_45] : memref<162x16xbf16, #tpu.memory_space<vmem>>, vector<128x16xbf16>
    %c5 = arith.constant 5 : index
    %c0_46 = arith.constant 0 : index
    %c0_47 = arith.constant 0 : index
    %61 = vector.load %arg3[%c5, %c0_46, %c0_47] : memref<9x16x8xbf16, #tpu.memory_space<vmem>>, vector<1x16x8xbf16>
    %62 = vector.shape_cast %61 : vector<1x16x8xbf16> to vector<16x8xbf16>
    %cst_48 = arith.constant dense<0.000000e+00> : vector<128x8xf32>
    %63 = tpu.matmul %60, %62, %cst_48 {dimension_numbers = #tpu.dot_dimension_numbers<[1], [0], [0], [1], [0, 0, 1, 1], [], []>} : vector<128x16xbf16>, vector<16x8xbf16>, vector<128x8xf32> -> vector<128x8xf32>
    %64 = arith.addf %59, %63 : vector<128x8xf32>
    %c32 = arith.constant 32 : index
    %c0_49 = arith.constant 0 : index
    %65 = vector.load %arg6[%c32, %c0_49] : memref<162x16xbf16, #tpu.memory_space<vmem>>, vector<128x16xbf16>
    %c6 = arith.constant 6 : index
    %c0_50 = arith.constant 0 : index
    %c0_51 = arith.constant 0 : index
    %66 = vector.load %arg3[%c6, %c0_50, %c0_51] : memref<9x16x8xbf16, #tpu.memory_space<vmem>>, vector<1x16x8xbf16>
    %67 = vector.shape_cast %66 : vector<1x16x8xbf16> to vector<16x8xbf16>
    %cst_52 = arith.constant dense<0.000000e+00> : vector<128x8xf32>
    %68 = tpu.matmul %65, %67, %cst_52 {dimension_numbers = #tpu.dot_dimension_numbers<[1], [0], [0], [1], [0, 0, 1, 1], [], []>} : vector<128x16xbf16>, vector<16x8xbf16>, vector<128x8xf32> -> vector<128x8xf32>
    %69 = arith.addf %64, %68 : vector<128x8xf32>
    %c33_53 = arith.constant 33 : index
    %c0_54 = arith.constant 0 : index
    %70 = vector.load %arg6[%c33_53, %c0_54] : memref<162x16xbf16, #tpu.memory_space<vmem>>, vector<128x16xbf16>
    %c7 = arith.constant 7 : index
    %c0_55 = arith.constant 0 : index
    %c0_56 = arith.constant 0 : index
    %71 = vector.load %arg3[%c7, %c0_55, %c0_56] : memref<9x16x8xbf16, #tpu.memory_space<vmem>>, vector<1x16x8xbf16>
    %72 = vector.shape_cast %71 : vector<1x16x8xbf16> to vector<16x8xbf16>
    %cst_57 = arith.constant dense<0.000000e+00> : vector<128x8xf32>
    %73 = tpu.matmul %70, %72, %cst_57 {dimension_numbers = #tpu.dot_dimension_numbers<[1], [0], [0], [1], [0, 0, 1, 1], [], []>} : vector<128x16xbf16>, vector<16x8xbf16>, vector<128x8xf32> -> vector<128x8xf32>
    %74 = arith.addf %69, %73 : vector<128x8xf32>
    %c34 = arith.constant 34 : index
    %c0_58 = arith.constant 0 : index
    %75 = vector.load %arg6[%c34, %c0_58] : memref<162x16xbf16, #tpu.memory_space<vmem>>, vector<128x16xbf16>
    %c8 = arith.constant 8 : index
    %c0_59 = arith.constant 0 : index
    %c0_60 = arith.constant 0 : index
    %76 = vector.load %arg3[%c8, %c0_59, %c0_60] : memref<9x16x8xbf16, #tpu.memory_space<vmem>>, vector<1x16x8xbf16>
    %77 = vector.shape_cast %76 : vector<1x16x8xbf16> to vector<16x8xbf16>
    %cst_61 = arith.constant dense<0.000000e+00> : vector<128x8xf32>
    %78 = tpu.matmul %75, %77, %cst_61 {dimension_numbers = #tpu.dot_dimension_numbers<[1], [0], [0], [1], [0, 0, 1, 1], [], []>} : vector<128x16xbf16>, vector<16x8xbf16>, vector<128x8xf32> -> vector<128x8xf32>
    %79 = arith.addf %74, %78 : vector<128x8xf32>
    %80 = arith.truncf %79 : vector<128x8xf32> to vector<128x8xbf16>
    %c0_62 = arith.constant 0 : index
    %c0_63 = arith.constant 0 : index
    %c0_64 = arith.constant 0 : index
    %81 = vector.load %arg4[%c0_62, %c0_63, %c0_64] : memref<1x128x8xbf16, #tpu.memory_space<vmem>>, vector<1x128x8xbf16>
    %82 = vector.shape_cast %81 : vector<1x128x8xbf16> to vector<128x8xbf16>
    %83 = vector.shape_cast %80 : vector<128x8xbf16> to vector<1x128x8xbf16>
    tpu.vector_store %arg4[%c0_62, %c0_63, %c0_64], %83 {strides = array<i32>} : memref<1x128x8xbf16, #tpu.memory_space<vmem>>, vector<1x128x8xbf16>,
    %84 = tpu.iota {dimensions = array<i32: 0>} : vector<128x8xi32>
    %c16_i32 = arith.constant 16 : i32
    %c0_i32 = arith.constant 0 : i32
    %85 = arith.cmpi eq, %c16_i32, %c0_i32 : i32
    %c1_i32 = arith.constant 1 : i32
    %86 = arith.select %85, %c1_i32, %c16_i32 : i32
    %87 = vector.broadcast %86 : i32 to vector<128x8xi32>
    %88 = arith.remsi %84, %87 : vector<128x8xi32>
    %c0_i32_65 = arith.constant 0 : i32
    %89 = vector.broadcast %c0_i32_65 : i32 to vector<128x8xi32>
    %90 = arith.cmpi ne, %88, %89 : vector<128x8xi32>
    %c0_i32_66 = arith.constant 0 : i32
    %91 = vector.broadcast %c0_i32_66 : i32 to vector<128x8xi32>
    %92 = arith.cmpi slt, %88, %91 : vector<128x8xi32>
    %c0_i32_67 = arith.constant 0 : i32
    %93 = arith.cmpi slt, %86, %c0_i32_67 : i32
    %94 = vector.broadcast %93 : i1 to vector<128x8xi1>
    %95 = vector.broadcast %94 : vector<128x8xi1> to vector<128x8xi1>
    %96 = arith.xori %92, %95 : vector<128x8xi1>
    %97 = arith.andi %96, %90 : vector<128x8xi1>
    %98 = vector.broadcast %86 : i32 to vector<128x8xi32>
    %99 = arith.addi %88, %98 : vector<128x8xi32>
    %100 = arith.select %97, %99, %88 : vector<128x8xi1>, vector<128x8xi32>
    %c8_i32 = arith.constant 8 : i32
    %101 = vector.broadcast %c8_i32 : i32 to vector<128x8xi32>
    %102 = arith.cmpi slt, %100, %101 : vector<128x8xi32>
    %cst_68 = arith.constant 0.000000e+00 : f32
    %103 = vector.broadcast %cst_68 : f32 to vector<128x8xf32>
    %104 = arith.select %102, %79, %103 : vector<128x8xi1>, vector<128x8xf32>
    %cst_69 = arith.constant dense<0.000000e+00> : vector<8xf32>
    %105 = vector.multi_reduction <add>, %104, %cst_69 [0] : vector<128x8xf32> to vector<8xf32>
    %106 = vector.shape_cast %105 : vector<8xf32> to vector<1x8xf32>
    %107 = arith.addf %32, %106 : vector<1x8xf32>
    %108 = arith.mulf %79, %79 : vector<128x8xf32>
    %cst_70 = arith.constant 0.000000e+00 : f32
    %109 = vector.broadcast %cst_70 : f32 to vector<128x8xf32>
    %110 = arith.select %102, %108, %109 : vector<128x8xi1>, vector<128x8xf32>
    %cst_71 = arith.constant dense<0.000000e+00> : vector<8xf32>
    %111 = vector.multi_reduction <add>, %110, %cst_71 [0] : vector<128x8xf32> to vector<8xf32>
    %112 = vector.shape_cast %111 : vector<8xf32> to vector<1x8xf32>
    %113 = arith.addf %33, %112 : vector<1x8xf32>
    %cst_72 = arith.constant 0.000000e+00 : f32
    %114 = vector.broadcast %cst_72 : f32 to vector<6x8xf32>
    %115 = tpu.concatenate %107, %113, %114 in 0 : vector<1x8xf32>, vector<1x8xf32>, vector<6x8xf32> -> vector<8x8xf32>
    %c0_73 = arith.constant 0 : index
    %c0_74 = arith.constant 0 : index
    %c0_75 = arith.constant 0 : index
    %116 = vector.load %arg5[%c0_73, %c0_74, %c0_75] : memref<1x8x8xf32, #tpu.memory_space<vmem>>, vector<1x8x8xf32>
    %117 = vector.shape_cast %116 : vector<1x8x8xf32> to vector<8x8xf32>
    %118 = vector.shape_cast %115 : vector<8x8xf32> to vector<1x8x8xf32>
    tpu.vector_store %arg5[%c0_73, %c0_74, %c0_75], %118 {strides = array<i32>} : memref<1x8x8xf32, #tpu.memory_space<vmem>>, vector<1x8x8xf32>,
    return
  }
  func.func @transform_0(%arg0: i32) -> (i32, i32) {
    %c0_i32 = arith.constant 0 : i32
    %c0_i32_0 = arith.constant 0 : i32
    return %arg0, %c0_i32 : i32, i32
  }
  func.func @transform_1(%arg0: i32) -> (i32, i32) {
    %c0_i32 = arith.constant 0 : i32
    %c0_i32_0 = arith.constant 0 : i32
    %c0_i32_1 = arith.constant 0 : i32
    return %c0_i32, %c0_i32_0 : i32, i32
  }
  func.func @transform_2(%arg0: i32) -> (i32, i32, i32) {
    %c0_i32 = arith.constant 0 : i32
    %c0_i32_0 = arith.constant 0 : i32
    %c0_i32_1 = arith.constant 0 : i32
    %c0_i32_2 = arith.constant 0 : i32
    return %c0_i32, %c0_i32_0, %c0_i32_1 : i32, i32, i32
  }
  func.func @transform_3(%arg0: i32) -> (i32, i32, i32) {
    %c0_i32 = arith.constant 0 : i32
    %c0_i32_0 = arith.constant 0 : i32
    %c0_i32_1 = arith.constant 0 : i32
    return %arg0, %c0_i32, %c0_i32_0 : i32, i32, i32
  }
  func.func @transform_4(%arg0: i32) -> (i32, i32, i32) {
    %c0_i32 = arith.constant 0 : i32
    %c0_i32_0 = arith.constant 0 : i32
    %c0_i32_1 = arith.constant 0 : i32
    return %arg0, %c0_i32, %c0_i32_0 : i32, i32, i32
  }
}

</mosaic_0001>

<bundles_post_ra>
// kernel: residual_conv2d_forward.5
= control target key start
LH: loop header
LB: loop body
LE: loop exit
PB: predicated region body
PF: predicated region fallthrough
CT: control target
= control target key end

     0   :  { %s1059_s0 = inlined_call_operand.hbm [shape: bf16[2,128,8], index: 0, kind: input, shape index: {}]   ;;  %s1060_s1 = inlined_call_operand.hbm [shape: bf16[128,16], index: 1, kind: input, shape index: {}]   ;;  %s1061_s2 = inlined_call_operand.hbm [shape: f32[8,8], index: 2, kind: input, shape index: {}]   ;;  %s1062_s3 = inlined_call_operand.hbm [shape: f32[2,64,8], index: 3, kind: output, shape index: {}]  }
   0x1   :  { %1068 = sst [smem:[#allocation13_spill]] %s1059_s0 }
   0x2   :  { %8 = vsyncpa [#allocation3], 0 }
   0x3   :  { %10 = vsyncpa [#allocation3 + $0x1], 0 }
   0x4   :  { %11 = vsyncpa [#allocation6], 0 }
   0x5   :  { %13 = vsyncpa [#allocation6 + $0x1], 0 }
   0x6   :  { %14 = vsyncpa [#allocation4], 0 }
   0x7   :  { %16 = vsyncpa [#allocation4 + $0x1], 0  ;;  %s779_s12 = smov 0   ;;  %s781_s13 = smov 0  }
   0x8   :  { %s783_s14 = smov 0   ;;  %s785_s15 = smov 0  }
   0x9 LB: > { %s800_s16 = sadd.s32 4294967295, %s748_s15   ;;  %s493_s17 = sadd.s32 4294967294, %s748_s15   ;;  %s748_s15 = sphi %s785_s15, %s1089_s15   ;;  %s744_s14 = sphi %s783_s14, %s1088_s14   ;;  %s740_s13 = sphi %s781_s13, %s1087_s13   ;;  %s736_s12 = sphi %s779_s12, %s1086_s12  }
   0xa   : > { %s804_s18 = sadd.s32 1, %s748_s15   ;;  %s29_s19 = sadd.s32 1, %s744_s14 }
   0xb   : > { %s26_s20 = ssub.s32 %s748_s15, %s804_s18  ;;  %p36_p0 = scmp.ne.s32.totalorder %s744_s14, %s740_s13 }
   0xc   : > { %p27_p1 = scmp.eq.s32.totalorder %s26_s20, 0  ;;  %p37_p2 = scmp.eq.s32.totalorder %s748_s15, 0 }
   0xd   : > { %p42_p3 = scmp.ne.s32.totalorder %s740_s13, %s736_s12  ;;  %p1063_p4 = scmp.eq.s32.totalorder %s800_s16, 0 }
   0xe   : > { %s816_s21 = scalar_select %p27_p1, %s744_s14, %s29_s19  }
   0xf   : > { %p818_p5 = por %p37_p2, %p36_p0  ;;  %p824_p6 = por %p1063_p4, %p42_p3 }
  0x10   : > { %p113_p7 = scmp.eq.s32.totalorder %s800_s16, 1  ;;  %p119_p8 = scmp.eq.s32.totalorder %s493_s17, 1 }
  0x11   : > { %s1070_s23 = scalar_select %p824_p6, 1, 0 }
  0x12   : > { %p494_p9 = scmp.ge.s32.totalorder %s748_s15, 1  ;;  %p126_p10 = scmp.lt.s32.totalorder %s748_s15, 3 }
  0x13   : > { %p831_p11 = por %p113_p7, %p36_p0  ;;  %p835_p12 = por %p119_p8, %p42_p3 }
  0x14   : > { %p839_p13 = pnand %p494_p9, %p126_p10  ;;  %s750_s27 = smov [#allocation7]  }
  0x15   : > { %s1071_s24 = scalar_select %p831_p11, 1, 0 }
  0x16   : > { %s1072_s25 = scalar_select %p835_p12, 1, 0 }
  0x17   : > { %s1073_s26 = scalar_select %p839_p13, 1, 0 }
  0x18   : > { %p529_p2 = pneg %p839_p13  ;;  %s139_s28 = sshll.u32 %s750_s27, 4  ;;  %s140_s28 = int_to_ptr.vmem [resolvable:$true] %s139_s28 }
  0x19   : > { %p545_p4 = scmp.lt.s32.totalorder %s748_s15, 2  ;;  %p1074_p0 = scmp.eq.s32.totalorder %s800_s16, 0 }
  0x1a   : > { %s854_s30 = sand.u32 1, %s744_s14   ;;  %s586_s8 = scalar_lea.hbm %s1061_s2, 128 }
  0x1b   : > { %p849_p7 = pnand %p529_p2, %p1074_p0  ;;  %p858_p3 = pnand %p545_p4, %p818_p5 }
  0x1c   : > { %s497_s5 = sshll.u32 %s854_s30, 6  ;;  %p587_p8 = scmp.ne.s32.totalorder %s1061_s2, %s586_s8 }
  0x1d   : > { %s1076_s4 = scalar_select %p858_p3, 1, 0 }
  0x1e   : > { %p588_p9 = pneg %p849_p7  ;;  %p593_p4 = scmp.lt.u32.totalorder %s586_s8, %s1061_s2 }
  0x20   : > { %p589_p10 = pnand %p588_p9, %p587_p8 }
  0x22   : > { %p590_p2 = pneg %p589_p10 }
  0x24   : > { %p595_p5 = pnand %p593_p4, %p590_p2 }
  0x26   : > { %598 = shalt.err (!%p595_p5)
}
  0x27   : > { %s599_s19 = scalar_lea.vmem %s140_s28, 128  ;;  %p607_p11 = scmp.lt.s32.totalorder %s140_s28, %s140_s28 }
  0x28   : > { %p600_p0 = scmp.ne.s32.totalorder %s140_s28, %s599_s19  ;;  %p608_p6 = scmp.lt.s32.totalorder %s599_s19, %s599_s19 }
  0x2a   : > { %p602_p1 = pnand %p600_p0, %p588_p9  ;;  %p609_p13 = por %p608_p6, %p607_p11 }
  0x2c   : > { %p603_p12 = pneg %p602_p1 }
  0x2e   : > { %p610_p3 = pnand %p609_p13, %p603_p12 }
  0x30   : > { %613 = shalt.err (!%p610_p3)
}
  0x31   : > { %532 = dma.hbm_to_vmem [thread:$0]  (!%p849_p7), %s1061_s2, 128, %s140_s28, [#allocation6]  }
  0x32   : > { %s516_s27 = sshll.u32 %s748_s15, 10  ;;  %s154_s6 = scalar_lea.vmem [#allocation2], %s497_s5 }
  0x33   : > { %s161_s7 = sshll.u32 %s154_s6, 4  ;;  %s1077_s0 = sld [smem:[#allocation13_spill]]  ;;  %s885_s7 = int_to_ptr.vmem [resolvable:$true] %s161_s7 }
  0x34   : > { %s151_s29 = scalar_lea.sflag [#allocation3], %s854_s30  ;;  %p1078_p11 = scmp.ne.s32.totalorder %s1076_s4, 0 }
  0x36   : > { %p616_p12 = pneg %p1078_p11 }
  0x39   : > { %s883_s10 = scalar_lea.hbm %s1077_s0, %s516_s27  ;;  %s619_s17 = scalar_lea.hbm %s1077_s0, 2048 }
  0x3a   : > { %s614_s11 = scalar_lea.hbm %s883_s10, 1024  ;;  %p620_p7 = scmp.lt.u32.totalorder %s883_s10, %s1077_s0 }
  0x3b   : > { %p615_p6 = scmp.ne.s32.totalorder %s883_s10, %s614_s11  ;;  %p621_p3 = scmp.lt.u32.totalorder %s619_s17, %s614_s11 }
  0x3c   : > { %p623_p9 = scmp.lt.u32.totalorder %s614_s11, %s883_s10 }
  0x3d   : > { %p617_p13 = pnand %p616_p12, %p615_p6  ;;  %p622_p8 = por %p621_p3, %p620_p7 }
  0x3f   : > { %p618_p1 = pneg %p617_p13  ;;  %p624_p10 = por %p623_p9, %p622_p8 }
  0x41   : > { %p625_p2 = pnand %p624_p10, %p618_p1 }
  0x43   : > { %628 = shalt.err (!%p625_p2)
}
  0x44   : > { %s629_s22 = scalar_lea.vmem %s885_s7, 1024  ;;  %s751_s27 = smov [#allocation2]  }
  0x45   : > { %p630_p4 = scmp.ne.s32.totalorder %s885_s7, %s629_s22  ;;  %s634_s6 = sshll.u32 %s751_s27, 4  ;;  %s635_s6 = int_to_ptr.vmem [resolvable:$false] %s634_s6 }
  0x46   : > { %s636_s8 = scalar_lea.vmem %s635_s6, 2048  ;;  %p637_p6 = scmp.lt.s32.totalorder %s885_s7, %s635_s6 }
  0x47   : > { %p632_p5 = pnand %p630_p4, %p616_p12  ;;  %p638_p13 = scmp.lt.s32.totalorder %s636_s8, %s629_s22 }
  0x49   : > { %p633_p0 = pneg %p632_p5  ;;  %p639_p7 = por %p638_p13, %p637_p6 }
  0x4b   : > { %p640_p3 = pnand %p639_p7, %p633_p0 }
  0x4d   : > { %643 = shalt.err (!%p640_p3)
}
  0x4e   : > { %s752_s9 = smov 64   ;;  %s753_s11 = smov 4  }
  0x4f   : > { %536 = dma.hbm_to_vmem [thread:$0]  (!%p1078_p11), %s883_s10, 1024, %s885_s7, %s151_s29, %s752_s9, %s752_s9, %s753_s11  }
  0x50   : > { %s171_s28 = sand.u32 1, %s748_s15   ;;  %s500_s5 = sshll.u32 %s854_s30, 5 }
  0x51   : > { %s517_s17 = sshll.u32 %s748_s15, 9  ;;  %s175_s19 = scalar_lea.vmem [#allocation5], %s500_s5 }
  0x52   : > { %s182_s20 = sshll.u32 %s175_s19, 4  ;;  %s924_s6 = scalar_lea.hbm %s1060_s1, %s517_s17  ;;  %s926_s20 = int_to_ptr.vmem [resolvable:$true] %s182_s20 }
  0x53   : > { %s928_s8 = scalar_lea.sflag [#allocation6], %s171_s28  ;;  %s644_s0 = scalar_lea.hbm %s924_s6, 512 }
  0x54   : > { %p645_p1 = scmp.ne.s32.totalorder %s924_s6, %s644_s0  ;;  %s649_s10 = scalar_lea.hbm %s1060_s1, 1024 }
  0x55   : > { %p650_p10 = scmp.lt.u32.totalorder %s924_s6, %s1060_s1  ;;  %p651_p2 = scmp.lt.u32.totalorder %s649_s10, %s644_s0 }
  0x56   : > { %p647_p8 = pnand %p645_p1, %p616_p12  ;;  %p653_p5 = scmp.lt.u32.totalorder %s644_s0, %s924_s6 }
  0x57   : > { %p652_p4 = por %p651_p2, %p650_p10 }
  0x58   : > { %p648_p9 = pneg %p647_p8 }
  0x59   : > { %p654_p0 = por %p653_p5, %p652_p4 }
  0x5b   : > { %p655_p6 = pnand %p654_p0, %p648_p9 }
  0x5d   : > { %658 = shalt.err (!%p655_p6)
}
  0x5e   : > { %s659_s28 = scalar_lea.vmem %s926_s20, 512  ;;  %s754_s17 = smov [#allocation5]  }
  0x5f   : > { %p660_p13 = scmp.ne.s32.totalorder %s926_s20, %s659_s28  ;;  %s664_s19 = sshll.u32 %s754_s17, 4  ;;  %s665_s19 = int_to_ptr.vmem [resolvable:$false] %s664_s19 }
  0x60   : > { %s666_s22 = scalar_lea.vmem %s665_s19, 1024  ;;  %p667_p1 = scmp.lt.s32.totalorder %s926_s20, %s665_s19 }
  0x61   : > { %p662_p7 = pnand %p660_p13, %p616_p12  ;;  %p668_p8 = scmp.lt.s32.totalorder %s666_s22, %s659_s28 }
  0x63   : > { %p663_p3 = pneg %p662_p7  ;;  %p669_p10 = por %p668_p8, %p667_p1 }
  0x65   : > { %p670_p2 = pnand %p669_p10, %p663_p3 }
  0x67   : > { %673 = shalt.err (!%p670_p2)
}
  0x68   : > { %539 = dma.hbm_to_vmem [thread:$0]  (!%p1078_p11), %s924_s6, 512, %s926_s20, %s928_s8, %s752_s9, %s752_s9, %s753_s11  }
  0x69   : > { %p1079_p12 = scmp.ne.s32.totalorder %s1073_s26, 0 }
  0x6a   : > { %s960_s0 = sand.u32 (!%p1079_p12), 1, %s740_s13   ;;  %p1080_p9 = scmp.ne.s32.totalorder (!%p1079_p12), %s1070_s23, 0 }
  0x6b   : > { %194 = sbr.rel (%p1079_p12) target bundleno = 387 (0x183), region = 32  ;;  %s504_s27 = sshll.u32 (!%p1079_p12), %s960_s0, 6 }
  0x6c   : > { %s197_s30 = scalar_lea.sflag (!%p1079_p12), [#allocation3], %s960_s0  ;;  %s966_s4 = scalar_lea.vmem (!%p1079_p12), [#allocation2], %s504_s27 }
  0x72   : > { %719 = dma.done.wait (%p1080_p9), %s197_s30, 1024  }
  0x73   : > { %721 = vsyncadd (%p1080_p9), %s197_s30, 4294966272  ;;  %s205_s26 = sand.u32 1, %s800_s16   ;;  %s505_s9 = sshll.u32 %s960_s0, 5 }
  0x74   : > { %s206_s11 = scalar_lea.sflag [#allocation6], %s205_s26  ;;  %s209_s20 = scalar_lea.vmem [#allocation5], %s505_s9 }
  0x75   : > { %723 = dma.done.wait (%p1080_p9), %s206_s11, 512  }
  0x76   : > { %725 = vsyncadd (%p1080_p9), %s206_s11, 4294966784  ;;  %p1081_p11 = scmp.eq.s32.totalorder %s800_s16, 0 }
  0x78   : > { %727 = dma.done.wait (%p1081_p11), [#allocation6], 128   ;;  %p1082_p4 = pmov %p1081_p11 }
  0x79   : > { %v509_v0 = vld [vmem:[#allocation7 + $0x1] ss:$0 sm:$0xff]  ;;  %s755_s6 = smov 8   ;;  %v306_v4 = vld [vmem:[%s209_s20 + $0xc] sm:$0xff]   ;;  %v292_v5 = vld [vmem:[%s209_s20 + $0x8] ss:$20 sps:$4 sm:$0xff]  }
  0x7a   : > { %729 = vsyncadd (%p1082_p4), [#allocation6], 4294967168  ;;  %259 = vrot.lane.b32.xlu0 %v509_v0, %s755_s6  ;;  %v247_v1 = vld [vmem:[%s209_s20] sm:$0xff]   ;;  %v307_v9 = vunpack.c.l.bf16 %v306_v4  ;;  %v293_v10 = vunpack.c.l.bf16 %v292_v5  ;;  %v334_v11 = vld [vmem:[%s209_s20 + $0x14] sm:$0xff]   ;;  %s756_s23 = smov 120   ;;  %v321_v15 = vunpack.c.h.bf16 %v306_v4  ;;  %v363_v18 = vunpack.c.h.bf16 %v292_v5  ;;  %s989_s8 = scalar_lea.vmem [#allocation8], %s504_s27 }
  0x7b   : > { %v248_v2 = vunpack.c.l.bf16 %v247_v1  ;;  %v279_v3 = vunpack.c.h.bf16 %v247_v1  ;;  %v335_v14 = vunpack.c.l.bf16 %v334_v11  ;;  %v349_v19 = vunpack.c.h.bf16 %v334_v11  ;;  %v245_v22 = vld [vmem:[%s966_s4] ss:$8 sps:$4 sm:$0xff]   ;;  %v304_v26 = vld [vmem:[%s966_s4 + $0x10] ss:$8 sps:$4 sm:$0xff]   ;;  %s518_s7 = sshll.u32 %s800_s16, 10  ;;  %s388_s10 = sshll.u32 %s989_s8, 4  ;;  %s1010_s10 = int_to_ptr.vmem [resolvable:$true] %s388_s10 }
  0x7c   : > { %v246_v23 = vunpack.c.l.bf16 %v245_v22  ;;  %v277_v24 = vunpack.c.h.bf16 %v245_v22  ;;  %v508_v25 = vld [vmem:[#allocation7] ss:$0 sm:$0xff]  ;;  %v305_v29 = vunpack.c.h.bf16 %v304_v26  ;;  %v291_v30 = vunpack.c.l.bf16 %v304_v26  ;;  %v510_v32 = vld [vmem:[#allocation7 + $0x2] ss:$0 sm:$0xff]  ;;  %v360_v41 = vld [vmem:[%s966_s4 + $0x30] ss:$8 sps:$4 sm:$0xff]   ;;  %s1008_s28 = scalar_lea.hbm %s1062_s3, %s518_s7 }
  0x7d   : > { %v332_v31 = vld [vmem:[%s966_s4 + $0x20] ss:$8 sps:$4 sm:$0xff]   ;;  %vm274_vm0 = vcmask 64512   ;;  %v361_v48 = vunpack.c.h.bf16 %v360_v41  ;;  %v347_v49 = vunpack.c.l.bf16 %v360_v41  ;;  %s375_s16 = scalar_lea.sflag [#allocation4], %s960_s0  ;;  %s674_s17 = scalar_lea.vmem %s1010_s10, 1024 }
  0x7e   : > { %v253_v27 = vmul.f32 %v508_v25, %v246_v23  ;;  %v280_v28 = vmul.f32 %v508_v25, %v277_v24  ;;  %v333_v35 = vunpack.c.h.bf16 %v332_v31  ;;  %v319_v36 = vunpack.c.l.bf16 %v332_v31  ;;  %p675_p5 = scmp.ne.s32.totalorder %s1010_s10, %s674_s17  ;;  %p1083_p0 = scmp.ne.s32.totalorder %s1071_s24, 0 }
  0x7f   : > { %v308_v39 = vmul.f32 %v508_v25, %v305_v29  ;;  %v294_v40 = vmul.f32 %v508_v25, %v291_v30  ;;  %v364_v58 = vmul.f32 %v508_v25, %v361_v48  ;;  %v350_v59 = vmul.f32 %v508_v25, %v347_v49  ;;  %s757_s19 = smov [#allocation8]  }
  0x80   : > { %v336_v46 = vmul.f32 %v508_v25, %v333_v35  ;;  %v322_v47 = vmul.f32 %v508_v25, %v319_v36  ;;  %p676_p6 = pnand %p675_p5, %p1083_p0  ;;  %s678_s22 = sshll.u32 %s757_s19, 4  ;;  %s679_s22 = int_to_ptr.vmem [resolvable:$false] %s678_s22 }
  0x81   : > { %s680_s27 = scalar_lea.vmem %s679_s22, 2048  ;;  %p681_p7 = scmp.lt.s32.totalorder %s1010_s10, %s679_s22 }
  0x82   : > { %p677_p13 = pneg %p676_p6  ;;  %p682_p3 = scmp.lt.s32.totalorder %s680_s27, %s674_s17 }
  0x84   : > { %p683_p1 = por %p682_p3, %p681_p7 }
  0x86   : > { %p684_p8 = pnand %p683_p1, %p677_p13 }
  0xec   : > { %v260_v6 = vpop.permute.xlu0 %259 }
  0xed   : > { %v262_v7 = vmul.f32 %v260_v6, %v248_v2  ;;  %v281_v8 = vmul.f32 %v279_v3, %v260_v6  ;;  %v309_v12 = vmul.f32 %v307_v9, %v260_v6  ;;  %v295_v13 = vmul.f32 %v293_v10, %v260_v6 }
  0xee   : > { %v337_v16 = vmul.f32 %v335_v14, %v260_v6  ;;  %v323_v17 = vmul.f32 %v321_v15, %v260_v6  ;;  %v365_v20 = vmul.f32 %v363_v18, %v260_v6  ;;  %v351_v21 = vmul.f32 %v349_v19, %v260_v6 }
  0xef   : > { %264 = vrot.lane.b32.xlu0 %v262_v7, %s756_s23  ;;  %283 = vrot.lane.b32.xlu1 %v281_v8, %s756_s23 }
  0xf3   : > { %311 = vrot.lane.b32.xlu0 %v309_v12, %s756_s23  ;;  %297 = vrot.lane.b32.xlu1 %v295_v13, %s756_s23 }
  0xf7   : > { %339 = vrot.lane.b32.xlu0 %v337_v16, %s756_s23  ;;  %325 = vrot.lane.b32.xlu1 %v323_v17, %s756_s23 }
  0xfb   : > { %367 = vrot.lane.b32.xlu0 %v365_v20, %s756_s23  ;;  %353 = vrot.lane.b32.xlu1 %v351_v21, %s756_s23 }
 0x161   : > { %v265_v33 = vpop.permute.xlu0 %264  ;;  %v284_v34 = vpop.permute.xlu1 %283 }
 0x162   : > { %v267_v37 = vadd.f32 %v265_v33, %v253_v27  ;;  %v286_v38 = vadd.f32 %v284_v34, %v280_v28 }
 0x164   : > { %v272_v42 = vadd.f32 %v510_v32, %v267_v37  ;;  %v287_v43 = vadd.f32 %v510_v32, %v286_v38 }
 0x165   : > { %v312_v44 = vpop.permute.xlu0 %311  ;;  %v298_v45 = vpop.permute.xlu1 %297 }
 0x166   : > { %v273_v50 = vmax.f32 %v272_v42, 0.0  ;;  %v288_v51 = vmax.f32 %v287_v43, 0.0  ;;  %v314_v52 = vadd.f32 %v312_v44, %v308_v39  ;;  %v300_v53 = vadd.f32 %v298_v45, %v294_v40 }
 0x168   : > { %275 = vst.msk [vmem:[%s989_s8] sm:$0xff] %vm274_vm0, %v273_v50  ;;  %289 = vst.msk [vmem:[%s989_s8 + $0x8] sm:$0xff] %vm274_vm0, %v288_v51  ;;  %v315_v54 = vadd.f32 %v510_v32, %v314_v52  ;;  %v301_v55 = vadd.f32 %v510_v32, %v300_v53 }
 0x169   : > { %v340_v56 = vpop.permute.xlu0 %339  ;;  %v326_v57 = vpop.permute.xlu1 %325 }
 0x16a   : > { %v316_v60 = vmax.f32 %v315_v54, 0.0  ;;  %v302_v61 = vmax.f32 %v301_v55, 0.0  ;;  %v342_v62 = vadd.f32 %v340_v56, %v336_v46  ;;  %v328_v63 = vadd.f32 %v326_v57, %v322_v47 }
 0x16c   : > { %317 = vst.msk [vmem:[%s989_s8 + $0x18] sm:$0xff] %vm274_vm0, %v316_v60  ;;  %303 = vst.msk [vmem:[%s989_s8 + $0x10] sm:$0xff] %vm274_vm0, %v302_v61  ;;  %v343_v0 = vadd.f32 %v510_v32, %v342_v62  ;;  %v329_v1 = vadd.f32 %v510_v32, %v328_v63 }
 0x16d   : > { %v368_v2 = vpop.permute.xlu0 %367  ;;  %v354_v3 = vpop.permute.xlu1 %353 }
 0x16e   : > { %v344_v4 = vmax.f32 %v343_v0, 0.0  ;;  %v330_v5 = vmax.f32 %v329_v1, 0.0  ;;  %v370_v6 = vadd.f32 %v368_v2, %v364_v58  ;;  %v356_v7 = vadd.f32 %v354_v3, %v350_v59 }
 0x170   : > { %345 = vst.msk [vmem:[%s989_s8 + $0x28] sm:$0xff] %vm274_vm0, %v344_v4  ;;  %331 = vst.msk [vmem:[%s989_s8 + $0x20] sm:$0xff] %vm274_vm0, %v330_v5  ;;  %v371_v8 = vadd.f32 %v510_v32, %v370_v6  ;;  %v357_v9 = vadd.f32 %v510_v32, %v356_v7 }
 0x172   : > { %v372_v10 = vmax.f32 %v371_v8, 0.0  ;;  %v358_v11 = vmax.f32 %v357_v9, 0.0 }
 0x174   : > { %373 = vst.msk [vmem:[%s989_s8 + $0x38] sm:$0xff] %vm274_vm0, %v372_v10  ;;  %359 = vst.msk [vmem:[%s989_s8 + $0x30] sm:$0xff] %vm274_vm0, %v358_v11 }
 0x175   : > { %687 = shalt.err (!%p684_p8)
}
 0x176   : > { %s688_s30 = scalar_lea.hbm %s1008_s28, 1024  ;;  %s692_s9 = scalar_lea.hbm %s1062_s3, 2048 }
 0x177   : > { %p689_p10 = scmp.ne.s32.totalorder %s1008_s28, %s688_s30  ;;  %p693_p9 = scmp.lt.u32.totalorder %s1008_s28, %s1062_s3 }
 0x178   : > { %p694_p11 = scmp.lt.u32.totalorder %s692_s9, %s688_s30  ;;  %p696_p5 = scmp.lt.u32.totalorder %s688_s30, %s1008_s28 }
 0x179   : > { %p690_p2 = pnand %p689_p10, %p1083_p0 }
 0x17a   : > { %p695_p4 = por %p694_p11, %p693_p9 }
 0x17b   : > { %p691_p12 = pneg %p690_p2 }
 0x17c   : > { %p697_p6 = por %p696_p5, %p695_p4 }
 0x17e   : > { %p698_p13 = pnand %p697_p6, %p691_p12 }
 0x180   : > { %701 = shalt.err (!%p698_p13)
}
 0x181   : > { %s758_s23 = smov 128  }
 0x182   : > { %527 = dma.vmem_to_hbm [thread:$0]  (%p1083_p0), %s1010_s10, 1024, %s1008_s28, %s375_s16, %s758_s23, %s758_s23, %s755_s6  }
 0x183 PF: > { %s403_s8 = sand.u32 1, %s736_s12   ;;  %p1084_p7 = scmp.ne.s32.totalorder %s1072_s25, 0 }
 0x184   : > { %p1085_p3 = scmp.ge.s32.totalorder %s748_s15, 2  ;;  %s404_s7 = scalar_lea.sflag [#allocation4], %s403_s8 }
 0x186   : > { %p541_p1 = pnand %p1085_p3, %p1084_p7 }
 0x188   : > { %731 = dma.done.wait (!%p541_p1), %s404_s7, 1024  }
 0x189   : > { %733 = vsyncadd (!%p541_p1), %s404_s7, 4294966272  ;;  %p19_p8 = scmp.ge.s32.totalorder %s804_s18, 4   ;;  %s1086_s12 = smov %s740_s13 }
 0x18a   : > { %s1087_s13 = smov %s744_s14  ;;  %s1088_s14 = smov %s816_s21 }
 0x18b   : > { %s1089_s15 = smov %s804_s18  ;;  %21 = sbr.rel (!%p19_p8) target bundleno = 9 (0x9), region = 94 }
 0x192   :  { %409 = vsyncpa [#allocation3], 1 }
 0x193   :  { %411 = vsyncpa [#allocation3 + $0x1], 1 }
 0x194   :  { %412 = vsyncpa [#allocation6], 1 }
 0x195   :  { %414 = vsyncpa [#allocation6 + $0x1], 1 }
 0x196   :  { %415 = vsyncpa [#allocation4], 1 }
 0x197   :  { %417 = vsyncpa [#allocation4 + $0x1], 1 }

// kernel: residual_conv2d_forward.3
= control target key start
LH: loop header
LB: loop body
LE: loop exit
PB: predicated region body
PF: predicated region fallthrough
CT: control target
= control target key end

     0   :  { %9 = vsyncpa [#allocation3], 0  ;;  %s896_s0 = inlined_call_operand.hbm [shape: bf16[128,128], index: 0, kind: input, shape index: {}]   ;;  %s897_s1 = inlined_call_operand.hbm [shape: bf16[128,16], index: 1, kind: input, shape index: {}]   ;;  %s898_s2 = inlined_call_operand.hbm [shape: bf16[128,16], index: 2, kind: output, shape index: {0}]   ;;  %s899_s3 = inlined_call_operand.hbm [shape: f32[1,8,16], index: 3, kind: output, shape index: {1}]  }
   0x1   :  { %10 = vsyncpa [#allocation6], 0 }
   0x2   :  { %11 = vsyncpa [#allocation4], 0 }
   0x3   :  { %12 = vsyncpa [#allocation9], 0  ;;  %s708_s12 = smov [#allocation2]   ;;  %s612_s16 = scalar_lea.hbm %s896_s0, 1024 }
   0x4   :  { %s18_s13 = sshll.u32 %s708_s12, 4  ;;  %p613_p0 = scmp.ne.s32.totalorder %s896_s0, %s612_s16  ;;  %s19_s13 = int_to_ptr.vmem [resolvable:$true] %s18_s13 }
   0x5   :  { %p616_p1 = scmp.lt.u32.totalorder %s612_s16, %s896_s0 }
   0x7   :  { %p618_p2 = pnand %p616_p1, %p613_p0 }
   0x9   :  { %621 = shalt.err (!%p618_p2)
}
   0xa   :  { %s622_s21 = scalar_lea.vmem %s19_s13, 1024  ;;  %p627_p4 = scmp.lt.s32.totalorder %s19_s13, %s19_s13 }
   0xb   :  { %p623_p3 = scmp.ne.s32.totalorder %s19_s13, %s622_s21  ;;  %p628_p5 = scmp.lt.s32.totalorder %s622_s21, %s622_s21 }
   0xd   :  { %p629_p6 = por %p628_p5, %p627_p4 }
   0xf   :  { %p630_p7 = pnand %p629_p6, %p623_p3 }
  0x11   :  { %633 = shalt.err (!%p630_p7)
}
  0x12   :  { %s709_s22 = smov 64   ;;  %s710_s23 = smov 4  }
  0x13   :  { %24 = dma.hbm_to_vmem [thread:$0]  %s896_s0, 1024, %s19_s13, [#allocation3], %s709_s22, %s709_s22, %s710_s23  }
  0x14   :  { %s711_s26 = smov [#allocation5]   ;;  %s634_s30 = scalar_lea.hbm %s897_s1, 1024 }
  0x15   :  { %s30_s27 = sshll.u32 %s711_s26, 4  ;;  %p635_p8 = scmp.ne.s32.totalorder %s897_s1, %s634_s30  ;;  %s31_s27 = int_to_ptr.vmem [resolvable:$true] %s30_s27 }
  0x16   :  { %p638_p9 = scmp.lt.u32.totalorder %s634_s30, %s897_s1 }
  0x18   :  { %p640_p10 = pnand %p638_p9, %p635_p8 }
  0x1a   :  { %643 = shalt.err (!%p640_p10)
}
  0x1b   :  { %s644_s8 = scalar_lea.vmem %s31_s27, 1024  ;;  %p649_p12 = scmp.lt.s32.totalorder %s31_s27, %s31_s27 }
  0x1c   :  { %p645_p11 = scmp.ne.s32.totalorder %s31_s27, %s644_s8  ;;  %p650_p13 = scmp.lt.s32.totalorder %s644_s8, %s644_s8 }
  0x1e   :  { %p651_p0 = por %p650_p13, %p649_p12 }
  0x20   :  { %p652_p1 = pnand %p651_p0, %p645_p11 }
  0x22   :  { %655 = shalt.err (!%p652_p1)
}
  0x23   :  { %36 = dma.hbm_to_vmem [thread:$0]  %s897_s1, 1024, %s31_s27, [#allocation6], %s709_s22, %s709_s22, %s710_s23  }
  0x24   :  { %700 = dma.done.wait [#allocation3], 1024  }
  0x25   :  { %701 = vsyncadd [#allocation3], 4294966272 }
  0x26   :  { %702 = dma.done.wait [#allocation6], 1024  }
  0x27   :  { %703 = vsyncadd [#allocation6], 4294966272  ;;  %v596_v0 = vld [vmem:[#allocation5] sm:$0xff]   ;;  %v597_v1 = vld [vmem:[#allocation5 + $0x8] sm:$0xff]   ;;  %vm333_vm0 = vcmask 125952   ;;  %vm350_vm1 = vcmask 130048  }
  0x28   :  { %542 = vmatprep.subr.bf16.mxu0 %v596_v0  ;;  %574 = vmatprep.subr.bf16.mxu1 %v596_v0  ;;  %v598_v2 = vld [vmem:[#allocation5 + $0x10] sm:$0xff]   ;;  %v599_v3 = vld [vmem:[#allocation5 + $0x18] sm:$0xff]   ;;  %v604_v4 = vld [vmem:[#allocation2] sm:$0xff]   ;;  %s712_s1 = smov [#allocation7]  }
  0x29   :  { %543 = vmatpush3.bf16.msra.mxu0 %v596_v0  ;;  %582 = vmatpush3.bf16.msra.mxu1 %v596_v0  ;;  %v600_v5 = vld [vmem:[#allocation5 + $0x20] sm:$0xff]   ;;  %v601_v7 = vld [vmem:[#allocation5 + $0x28] sm:$0xff]   ;;  %v602_v8 = vld [vmem:[#allocation5 + $0x30] sm:$0xff]   ;;  %s451_s10 = sshll.u32 %s712_s1, 4  ;;  %s452_s10 = int_to_ptr.vmem [resolvable:$true] %s451_s10 }
  0x2a   :  { %544 = vmatprep.subr.bf16.mxu0 %v597_v1  ;;  %575 = vmatprep.subr.bf16.mxu1 %v597_v1  ;;  %v608_v6 = vld [vmem:[#allocation2 + $0x20] sm:$0xff]   ;;  %v603_v9 = vld [vmem:[#allocation5 + $0x38] sm:$0xff]   ;;  %v605_v10 = vld [vmem:[#allocation2 + $0x8] sm:$0xff]   ;;  %s656_s11 = scalar_lea.vmem %s452_s10, 1024  ;;  %p661_p3 = scmp.lt.s32.totalorder %s452_s10, %s452_s10 }
  0x2b   :  { %558 = vmatprep.mubr.bf16.mxu0 %v604_v4  ;;  %566 = vmatprep.mubr.bf16.mxu1 %v608_v6  ;;  %v609_v11 = vld [vmem:[#allocation2 + $0x28] sm:$0xff]   ;;  %v606_v12 = vld [vmem:[#allocation2 + $0x10] sm:$0xff]   ;;  %v607_v14 = vld [vmem:[#allocation2 + $0x18] sm:$0xff]   ;;  %p657_p2 = scmp.ne.s32.totalorder %s452_s10, %s656_s11  ;;  %p662_p4 = scmp.lt.s32.totalorder %s656_s11, %s656_s11 }
  0x2c   :  { %v610_v13 = vld [vmem:[#allocation2 + $0x30] sm:$0xff]   ;;  %v611_v15 = vld [vmem:[#allocation2 + $0x38] sm:$0xff]  }
  0x2d   :  { %545 = vmatpush3.bf16.msra.mxu0 %v597_v1  ;;  %583 = vmatpush3.bf16.msra.mxu1 %v597_v1  ;;  %p663_p5 = por %p662_p4, %p661_p3 }
  0x2e   :  { %546 = vmatprep.subr.bf16.mxu0 %v598_v2  ;;  %576 = vmatprep.subr.bf16.mxu1 %v598_v2 }
  0x2f   :  { %p664_p6 = pnand %p663_p5, %p657_p2 }
  0x31   :  { %547 = vmatpush3.bf16.msra.mxu0 %v598_v2  ;;  %584 = vmatpush3.bf16.msra.mxu1 %v598_v2 }
  0x32   :  { %548 = vmatprep.subr.bf16.mxu0 %v599_v3  ;;  %577 = vmatprep.subr.bf16.mxu1 %v599_v3 }
  0x35   :  { %549 = vmatpush3.bf16.msra.mxu0 %v599_v3  ;;  %585 = vmatpush3.bf16.msra.mxu1 %v599_v3 }
  0x36   :  { %550 = vmatprep.subr.bf16.mxu0 %v600_v5  ;;  %578 = vmatprep.subr.bf16.mxu1 %v600_v5 }
  0x39   :  { %551 = vmatpush3.bf16.msra.mxu0 %v600_v5  ;;  %586 = vmatpush3.bf16.msra.mxu1 %v600_v5 }
  0x3a   :  { %552 = vmatprep.subr.bf16.mxu0 %v601_v7  ;;  %579 = vmatprep.subr.bf16.mxu1 %v601_v7 }
  0x3d   :  { %553 = vmatpush3.bf16.msra.mxu0 %v601_v7  ;;  %587 = vmatpush3.bf16.msra.mxu1 %v601_v7 }
  0x3e   :  { %554 = vmatprep.subr.bf16.mxu0 %v602_v8  ;;  %580 = vmatprep.subr.bf16.mxu1 %v602_v8 }
  0x41   :  { %555 = vmatpush3.bf16.msra.mxu0 %v602_v8  ;;  %588 = vmatpush3.bf16.msra.mxu1 %v602_v8 }
  0x42   :  { %556 = vmatprep.subr.bf16.mxu0 %v603_v9  ;;  %581 = vmatprep.subr.bf16.mxu1 %v603_v9 }
  0x45   :  { %557 = vmatpush3.bf16.msra.mxu0 %v603_v9  ;;  %589 = vmatpush3.bf16.msra.mxu1 %v603_v9 }
  0x48   :  { %559 = vmatmul.mubr.bf16.vlgmr.msra.gmra.mrb[0].mxu0 %v605_v10  ;;  %567 = vmatmul.mubr.bf16.vlgmr.msra.gmra.mrb[0].mxu1 %v609_v11 }
  0x49   :  { %562 = vmatprep.mubr.bf16.mxu0 %v606_v12  ;;  %570 = vmatprep.mubr.bf16.mxu1 %v610_v13 }
  0x50   :  { %563 = vmatmul.mubr.bf16.gmra.mrb[4].mxu0 %v607_v14  ;;  %571 = vmatmul.mubr.bf16.gmra.mrb[4].mxu1 %v611_v15 }
 0x11b   :  { %v560_v16 = vpop.f32.mrb[0].mxu0  ;;  %v764_v17 = vpop.f32.mrb[0].mxu1 }
 0x11c   :  { %v512_v18 = vpack.c.bf16 %v560_v16, %v560_v16  ;;  %v206_v19 = vpop.f32.mrb[1].mxu0  ;;  %v520_v20 = vpack.c.bf16 %v764_v17, %v764_v17  ;;  %v768_v21 = vpop.f32.mrb[1].mxu1  ;;  %v390_v26 = vmul.f32 %v560_v16, %v560_v16  ;;  %v354_v37 = vsel %vm350_vm1, %v560_v16, 0.0 }
 0x11d   :  { %v510_v22 = vpack.c.bf16 %v206_v19, %v206_v19  ;;  %v388_v23 = vmul.f32 %v206_v19, %v206_v19  ;;  %v561_v24 = vpop.f32.mrb[2].mxu0  ;;  %v770_v25 = vpop.f32.mrb[2].mxu1  ;;  %v351_v30 = vsel %vm350_vm1, %v206_v19, 0.0  ;;  %v518_v36 = vpack.c.bf16 %v768_v21, %v768_v21 }
 0x11e   :  { %336 = vst.msk [vmem:[#allocation7 + $0x8] sm:$0xf] %vm333_vm0, %v512_v18  ;;  %v513_v27 = vpack.c.bf16 %v561_v24, %v561_v24  ;;  %v209_v28 = vpop.f32.mrb[3].mxu0  ;;  %344 = vst.msk [vmem:[#allocation7 + $0x28] sm:$0xf] %vm333_vm0, %v520_v20  ;;  %v774_v29 = vpop.f32.mrb[3].mxu1  ;;  %v391_v34 = vmul.f32 %v561_v24, %v561_v24  ;;  %v521_v40 = vpack.c.bf16 %v770_v25, %v770_v25 }
 0x11f   :  { %334 = vst.msk [vmem:[#allocation7] sm:$0xf] %vm333_vm0, %v510_v22  ;;  %v511_v31 = vpack.c.bf16 %v209_v28, %v209_v28  ;;  %v352_v32 = vsel %vm350_vm1, %v209_v28, 0.0  ;;  %v389_v33 = vmul.f32 %v209_v28, %v209_v28  ;;  %v404_v38 = vsel %vm350_vm1, %v388_v23, 0.0  ;;  %342 = vst.msk [vmem:[#allocation7 + $0x20] sm:$0xf] %vm333_vm0, %v518_v36 }
 0x120   :  { %337 = vst.msk [vmem:[#allocation7 + $0xc] sm:$0xf] %vm333_vm0, %v513_v27  ;;  %v353_v35 = vadd.f32 %v352_v32, %v351_v30  ;;  %v407_v43 = vsel %vm350_vm1, %v390_v26, 0.0  ;;  %345 = vst.msk [vmem:[#allocation7 + $0x2c] sm:$0xf] %vm333_vm0, %v521_v40  ;;  %v519_v45 = vpack.c.bf16 %v774_v29, %v774_v29  ;;  %v356_v47 = vsel %vm350_vm1, %v561_v24, 0.0 }
 0x121   :  { %335 = vst.msk [vmem:[#allocation7 + $0x4] sm:$0xf] %vm333_vm0, %v511_v31  ;;  %v405_v39 = vsel %vm350_vm1, %v389_v33, 0.0  ;;  %v409_v48 = vsel %vm350_vm1, %v391_v34, 0.0  ;;  %v396_v7 = vmul.f32 %v768_v21, %v768_v21  ;;  %v366_v18 = vsel %vm350_vm1, %v768_v21, 0.0 }
 0x122   :  { %v355_v41 = vadd.f32 %v354_v37, %v353_v35  ;;  %v406_v42 = vadd.f32 %v405_v39, %v404_v38  ;;  %343 = vst.msk [vmem:[#allocation7 + $0x24] sm:$0xf] %vm333_vm0, %v519_v45  ;;  %v397_v27 = vmul.f32 %v774_v29, %v774_v29  ;;  %v398_v30 = vmul.f32 %v764_v17, %v764_v17 }
 0x123   :  { %v564_v44 = vpop.f32.mrb[4].mxu0  ;;  %v793_v46 = vpop.f32.mrb[4].mxu1  ;;  %v419_v26 = vsel %vm350_vm1, %v396_v7, 0.0  ;;  %v368_v31 = vsel %vm350_vm1, %v774_v29, 0.0 }
 0x124   :  { %v408_v49 = vadd.f32 %v407_v43, %v406_v42  ;;  %v516_v50 = vpack.c.bf16 %v564_v44, %v564_v44  ;;  %v222_v51 = vpop.f32.mrb[5].mxu0  ;;  %v797_v52 = vpop.f32.mrb[5].mxu1  ;;  %v357_v54 = vadd.f32 %v356_v47, %v355_v41  ;;  %v394_v2 = vmul.f32 %v564_v44, %v564_v44 }
 0x125   :  { %v514_v53 = vpack.c.bf16 %v222_v51, %v222_v51  ;;  %v358_v55 = vsel %vm350_vm1, %v222_v51, 0.0  ;;  %v392_v56 = vmul.f32 %v222_v51, %v222_v51  ;;  %v565_v57 = vpop.f32.mrb[6].mxu0  ;;  %v801_v58 = vpop.f32.mrb[6].mxu1  ;;  %v524_v8 = vpack.c.bf16 %v793_v46, %v793_v46 }
 0x126   :  { %340 = vst.msk [vmem:[#allocation7 + $0x18] sm:$0xf] %vm333_vm0, %v516_v50  ;;  %v410_v59 = vadd.f32 %v409_v48, %v408_v49  ;;  %v517_v60 = vpack.c.bf16 %v565_v57, %v565_v57  ;;  %v225_v61 = vpop.f32.mrb[7].mxu0  ;;  %v804_v62 = vpop.f32.mrb[7].mxu1  ;;  %v359_v63 = vadd.f32 %v358_v55, %v357_v54  ;;  %v362_v9 = vsel %vm350_vm1, %v564_v44, 0.0 }
 0x127   :  { %338 = vst.msk [vmem:[#allocation7 + $0x10] sm:$0xf] %vm333_vm0, %v514_v53  ;;  %v411_v0 = vsel %vm350_vm1, %v392_v56, 0.0  ;;  %v515_v1 = vpack.c.bf16 %v225_v61, %v225_v61  ;;  %v360_v4 = vsel %vm350_vm1, %v225_v61, 0.0  ;;  %v393_v5 = vmul.f32 %v225_v61, %v225_v61  ;;  %348 = vst.msk [vmem:[#allocation7 + $0x38] sm:$0xf] %vm333_vm0, %v524_v8 }
 0x128   :  { %v412_v3 = vadd.f32 %v411_v0, %v410_v59  ;;  %341 = vst.msk [vmem:[#allocation7 + $0x1c] sm:$0xf] %vm333_vm0, %v517_v60  ;;  %v361_v6 = vadd.f32 %v360_v4, %v359_v63  ;;  %v395_v10 = vmul.f32 %v565_v57, %v565_v57  ;;  %v522_v12 = vpack.c.bf16 %v797_v52, %v797_v52 }
 0x129   :  { %339 = vst.msk [vmem:[#allocation7 + $0x14] sm:$0xf] %vm333_vm0, %v515_v1  ;;  %v413_v11 = vsel %vm350_vm1, %v393_v5, 0.0  ;;  %v415_v15 = vsel %vm350_vm1, %v394_v2, 0.0  ;;  %v364_v16 = vsel %vm350_vm1, %v565_v57, 0.0  ;;  %v525_v19 = vpack.c.bf16 %v801_v58, %v801_v58 }
 0x12a   :  { %v363_v13 = vadd.f32 %v362_v9, %v361_v6  ;;  %v414_v14 = vadd.f32 %v413_v11, %v412_v3  ;;  %346 = vst.msk [vmem:[#allocation7 + $0x30] sm:$0xf] %vm333_vm0, %v522_v12  ;;  %v523_v23 = vpack.c.bf16 %v804_v62, %v804_v62  ;;  %v417_v24 = vsel %vm350_vm1, %v395_v10, 0.0 }
 0x12b   :  { %349 = vst.msk [vmem:[#allocation7 + $0x3c] sm:$0xf] %vm333_vm0, %v525_v19 }
 0x12c   :  { %v416_v20 = vadd.f32 %v415_v15, %v414_v14  ;;  %v365_v22 = vadd.f32 %v364_v16, %v363_v13  ;;  %347 = vst.msk [vmem:[#allocation7 + $0x34] sm:$0xf] %vm333_vm0, %v523_v23 }
 0x12e   :  { %v367_v21 = vadd.f32 %v366_v18, %v365_v22  ;;  %v418_v28 = vadd.f32 %v417_v24, %v416_v20 }
 0x12f   :  { %667 = shalt.err (!%p664_p6)
}
 0x130   :  { %s668_s14 = scalar_lea.hbm %s898_s2, 1024 }
 0x131   :  { %p669_p7 = scmp.ne.s32.totalorder %s898_s2, %s668_s14  ;;  %p672_p8 = scmp.lt.u32.totalorder %s668_s14, %s898_s2 }
 0x133   :  { %p674_p9 = pnand %p672_p8, %p669_p7 }
 0x135   :  { %677 = shalt.err (!%p674_p9)
}
 0x136   :  { %457 = dma.vmem_to_hbm [thread:$0]  %s452_s10, 1024, %s898_s2, [#allocation4], %s709_s22, %s709_s22, %s710_s23   ;;  %v420_v29 = vadd.f32 %v419_v26, %v418_v28  ;;  %v369_v32 = vadd.f32 %v368_v31, %v367_v21  ;;  %v370_v33 = vsel %vm350_vm1, %v764_v17, 0.0  ;;  %v399_v34 = vmul.f32 %v770_v25, %v770_v25 }
 0x137   :  { %v421_v35 = vsel %vm350_vm1, %v397_v27, 0.0  ;;  %v400_v36 = vmul.f32 %v797_v52, %v797_v52  ;;  %v423_v39 = vsel %vm350_vm1, %v398_v30, 0.0  ;;  %v372_v40 = vsel %vm350_vm1, %v770_v25, 0.0  ;;  %s713_s2 = smov [#allocation8]  }
 0x138   :  { %v371_v37 = vadd.f32 %v370_v33, %v369_v32  ;;  %v422_v38 = vadd.f32 %v421_v35, %v420_v29  ;;  %v374_v41 = vsel %vm350_vm1, %v797_v52, 0.0  ;;  %v425_v43 = vsel %vm350_vm1, %v399_v34, 0.0  ;;  %s464_s21 = sshll.u32 %s713_s2, 4  ;;  %s465_s21 = int_to_ptr.vmem [resolvable:$true] %s464_s21 }
 0x139   :  { %v427_v44 = vsel %vm350_vm1, %v400_v36, 0.0  ;;  %v401_v45 = vmul.f32 %v804_v62, %v804_v62  ;;  %v402_v49 = vmul.f32 %v793_v46, %v793_v46  ;;  %v376_v25 = vsel %vm350_vm1, %v804_v62, 0.0  ;;  %s678_s22 = scalar_lea.vmem %s465_s21, 128  ;;  %p683_p11 = scmp.lt.s32.totalorder %s465_s21, %s465_s21 }
 0x13a   :  { %v424_v42 = vadd.f32 %v423_v39, %v422_v38  ;;  %v373_v17 = vadd.f32 %v372_v40, %v371_v37  ;;  %v378_v52 = vsel %vm350_vm1, %v793_v46, 0.0  ;;  %v403_v53 = vmul.f32 %v801_v58, %v801_v58  ;;  %p679_p10 = scmp.ne.s32.totalorder %s465_s21, %s678_s22  ;;  %p684_p12 = scmp.lt.s32.totalorder %s678_s22, %s678_s22 }
 0x13b   :  { %v429_v54 = vsel %vm350_vm1, %v401_v45, 0.0  ;;  %v431_v57 = vsel %vm350_vm1, %v402_v49, 0.0  ;;  %v380_v59 = vsel %vm350_vm1, %v801_v58, 0.0  ;;  %vm441_vm2 = vcmask 1040384  }
 0x13c   :  { %v375_v47 = vadd.f32 %v374_v41, %v373_v17  ;;  %v426_v48 = vadd.f32 %v425_v43, %v424_v42  ;;  %v433_v62 = vsel %vm350_vm1, %v403_v53, 0.0  ;;  %vm443_vm3 = vcmask 1041408   ;;  %p685_p13 = por %p684_p12, %p683_p11 }
 0x13e   :  { %v428_v50 = vadd.f32 %v427_v44, %v426_v48  ;;  %v377_v51 = vadd.f32 %v376_v25, %v375_v47  ;;  %p686_p0 = pnand %p685_p13, %p679_p10 }
 0x140   :  { %v379_v55 = vadd.f32 %v378_v52, %v377_v51  ;;  %v430_v56 = vadd.f32 %v429_v54, %v428_v50 }
 0x142   :  { %v381_v60 = vadd.f32 %v380_v59, %v379_v55  ;;  %v432_v61 = vadd.f32 %v431_v57, %v430_v56 }
 0x144   :  { %v382_v63 = vrot.slane %v381_v60, 4  ;;  %v434_v0 = vadd.f32 %v433_v62, %v432_v61 }
 0x146   :  { %v383_v1 = vadd.f32 %v382_v63, %v381_v60  ;;  %v435_v46 = vrot.slane %v434_v0, 4 }
 0x148   :  { %v384_v2 = vrot.slane %v383_v1, 2  ;;  %v436_v3 = vadd.f32 %v435_v46, %v434_v0 }
 0x14a   :  { %v385_v4 = vadd.f32 %v384_v2, %v383_v1  ;;  %v437_v5 = vrot.slane %v436_v3, 2 }
 0x14c   :  { %v386_v6 = vrot.slane %v385_v4, 1  ;;  %v438_v7 = vadd.f32 %v437_v5, %v436_v3 }
 0x14e   :  { %v439_v8 = vrot.slane %v438_v7, 1  ;;  %v387_v9 = vadd.f32 %v386_v6, %v385_v4 }
 0x150   :  { %v440_v58 = vadd.f32 %v439_v8, %v438_v7 }
 0x152   :  { %v442_v10 = vsel %vm441_vm2, %v387_v9, %v440_v58 }
 0x153   :  { %v444_v11 = vsel %vm443_vm3, %v442_v10, 0.0 }
 0x154   :  { %445 = vst.msk [vmem:[#allocation8] sm:$0xff] %vm350_vm1, %v444_v11 }
 0x155   :  { %689 = shalt.err (!%p686_p0)
}
 0x156   :  { %s690_s25 = scalar_lea.hbm %s899_s3, 128 }
 0x157   :  { %p691_p1 = scmp.ne.s32.totalorder %s899_s3, %s690_s25  ;;  %p694_p2 = scmp.lt.u32.totalorder %s690_s25, %s899_s3 }
 0x159   :  { %p696_p3 = pnand %p694_p2, %p691_p1 }
 0x15b   :  { %699 = shalt.err (!%p696_p3)
}
 0x15c   :  { %467 = dma.vmem_to_hbm [thread:$0]  %s465_s21, 128, %s899_s3, [#allocation9]  }
 0x15d   :  { %704 = dma.done.wait [#allocation4], 1024  }
 0x15e   :  { %705 = vsyncadd [#allocation4], 4294966272 }
 0x15f   :  { %706 = dma.done.wait [#allocation9], 128  }
 0x160   :  { %707 = vsyncadd [#allocation9], 4294967168 }
 0x161   :  { %474 = vsyncpa [#allocation3], 1 }
 0x162   :  { %475 = vsyncpa [#allocation6], 1 }
 0x163   :  { %476 = vsyncpa [#allocation4], 1 }
 0x164   :  { %477 = vsyncpa [#allocation9], 1 }

// kernel: residual_conv2d_forward.4
= control target key start
LH: loop header
LB: loop body
LE: loop exit
PB: predicated region body
PF: predicated region fallthrough
CT: control target
= control target key end

     0   :  { %s4567_s0 = inlined_call_operand.hbm [shape: bf16[128,16], index: 0, kind: input, shape index: {}]   ;;  %s4568_s1 = inlined_call_operand.hbm [shape: f32[8,8], index: 1, kind: input, shape index: {}]   ;;  %s4569_s2 = inlined_call_operand.hbm [shape: bf16[9,16,8], index: 2, kind: input, shape index: {}]   ;;  %s4570_s3 = inlined_call_operand.hbm [shape: bf16[2,128,8], index: 3, kind: output, shape index: {0}]   ;;  %s4571_s4 = inlined_call_operand.hbm [shape: f32[2,8,8], index: 4, kind: output, shape index: {1}]  }
   0x1   :  { %4577 = sst [smem:[#allocation16_spill]] %s4568_s1 }
   0x2   :  { %10 = vsyncpa [#allocation4], 0 }
   0x3   :  { %12 = vsyncpa [#allocation4 + $0x1], 0 }
   0x4   :  { %13 = vsyncpa [#allocation7], 0 }
   0x5   :  { %14 = vsyncpa [#allocation5], 0 }
   0x6   :  { %16 = vsyncpa [#allocation5 + $0x1], 0 }
   0x7   :  { %17 = vsyncpa [#allocation11], 0 }
   0x8   :  { %19 = vsyncpa [#allocation11 + $0x1], 0  ;;  %s3864_s15 = smov 0   ;;  %s3866_s16 = smov 0  }
   0x9   :  { %s3868_s17 = smov 0   ;;  %s3870_s18 = smov 0  }
   0xa LB: > { %s3885_s19 = sadd.s32 4294967295, %s3827_s18   ;;  %s2923_s20 = sadd.s32 4294967294, %s3827_s18   ;;  %s3827_s18 = sphi %s3870_s18, %s4602_s18   ;;  %s3823_s17 = sphi %s3868_s17, %s4601_s17   ;;  %s3819_s16 = sphi %s3866_s16, %s4600_s16   ;;  %s3815_s15 = sphi %s3864_s15, %s4599_s15  }
   0xb   : > { %s3889_s21 = sadd.s32 1, %s3827_s18   ;;  %s32_s22 = sadd.s32 1, %s3823_s17 }
   0xc   : > { %s29_s23 = ssub.s32 %s3827_s18, %s3889_s21  ;;  %p39_p0 = scmp.ne.s32.totalorder %s3823_s17, %s3819_s16 }
   0xd   : > { %p30_p1 = scmp.eq.s32.totalorder %s29_s23, 0  ;;  %p40_p2 = scmp.eq.s32.totalorder %s3827_s18, 0 }
   0xe   : > { %p45_p3 = scmp.ne.s32.totalorder %s3819_s16, %s3815_s15  ;;  %p4572_p4 = scmp.eq.s32.totalorder %s3885_s19, 0 }
   0xf   : > { %s3901_s24 = scalar_select %p30_p1, %s3823_s17, %s32_s22  }
  0x10   : > { %p3903_p5 = por %p40_p2, %p39_p0  ;;  %p3909_p6 = por %p4572_p4, %p45_p3 }
  0x11   : > { %p111_p7 = scmp.eq.s32.totalorder %s3885_s19, 1  ;;  %p117_p8 = scmp.eq.s32.totalorder %s2923_s20, 1 }
  0x12   : > { %s4579_s26 = scalar_select %p3909_p6, 1, 0 }
  0x13   : > { %p2924_p9 = scmp.ge.s32.totalorder %s3827_s18, 1  ;;  %p150_p10 = scmp.lt.s32.totalorder %s3827_s18, 3 }
  0x14   : > { %p3916_p11 = por %p111_p7, %p39_p0  ;;  %p3920_p12 = por %p117_p8, %p45_p3 }
  0x15   : > { %p3924_p13 = pnand %p2924_p9, %p150_p10  ;;  %s3829_s30 = smov [#allocation6]  }
  0x16   : > { %s4580_s27 = scalar_select %p3916_p11, 1, 0 }
  0x17   : > { %s4581_s28 = scalar_select %p3920_p12, 1, 0 }
  0x18   : > { %s4582_s29 = scalar_select %p3924_p13, 1, 0 }
  0x19   : > { %p3521_p2 = pneg %p3924_p13  ;;  %s163_s5 = sshll.u32 %s3829_s30, 4  ;;  %s164_s5 = int_to_ptr.vmem [resolvable:$true] %s163_s5 }
  0x1a   : > { %p3541_p4 = scmp.lt.s32.totalorder %s3827_s18, 2  ;;  %p4583_p0 = scmp.eq.s32.totalorder %s3885_s19, 0 }
  0x1b   : > { %s3830_s8 = smov [#allocation8]   ;;  %s4586_s1 = sld [smem:[#allocation16_spill]] }
  0x1c   : > { %p3934_p7 = pnand %p3521_p2, %p4583_p0  ;;  %p3940_p3 = pnand %p3541_p4, %p3903_p5 }
  0x1d   : > { %s173_s9 = sshll.u32 %s3830_s8, 4  ;;  %s3944_s9 = int_to_ptr.vmem [resolvable:$true] %s173_s9 }
  0x1e   : > { %s4585_s7 = scalar_select %p3940_p3, 1, 0 }
  0x1f   : > { %p3641_p9 = pneg %p3934_p7 }
  0x21   : > { %s3639_s12 = scalar_lea.hbm %s4586_s1, 128 }
  0x22   : > { %p3640_p8 = scmp.ne.s32.totalorder %s4586_s1, %s3639_s12  ;;  %p3646_p10 = scmp.lt.u32.totalorder %s3639_s12, %s4586_s1 }
  0x24   : > { %p3642_p4 = pnand %p3641_p9, %p3640_p8 }
  0x26   : > { %p3643_p5 = pneg %p3642_p4 }
  0x28   : > { %p3648_p2 = pnand %p3646_p10, %p3643_p5 }
  0x2a   : > { %3651 = shalt.err (!%p3648_p2)
}
  0x2b   : > { %s3652_s23 = scalar_lea.vmem %s164_s5, 128  ;;  %p3660_p11 = scmp.lt.s32.totalorder %s164_s5, %s164_s5 }
  0x2c   : > { %p3653_p0 = scmp.ne.s32.totalorder %s164_s5, %s3652_s23  ;;  %p3661_p6 = scmp.lt.s32.totalorder %s3652_s23, %s3652_s23 }
  0x2e   : > { %p3655_p1 = pnand %p3653_p0, %p3641_p9  ;;  %p3662_p13 = por %p3661_p6, %p3660_p11 }
  0x30   : > { %p3656_p12 = pneg %p3655_p1 }
  0x32   : > { %p3663_p3 = pnand %p3662_p13, %p3656_p12 }
  0x34   : > { %3666 = shalt.err (!%p3663_p3)
}
  0x35   : > { %3524 = dma.hbm_to_vmem [thread:$0]  (!%p3934_p7), %s4586_s1, 128, %s164_s5, [#allocation7]  }
  0x36   : > { %s187_s8 = sand.u32 1, %s3823_s17   ;;  %s3667_s12 = scalar_lea.hbm %s4569_s2, 1152 }
  0x37   : > { %p3668_p1 = scmp.ne.s32.totalorder %s4569_s2, %s3667_s12  ;;  %p3674_p12 = scmp.lt.u32.totalorder %s3667_s12, %s4569_s2 }
  0x39   : > { %p3670_p6 = pnand %p3668_p1, %p3641_p9 }
  0x3b   : > { %p3671_p11 = pneg %p3670_p6 }
  0x3d   : > { %p3676_p13 = pnand %p3674_p12, %p3671_p11 }
  0x3f   : > { %3679 = shalt.err (!%p3676_p13)
}
  0x40   : > { %s3680_s5 = scalar_lea.vmem %s3944_s9, 1152  ;;  %p3688_p5 = scmp.lt.s32.totalorder %s3944_s9, %s3944_s9 }
  0x41   : > { %p3681_p3 = scmp.ne.s32.totalorder %s3944_s9, %s3680_s5  ;;  %p3689_p10 = scmp.lt.s32.totalorder %s3680_s5, %s3680_s5 }
  0x43   : > { %p3683_p8 = pnand %p3681_p3, %p3641_p9  ;;  %p3690_p2 = por %p3689_p10, %p3688_p5 }
  0x45   : > { %p3684_p4 = pneg %p3683_p8 }
  0x47   : > { %p3691_p0 = pnand %p3690_p2, %p3684_p4 }
  0x49   : > { %3694 = shalt.err (!%p3691_p0)
}
  0x4a   : > { %s3831_s23 = smov 64   ;;  %s3832_s25 = smov 4  }
  0x4b   : > { %3527 = dma.hbm_to_vmem [thread:$0]  (!%p3934_p7), %s4569_s2, 1152, %s3944_s9, [#allocation7], %s3831_s23, %s3831_s23, %s3832_s25  }
  0x4c   : > { %s2928_s11 = sshll.u32 %s187_s8, 5  ;;  %s3097_s12 = sshll.u32 %s3827_s18, 9 }
  0x4d   : > { %s4001_s20 = scalar_lea.hbm %s4567_s0, %s3097_s12  ;;  %s191_s22 = scalar_lea.vmem [#allocation3], %s2928_s11 }
  0x4e   : > { %s198_s6 = sshll.u32 %s191_s22, 4  ;;  %s4005_s5 = scalar_lea.sflag [#allocation4], %s187_s8  ;;  %s4003_s6 = int_to_ptr.vmem [resolvable:$true] %s198_s6 }
  0x4f   : > { %s3695_s1 = scalar_lea.hbm %s4001_s20, 512  ;;  %p4587_p7 = scmp.ne.s32.totalorder %s4585_s7, 0 }
  0x50   : > { %p3696_p9 = scmp.ne.s32.totalorder %s4001_s20, %s3695_s1  ;;  %s3700_s10 = scalar_lea.hbm %s4567_s0, 1024 }
  0x51   : > { %p3697_p1 = pneg %p4587_p7  ;;  %p3701_p12 = scmp.lt.u32.totalorder %s4001_s20, %s4567_s0 }
  0x52   : > { %p3702_p13 = scmp.lt.u32.totalorder %s3700_s10, %s3695_s1  ;;  %p3704_p8 = scmp.lt.u32.totalorder %s3695_s1, %s4001_s20 }
  0x53   : > { %p3698_p6 = pnand %p3697_p1, %p3696_p9 }
  0x54   : > { %p3703_p3 = por %p3702_p13, %p3701_p12 }
  0x55   : > { %p3699_p11 = pneg %p3698_p6 }
  0x56   : > { %p3705_p4 = por %p3704_p8, %p3703_p3 }
  0x58   : > { %p3706_p5 = pnand %p3705_p4, %p3699_p11 }
  0x5a   : > { %3709 = shalt.err (!%p3706_p5)
}
  0x5b   : > { %s3710_s8 = scalar_lea.vmem %s4003_s6, 512  ;;  %s3833_s11 = smov [#allocation3]  }
  0x5c   : > { %p3711_p10 = scmp.ne.s32.totalorder %s4003_s6, %s3710_s8  ;;  %s3715_s14 = sshll.u32 %s3833_s11, 4  ;;  %s3716_s14 = int_to_ptr.vmem [resolvable:$false] %s3715_s14 }
  0x5d   : > { %s3717_s22 = scalar_lea.vmem %s3716_s14, 1024  ;;  %p3718_p9 = scmp.lt.s32.totalorder %s4003_s6, %s3716_s14 }
  0x5e   : > { %p3713_p2 = pnand %p3711_p10, %p3697_p1  ;;  %p3719_p6 = scmp.lt.s32.totalorder %s3717_s22, %s3710_s8 }
  0x60   : > { %p3714_p0 = pneg %p3713_p2  ;;  %p3720_p12 = por %p3719_p6, %p3718_p9 }
  0x62   : > { %p3721_p13 = pnand %p3720_p12, %p3714_p0 }
  0x64   : > { %3724 = shalt.err (!%p3721_p13)
}
  0x65   : > { %3531 = dma.hbm_to_vmem [thread:$0]  (!%p4587_p7), %s4001_s20, 512, %s4003_s6, %s4005_s5, %s3831_s23, %s3831_s23, %s3832_s25  }
  0x66   : > { %p4588_p1 = scmp.ne.s32.totalorder %s4582_s29, 0 }
  0x67   : > { %s4039_s1 = sand.u32 (!%p4588_p1), 1, %s3819_s16   ;;  %p4589_p11 = scmp.ne.s32.totalorder (!%p4588_p1), %s4579_s26, 0 }
  0x68   : > { %210 = sbr.rel (%p4588_p1) target bundleno = 555 (0x22b), region = 32  ;;  %s2932_s9 = sshll.u32 (!%p4588_p1), %s4039_s1, 5 }
  0x69   : > { %s213_s30 = scalar_lea.sflag (!%p4588_p1), [#allocation4], %s4039_s1  ;;  %s4043_s10 = scalar_lea.vmem (!%p4588_p1), [#allocation3], %s2932_s9 }
  0x6f   : > { %3798 = dma.done.wait (%p4589_p11), %s213_s30, 512  }
  0x70   : > { %3800 = vsyncadd (%p4589_p11), %s213_s30, 4294966784  ;;  %p4590_p7 = scmp.eq.s32.totalorder %s3885_s19, 0 }
  0x72   : > { %3802 = dma.done.wait (%p4590_p7), [#allocation7], 1280   ;;  %p4591_p3 = pmov %p4590_p7 }
  0x73   : > { %vm256_vm0 = vcmask 125952   ;;  %vm277_vm1 = vcmask 122880   ;;  %v3834_v0 = vmov 0   ;;  %v3584_v1 = vld [vmem:[#allocation8 + $0x8] sm:$0xff]   ;;  %v4074_v2 = vld [vmem:[#allocation8 + $0x20] sm:$0xff]   ;;  %v3116_v4 = vld [vmem:[%s4043_s10] sm:$0xff]  }
  0x74   : > { %3804 = vsyncadd (%p4591_p3), [#allocation7], 4294966016  ;;  %257 = vst.msk [vmem:[#allocation2] sm:$0xf] %vm256_vm0, %v3834_v0  ;;  %3215 = vmatprep.subr.bf16.mxu1 %v3584_v1  ;;  %v2937_v3 = vld [vmem:[#allocation6] ss:$0 sm:$0xff]  ;;  %3287 = vmatprep.subr.bf16.mxu0 %v4074_v2  ;;  %v3117_v5 = vunpack.c.l.bf16 %v3116_v4  ;;  %v3118_v6 = vunpack.c.h.bf16 %v3116_v4 }
  0x75   : > { %258 = vst.msk [vmem:[#allocation2 + $0x4] sm:$0xf] %vm256_vm0, %v3834_v0  ;;  %259 = vst.msk [vmem:[#allocation2 + $0x8] sm:$0xf] %vm256_vm0, %v3834_v0  ;;  %3216 = vmatpush3.bf16.msra.mxu1 %v3584_v1  ;;  %3288 = vmatpush3.bf16.msra.mxu0 %v4074_v2  ;;  %v2938_v7 = vld [vmem:[#allocation6 + $0x1] ss:$0 sm:$0xff] }
  0x76   : > { %260 = vst.msk [vmem:[#allocation2 + $0xc] sm:$0xf] %vm256_vm0, %v3834_v0  ;;  %261 = vst.msk [vmem:[#allocation2 + $0x10] sm:$0xf] %vm256_vm0, %v3834_v0  ;;  %v301_v8 = vmul.f32 %v3117_v5, %v2937_v3  ;;  %v302_v9 = vmul.f32 %v3118_v6, %v2937_v3  ;;  %v4079_v10 = vld [vmem:[#allocation8] sm:$0xff]   ;;  %v4081_v11 = vld [vmem:[#allocation8 + $0x28] sm:$0xff]  }
  0x77   : > { %262 = vst.msk [vmem:[#allocation2 + $0x14] sm:$0xf] %vm256_vm0, %v3834_v0  ;;  %263 = vst.msk [vmem:[#allocation2 + $0x18] sm:$0xf] %vm256_vm0, %v3834_v0  ;;  %vm333_vm2 = vcmask 64512   ;;  %3233 = vmatprep.subr.bf16.mxu1 %v4079_v10  ;;  %v3131_v14 = vld [vmem:[%s4043_s10 + $0x8] sm:$0xff]   ;;  %3305 = vmatprep.subr.bf16.mxu0 %v4081_v11 }
  0x78   : > { %264 = vst.msk [vmem:[#allocation2 + $0x1c] sm:$0xf] %vm256_vm0, %v3834_v0  ;;  %265 = vst.msk [vmem:[#allocation2 + $0x20] sm:$0xf] %vm256_vm0, %v3834_v0  ;;  %v313_v12 = vadd.f32 %v2938_v7, %v301_v8  ;;  %v314_v13 = vadd.f32 %v2938_v7, %v302_v9  ;;  %v3132_v15 = vld [vmem:[%s4043_s10 + $0x10] sm:$0xff]   ;;  %v3121_v16 = vunpack.c.l.bf16 %v3131_v14  ;;  %v3122_v17 = vunpack.c.h.bf16 %v3131_v14  ;;  %v3133_v29 = vld [vmem:[%s4043_s10 + $0x18] sm:$0xff]  }
  0x79   : > { %266 = vst.msk [vmem:[#allocation2 + $0x24] sm:$0xf] %vm256_vm0, %v3834_v0  ;;  %267 = vst.msk [vmem:[#allocation2 + $0x28] sm:$0xf] %vm256_vm0, %v3834_v0  ;;  %v3125_v18 = vunpack.c.l.bf16 %v3132_v15  ;;  %v3126_v19 = vunpack.c.h.bf16 %v3132_v15  ;;  %vm357_vm3 = vsmask.f32 7938  ;;  %v3129_v36 = vunpack.c.l.bf16 %v3133_v29 }
  0x7a   : > { %268 = vst.msk [vmem:[#allocation2 + $0x2c] sm:$0xf] %vm256_vm0, %v3834_v0  ;;  %269 = vst.msk [vmem:[#allocation2 + $0x30] sm:$0xf] %vm256_vm0, %v3834_v0  ;;  %v321_v20 = vmax.f32 %v313_v12, 0.0  ;;  %v322_v21 = vmax.f32 %v314_v13, 0.0  ;;  %v303_v24 = vmul.f32 %v3121_v16, %v2937_v3  ;;  %v304_v25 = vmul.f32 %v3122_v17, %v2937_v3 }
  0x7b   : > { %270 = vst.msk [vmem:[#allocation2 + $0x34] sm:$0xf] %vm256_vm0, %v3834_v0  ;;  %271 = vst.msk [vmem:[#allocation2 + $0x38] sm:$0xf] %vm256_vm0, %v3834_v0  ;;  %vm363_vm4 = vsmask.f32 256  ;;  %v305_v26 = vmul.f32 %v3125_v18, %v2937_v3  ;;  %v306_v27 = vmul.f32 %v3126_v19, %v2937_v3  ;;  %v3130_v37 = vunpack.c.h.bf16 %v3133_v29 }
  0x7c   : > { %272 = vst.msk [vmem:[#allocation2 + $0x3c] sm:$0xf] %vm256_vm0, %v3834_v0  ;;  %273 = vst.msk [vmem:[#allocation2 + $0x40] sm:$0xf] %vm256_vm0, %v3834_v0  ;;  %v497_v22 = vld [vmem:[#allocation2] sm:$0xf]  ;;  %v329_v28 = vpack.c.bf16 %v322_v21, %v321_v20  ;;  %v315_v30 = vadd.f32 %v2938_v7, %v303_v24  ;;  %v316_v31 = vadd.f32 %v2938_v7, %v304_v25 }
  0x7d   : > { %274 = vst.msk [vmem:[#allocation2 + $0x44] sm:$0xf] %vm256_vm0, %v3834_v0  ;;  %275 = vst.msk [vmem:[#allocation2 + $0x48] sm:$0xf] %vm256_vm0, %v3834_v0  ;;  %v4087_v23 = vld [vmem:[#allocation2 + $0x4] sm:$0xf]  ;;  %v317_v32 = vadd.f32 %v2938_v7, %v305_v26  ;;  %v318_v33 = vadd.f32 %v2938_v7, %v306_v27  ;;  %v307_v44 = vmul.f32 %v3129_v36, %v2937_v3 }
  0x7e   : > { %276 = vst.msk [vmem:[#allocation2 + $0x4c] sm:$0xf] %vm256_vm0, %v3834_v0  ;;  %v336_v34 = vsel %vm333_vm2, %v329_v28, 0  ;;  %v4092_v35 = vcombine.low %v497_v22, %v4087_v23  ;;  %v323_v40 = vmax.f32 %v315_v30, 0.0  ;;  %v324_v41 = vmax.f32 %v316_v31, 0.0  ;;  %vm4096_vm5 = vmand %vm256_vm0, %vm357_vm3  ;;  %s2935_s26 = sshll.u32 %s4039_s1, 6 }
  0x7f   : > { %278 = vst.msk [vmem:[#allocation2 + $0x50] sm:$0x1] %vm277_vm1, %v3834_v0  ;;  %v2939_v38 = vcombine.low %v336_v34, %v336_v34  ;;  %v2940_v39 = vcombine.high %v336_v34, %v336_v34  ;;  %v325_v42 = vmax.f32 %v317_v32, 0.0  ;;  %v326_v43 = vmax.f32 %v318_v33, 0.0  ;;  %v359_v50 = vld [vmem:[#allocation2 + $0x8] sm:$0xf]  ;;  %vm4103_vm6 = vmand %vm277_vm1, %vm363_vm4 }
  0x80   : > { %v308_v45 = vmul.f32 %v3130_v37, %v2937_v3  ;;  %v365_v51 = vld [vmem:[#allocation2 + $0xc] sm:$0x1]  ;;  %v380_v52 = vld [vmem:[#allocation2 + $0x10] sm:$0xf]  ;;  %v383_v53 = vld [vmem:[#allocation2 + $0x14] sm:$0x1]  ;;  %v330_v54 = vpack.c.bf16 %v324_v41, %v323_v40  ;;  %v319_v56 = vadd.f32 %v2938_v7, %v307_v44 }
  0x81   : > { %v347_v46 = vshrl.u32 %v2939_v38, 16  ;;  %v350_v47 = vshll.u32 %v2939_v38, 16  ;;  %v371_v48 = vshrl.u32 %v2940_v39, 16  ;;  %v374_v49 = vshll.u32 %v2940_v39, 16  ;;  %v399_v22 = vld [vmem:[#allocation2 + $0x18] sm:$0xf] }
  0x82   : > { %v331_v55 = vpack.c.bf16 %v326_v43, %v325_v42  ;;  %v320_v57 = vadd.f32 %v2938_v7, %v308_v45  ;;  %v566_v60 = vshll.u32 %v4092_v35, 16  ;;  %v338_v63 = vsel %vm333_vm2, %v330_v54, 0  ;;  %v402_v24 = vld [vmem:[#allocation2 + $0x1c] sm:$0x1]  ;;  %v417_v25 = vld [vmem:[#allocation2 + $0x20] sm:$0xf] }
  0x83   : > { %v349_v58 = vrot.slane %v347_v46, 7  ;;  %v373_v61 = vrot.slane %v371_v48, 7  ;;  %v327_v1 = vmax.f32 %v319_v56, 0.0  ;;  %v2941_v8 = vcombine.low %v338_v63, %v338_v63  ;;  %v420_v34 = vld [vmem:[#allocation2 + $0x24] sm:$0x1]  ;;  %s4436_s29 = scalar_lea.vmem [#allocation9], %s2935_s26 }
  0x84   : > { %v340_v0 = vsel %vm333_vm2, %v331_v55, 0  ;;  %v328_v3 = vmax.f32 %v320_v57, 0.0  ;;  %v2942_v9 = vcombine.high %v338_v63, %v338_v63  ;;  %vm562_vm7 = vsmask.f32 7424  ;;  %v436_v37 = vld [vmem:[#allocation2 + $0x28] sm:$0xf] }
  0x85   : > { %v352_v4 = vor.u32 %v350_v47, %v349_v58  ;;  %v353_v5 = vrot.slane %v349_v58, 4  ;;  %v376_v6 = vor.u32 %v374_v49, %v373_v61  ;;  %v377_v7 = vrot.slane %v373_v61, 4  ;;  %v439_v38 = vld [vmem:[#allocation2 + $0x2c] sm:$0x1]  ;;  %v454_v45 = vld [vmem:[#allocation2 + $0x30] sm:$0xf] }
  0x86   : > { %v2943_v12 = vcombine.low %v340_v0, %v340_v0  ;;  %v2944_v13 = vcombine.high %v340_v0, %v340_v0  ;;  %v390_v18 = vshrl.u32 %v2941_v8, 16  ;;  %v393_v19 = vshll.u32 %v2941_v8, 16  ;;  %v457_v46 = vld [vmem:[#allocation2 + $0x34] sm:$0x1]  ;;  %s3114_s7 = sshll.u32 %s3885_s19, 10  ;;  %s2786_s23 = sshll.u32 %s4436_s29, 4  ;;  %s4482_s23 = int_to_ptr.vmem [resolvable:$true] %s2786_s23 }
  0x87   : > { %v360_v14 = vsel %vm4096_vm5, %v352_v4, %v359_v50  ;;  %v366_v15 = vsel %vm4103_vm6, %v353_v5, %v365_v51  ;;  %v381_v16 = vsel %vm4096_vm5, %v376_v6, %v380_v52  ;;  %v384_v17 = vsel %vm4103_vm6, %v377_v7, %v383_v53  ;;  %s4480_s6 = scalar_lea.hbm %s4570_s3, %s3114_s7  ;;  %s2768_s5 = scalar_lea.sflag [#allocation5], %s4039_s1 }
  0x88   : > { %361 = vst [vmem:[#allocation2 + $0x8] sm:$0xf] %v360_v14  ;;  %367 = vst [vmem:[#allocation2 + $0xc] sm:$0x1] %v366_v15  ;;  %v408_v20 = vshrl.u32 %v2942_v9, 16  ;;  %v411_v21 = vshll.u32 %v2942_v9, 16  ;;  %v332_v40 = vpack.c.bf16 %v328_v3, %v327_v1 }
  0x89   : > { %382 = vst [vmem:[#allocation2 + $0x10] sm:$0xf] %v381_v16  ;;  %385 = vst [vmem:[#allocation2 + $0x14] sm:$0x1] %v384_v17  ;;  %v427_v26 = vshrl.u32 %v2943_v12, 16  ;;  %v430_v27 = vshll.u32 %v2943_v12, 16 }
  0x8a   : > { %v445_v28 = vshrl.u32 %v2944_v13, 16  ;;  %v448_v29 = vshll.u32 %v2944_v13, 16  ;;  %v564_v30 = vshrl.u32 %v4092_v35, 16  ;;  %v568_v31 = vrot.slane %v566_v60, 1  ;;  %s3725_s12 = scalar_lea.vmem %s4482_s23, 1024  ;;  %p4596_p4 = scmp.ne.s32.totalorder %s4580_s27, 0 }
  0x8b   : > { %v392_v32 = vrot.slane %v390_v18, 7  ;;  %v410_v33 = vrot.slane %v408_v20, 7  ;;  %v429_v36 = vrot.slane %v427_v26, 7  ;;  %v342_v63 = vsel %vm333_vm2, %v332_v40, 0  ;;  %p3726_p8 = scmp.ne.s32.totalorder %s4482_s23, %s3725_s12  ;;  %s3835_s13 = smov [#allocation9]  }
  0x8c   : > { %v447_v39 = vrot.slane %v445_v28, 7  ;;  %v569_v0 = vor.u32 %v568_v31, %v564_v30  ;;  %v4141_v6 = vcombine.low %v342_v63, %v342_v63  ;;  %vm637_vm8 = vcmask 130048   ;;  %v4154_v28 = vld [vmem:[#allocation2] sm:$0xe]  ;;  %s3729_s8 = sshll.u32 %s3835_s13, 4  ;;  %s3730_s8 = int_to_ptr.vmem [resolvable:$false] %s3729_s8 }
  0x8d   : > { %v395_v41 = vor.u32 %v393_v19, %v392_v32  ;;  %v396_v42 = vrot.slane %v392_v32, 4  ;;  %v413_v43 = vor.u32 %v411_v21, %v410_v33  ;;  %v414_v44 = vrot.slane %v410_v33, 4  ;;  %p3727_p5 = pnand %p3726_p8, %p4596_p4  ;;  %s3731_s11 = scalar_lea.vmem %s3730_s8, 2048 }
  0x8e   : > { %v432_v47 = vor.u32 %v430_v27, %v429_v36  ;;  %v433_v48 = vrot.slane %v429_v36, 4  ;;  %v450_v49 = vor.u32 %v448_v29, %v447_v39  ;;  %v451_v50 = vrot.slane %v447_v39, 4  ;;  %p3732_p2 = scmp.lt.s32.totalorder %s4482_s23, %s3730_s8  ;;  %p3733_p0 = scmp.lt.s32.totalorder %s3731_s11, %s3725_s12 }
  0x8f   : > { %v400_v51 = vsel %vm4096_vm5, %v395_v41, %v399_v22  ;;  %v403_v52 = vsel %vm4103_vm6, %v396_v42, %v402_v24  ;;  %v418_v53 = vsel %vm4096_vm5, %v413_v43, %v417_v25  ;;  %v421_v54 = vsel %vm4103_vm6, %v414_v44, %v420_v34  ;;  %v4126_v55 = vld [vmem:[#allocation2 + $0x8] sm:$0xff]   ;;  %p3728_p10 = pneg %p3727_p5 }
  0x90   : > { %401 = vst [vmem:[#allocation2 + $0x18] sm:$0xf] %v400_v51  ;;  %404 = vst [vmem:[#allocation2 + $0x1c] sm:$0x1] %v403_v52  ;;  %v437_v56 = vsel %vm4096_vm5, %v432_v47, %v436_v37  ;;  %v440_v57 = vsel %vm4103_vm6, %v433_v48, %v439_v38  ;;  %v455_v58 = vsel %vm4096_vm5, %v450_v49, %v454_v45  ;;  %v4136_v61 = vld [vmem:[#allocation2 + $0x10] sm:$0xff]   ;;  %v571_v1 = vshll.u32 %v4126_v55, 16  ;;  %p3734_p9 = por %p3733_p0, %p3732_p2 }
  0x91   : > { %419 = vst [vmem:[#allocation2 + $0x20] sm:$0xf] %v418_v53  ;;  %422 = vst [vmem:[#allocation2 + $0x24] sm:$0x1] %v421_v54  ;;  %v458_v60 = vsel %vm4103_vm6, %v451_v50, %v457_v46  ;;  %v575_v3 = vshrl.u32 %v4126_v55, 16  ;;  %v579_v7 = vshll.u32 %v4136_v61, 16  ;;  %v2946_v49 = vcombine.high %v342_v63, %v342_v63 }
  0x92   : > { %438 = vst [vmem:[#allocation2 + $0x28] sm:$0xf] %v437_v56  ;;  %441 = vst [vmem:[#allocation2 + $0x2c] sm:$0x1] %v440_v57  ;;  %v1248_v4 = vld [vmem:[#allocation2 + $0x8] sm:$0xf]  ;;  %v2974_v50 = vcombine.low %v4154_v28, %v4087_v23  ;;  %p3735_p6 = pnand %p3734_p9, %p3728_p10 }
  0x93   : > { %456 = vst [vmem:[#allocation2 + $0x30] sm:$0xf] %v455_v58  ;;  %459 = vst [vmem:[#allocation2 + $0x34] sm:$0x1] %v458_v60  ;;  %v1249_v5 = vld [vmem:[#allocation2 + $0xc] sm:$0xf] }
  0x94   : > { %v3001_v8 = vcombine.low %v1248_v4, %v1249_v5  ;;  %v4144_v9 = vld [vmem:[#allocation2 + $0x10] sm:$0xff]   ;;  %v573_v12 = vrot.slane %v571_v1, 1  ;;  %v583_v13 = vshrl.u32 %v4136_v61, 16  ;;  %v1522_v14 = vld [vmem:[#allocation2 + $0x8] sm:$0xe]  ;;  %v464_v15 = vshrl.u32 %v4141_v6, 16 }
  0x95   : > { %v581_v16 = vrot.slane %v579_v7, 1  ;;  %v1319_v19 = vshll.u32 %v4144_v9, 16  ;;  %v1323_v22 = vshrl.u32 %v4144_v9, 16  ;;  %v3019_v24 = vcombine.low %v1522_v14, %v1249_v5  ;;  %v4151_v25 = vld [vmem:[#allocation8 + $0x10] sm:$0xff]  }
  0x96   : > { %v1312_v17 = vshrl.u32 %v3001_v8, 16  ;;  %v1314_v18 = vshll.u32 %v3001_v8, 16  ;;  %v574_v20 = vsel %vm562_vm7, %v569_v0, %v573_v12  ;;  %v577_v21 = vor.u32 %v575_v3, %v573_v12  ;;  %v4175_v45 = vld [vmem:[#allocation8 + $0x30] sm:$0xff]  }
  0x97   : > { %3217 = vmatprep.mubr.msk.bf16.mxu1 %vm637_vm8, %v574_v20  ;;  %v1321_v27 = vrot.slane %v1319_v19, 1  ;;  %v4157_v30 = vld [vmem:[#allocation2 + $0x18] sm:$0xff]   ;;  %v467_v31 = vshll.u32 %v4141_v6, 16  ;;  %v4163_v34 = vrot.slane %v3019_v24, 1  ;;  %v585_v38 = vor.u32 %v583_v13, %v581_v16 }
  0x98   : > { %v1316_v26 = vrot.slane %v1314_v18, 1  ;;  %v582_v29 = vsel %vm562_vm7, %v577_v21, %v581_v16  ;;  %v4161_v33 = vld [vmem:[#allocation2 + $0x18] sm:$0xff]   ;;  %v1327_v37 = vshll.u32 %v4157_v30, 16  ;;  %v4167_v39 = vld [vmem:[#allocation2 + $0x20] sm:$0xff]   ;;  %vm885_vm9 = vcmask 1046528  }
  0x99   : > { %3218 = vmatmul.mubr.msk.bf16.vlgmr.msra.gmra.mrb[0].mxu1 %vm637_vm8, %v582_v29  ;;  %v1325_v36 = vor.u32 %v1323_v22, %v1321_v27  ;;  %v587_v41 = vshll.u32 %v4161_v33, 16  ;;  %v591_v42 = vshrl.u32 %v4161_v33, 16  ;;  %v4172_v43 = vld [vmem:[#allocation2 + $0x20] sm:$0xff]   ;;  %v1331_v44 = vshrl.u32 %v4157_v30, 16  ;;  %v4180_v47 = vld [vmem:[#allocation2 + $0x28] sm:$0xff]  }
  0x9a   : > { %v1317_v32 = vor.u32 %v1316_v26, %v1312_v17  ;;  %3234 = vmatpush3.bf16.msra.mxu1 %v4079_v10  ;;  %v1329_v10 = vrot.slane %v1327_v37, 1  ;;  %v595_v46 = vshll.u32 %v4167_v39, 16  ;;  %v4182_v48 = vld [vmem:[#allocation2 + $0x28] sm:$0xff]   ;;  %v1335_v52 = vshll.u32 %v4172_v43, 16  ;;  %v4194_v3 = vld [vmem:[#allocation2 + $0x30] sm:$0xff]  }
  0x9b   : > { %3251 = vmatprep.subr.bf16.mxu1 %v4151_v25  ;;  %v589_v51 = vrot.slane %v587_v41, 1  ;;  %v1339_v53 = vshrl.u32 %v4172_v43, 16  ;;  %v599_v54 = vshrl.u32 %v4167_v39, 16  ;;  %v1343_v60 = vshll.u32 %v4180_v47, 16  ;;  %v473_v17 = vld [vmem:[#allocation2 + $0x38] sm:$0xf] }
  0x9c   : > { %v1322_v40 = vsel %vm562_vm7, %v1317_v32, %v1321_v27  ;;  %v1330_v56 = vsel %vm562_vm7, %v1325_v36, %v1329_v10  ;;  %v597_v57 = vrot.slane %v595_v46, 1  ;;  %v1333_v58 = vor.u32 %v1331_v44, %v1329_v10  ;;  %v476_v19 = vld [vmem:[#allocation2 + $0x3c] sm:$0x1]  ;;  %v491_v29 = vld [vmem:[#allocation2 + $0x40] sm:$0xf] }
  0x9d   : > { %3289 = vmatprep.mubr.msk.bf16.mxu0 %vm637_vm8, %v1322_v40  ;;  %v590_v63 = vsel %vm562_vm7, %v585_v38, %v589_v51  ;;  %v593_v0 = vor.u32 %v591_v42, %v589_v51  ;;  %v1337_v1 = vrot.slane %v1335_v52, 1  ;;  %v603_v23 = vshll.u32 %v4182_v48, 16 }
  0x9e   : > { %3290 = vmatmul.mubr.msk.bf16.vlgmr.msra.gmra.mrb[0].mxu0 %vm637_vm8, %v1330_v56  ;;  %3221 = vmatprep.mubr.msk.bf16.mxu1 %vm637_vm8, %v590_v63  ;;  %v4198_v4 = vrot.slane %v1343_v60, 1  ;;  %v601_v5 = vor.u32 %v599_v54, %v597_v57  ;;  %v607_v7 = vshrl.u32 %v4182_v48, 16  ;;  %v1530_v8 = vrot.slane %v4144_v9, 1  ;;  %v3605_v63 = vld [vmem:[#allocation2 + $0x30] sm:$0xff]  }
  0x9f   : > { %3306 = vmatpush3.bf16.msra.mxu0 %v4081_v11  ;;  %v598_v12 = vsel %vm562_vm7, %v593_v0, %v597_v57  ;;  %v1338_v13 = vsel %vm562_vm7, %v1333_v58, %v1337_v1  ;;  %v1341_v14 = vor.u32 %v1339_v53, %v1337_v1  ;;  %v605_v16 = vrot.slane %v603_v23, 1  ;;  %v4257_v0 = vld [vmem:[#allocation8 + $0x38] sm:$0xff]  }
  0xa0   : > { %3323 = vmatprep.subr.bf16.mxu0 %v4175_v45  ;;  %3293 = vmatprep.mubr.msk.bf16.mxu0 %vm637_vm8, %v1338_v13  ;;  %v611_v11 = vshll.u32 %v4194_v3, 16  ;;  %v466_v18 = vrot.slane %v464_v15, 7  ;;  %v482_v22 = vshrl.u32 %v2946_v49, 16  ;;  %v485_v28 = vshll.u32 %v2946_v49, 16  ;;  %v494_v15 = vld [vmem:[#allocation2 + $0x44] sm:$0x1] }
  0xa1   : > { %3222 = vmatmul.mubr.msk.bf16.gmra.mrb[4].mxu1 %vm637_vm8, %v598_v12  ;;  %v1346_v9 = vsel %vm562_vm7, %v1341_v14, %v4198_v4  ;;  %v606_v20 = vsel %vm562_vm7, %v601_v5, %v605_v16  ;;  %v609_v21 = vor.u32 %v607_v7, %v605_v16  ;;  %v1531_v32 = vsel %vm885_vm9, %v4163_v34, %v1530_v8 }
  0xa2   : > { %3225 = vmatprep.mubr.msk.bf16.mxu1 %vm637_vm8, %v606_v20  ;;  %v613_v24 = vrot.slane %v611_v11, 1  ;;  %v469_v26 = vor.u32 %v467_v31, %v466_v18  ;;  %v470_v27 = vrot.slane %v466_v18, 4  ;;  %v484_v6 = vrot.slane %v482_v22, 7 }
  0xa3   : > { %v886_v36 = vrot.slane %v2974_v50, 1  ;;  %v1532_v37 = vrot.slane %v4157_v30, 1  ;;  %v1534_v41 = vrot.slane %v4172_v43, 1  ;;  %v887_v30 = vrot.slane %v4126_v55, 1 }
  0xa4   : > { %v474_v38 = vsel %vm4096_vm5, %v469_v26, %v473_v17  ;;  %v477_v40 = vsel %vm4103_vm6, %v470_v27, %v476_v19  ;;  %v614_v31 = vsel %vm562_vm7, %v609_v21, %v613_v24  ;;  %v487_v34 = vor.u32 %v485_v28, %v484_v6 }
  0xa5   : > { %475 = vst [vmem:[#allocation2 + $0x38] sm:$0xf] %v474_v38  ;;  %478 = vst [vmem:[#allocation2 + $0x3c] sm:$0x1] %v477_v40  ;;  %v488_v42 = vrot.slane %v484_v6, 4  ;;  %v889_v44 = vrot.slane %v4136_v61, 1  ;;  %v4237_v52 = vsel %vm885_vm9, %v886_v36, %v887_v30  ;;  %v1533_v62 = vsel %vm885_vm9, %v1530_v8, %v1532_v37 }
  0xa6   : > { %3294 = vmatmul.mubr.msk.bf16.gmra.mrb[4].mxu0 %vm637_vm8, %v1346_v9  ;;  %v891_v10 = vrot.slane %v4161_v33, 1  ;;  %v492_v46 = vsel %vm4096_vm5, %v487_v34, %v491_v29  ;;  %v893_v43 = vrot.slane %v4167_v39, 1  ;;  %v895_v49 = vrot.slane %v4182_v48, 1  ;;  %v3614_v36 = vld [vmem:[#allocation8 + $0x18] sm:$0xff]  }
  0xa7   : > { %3307 = vmatprep.mubr.msk.bf16.mxu0 %vm637_vm8, %v1531_v32  ;;  %v897_v50 = vrot.slane %v4194_v3, 1  ;;  %493 = vst [vmem:[#allocation2 + $0x40] sm:$0xf] %v492_v46  ;;  %v495_v51 = vsel %vm4103_vm6, %v488_v42, %v494_v15  ;;  %v4240_v53 = vsel %vm885_vm9, %v887_v30, %v889_v44  ;;  %v615_v58 = vshrl.u32 %v4194_v3, 16 }
  0xa8   : > { %v4243_v59 = vsel %vm885_vm9, %v889_v44, %v891_v10  ;;  %496 = vst [vmem:[#allocation2 + $0x44] sm:$0x1] %v495_v51  ;;  %v4246_v54 = vsel %vm885_vm9, %v891_v10, %v893_v43  ;;  %v4249_v56 = vsel %vm885_vm9, %v893_v43, %v895_v49  ;;  %v1535_v60 = vsel %vm885_vm9, %v1532_v37, %v1534_v41  ;;  %v3608_v32 = vld [vmem:[#allocation2 + $0x48] ss:$0 sps:$4 sm:$0x11]   ;;  %v3609_v44 = vld [vmem:[#allocation2 + $0x10] sm:$0xff]  }
  0xa9   : > { %3226 = vmatmul.mubr.msk.bf16.gmra.mrb[8].mxu1 %vm637_vm8, %v614_v31  ;;  %v4252_v57 = vsel %vm885_vm9, %v895_v49, %v897_v50  ;;  %v1536_v23 = vrot.slane %v4180_v47, 1  ;;  %v617_v5 = vor.u32 %v615_v58, %v613_v24  ;;  %v1538_v13 = vrot.slane %v3605_v63, 1 }
  0xaa   : > { %v1544_v37 = vrot.slane %v3608_v32, 1  ;;  %v1347_v38 = vshrl.u32 %v4180_v47, 16  ;;  %v1351_v40 = vshll.u32 %v3605_v63, 16  ;;  %v1375_v49 = vshll.u32 %v3608_v32, 16 }
  0xab   : > { %v1537_v18 = vsel %vm885_vm9, %v1534_v41, %v1536_v23  ;;  %v1539_v9 = vsel %vm885_vm9, %v1536_v23, %v1538_v13  ;;  %v3621_v23 = vld [vmem:[#allocation8 + $0x40] sm:$0xff]   ;;  %vm2396_vm10 = vcmask 60416  }
  0xac   : > { %v4259_v1 = vld [vmem:[#allocation2 + $0x38] sm:$0xff]   ;;  %v1349_v31 = vor.u32 %v1347_v38, %v4198_v4  ;;  %v1353_v34 = vrot.slane %v1351_v40, 1  ;;  %v1377_v4 = vrot.slane %v1375_v49, 1  ;;  %v2165_v49 = vld [vmem:[#allocation2 + $0x10] sm:$0xe] }
  0xad   : > { %v619_v7 = vshll.u32 %v4259_v1, 16  ;;  %v623_v8 = vshrl.u32 %v4259_v1, 16  ;;  %v3606_v19 = vld [vmem:[#allocation2 + $0x38] sm:$0xff]   ;;  %v899_v21 = vrot.slane %v4259_v1, 1 }
  0xae   : > { %3308 = vmatmul.mubr.msk.bf16.vlgmr.msra.gmra.mrb[0].mxu0 %vm637_vm8, %v1533_v62  ;;  %v3603_v12 = vld [vmem:[#allocation2 + $0x40] ss:$0 sps:$4 sm:$0x11]   ;;  %v1540_v28 = vrot.slane %v3606_v19, 1  ;;  %v1359_v41 = vshll.u32 %v3606_v19, 16  ;;  %v4298_v10 = vsel %vm562_vm7, %v1349_v31, %v1353_v34 }
  0xaf   : > { %3324 = vmatpush3.bf16.msra.mxu0 %v4175_v45  ;;  %3311 = vmatprep.mubr.msk.bf16.mxu0 %vm637_vm8, %v1535_v60  ;;  %v621_v14 = vrot.slane %v619_v7, 1  ;;  %v627_v16 = vshll.u32 %v3603_v12, 16  ;;  %v3607_v20 = vld [vmem:[#allocation2 + $0x40] sm:$0xff]   ;;  %v901_v22 = vrot.slane %v3603_v12, 1  ;;  %v4276_v26 = vsel %vm885_vm9, %v897_v50, %v899_v21  ;;  %v3611_v60 = vld [vmem:[#allocation2 + $0x18] sm:$0xff]   ;;  %v3615_v7 = vld [vmem:[#allocation2 + $0x30] sm:$0xff]  }
  0xb0   : > { %3341 = vmatprep.subr.bf16.mxu0 %v4257_v0  ;;  %v1542_v29 = vrot.slane %v3607_v20, 1  ;;  %v1541_v6 = vsel %vm885_vm9, %v1538_v13, %v1540_v28  ;;  %v1361_v30 = vrot.slane %v1359_v41, 1  ;;  %v1367_v46 = vshll.u32 %v3607_v20, 16  ;;  %v3617_v12 = vld [vmem:[#allocation2 + $0x40] sm:$0xff]   ;;  %v4374_v41 = vld [vmem:[#allocation2 + $0x48] sm:$0xff]  }
  0xb1   : > { %v622_v17 = vsel %vm562_vm7, %v617_v5, %v621_v14  ;;  %v625_v11 = vor.u32 %v623_v8, %v621_v14  ;;  %v629_v45 = vrot.slane %v627_v16, 1  ;;  %v4279_v27 = vsel %vm885_vm9, %v899_v21, %v901_v22  ;;  %v3613_v5 = vld [vmem:[#allocation2 + $0x28] sm:$0xff]   ;;  %v4358_v22 = vld [vmem:[#allocation2 + $0x38] sm:$0xff]  }
  0xb2   : > { %3229 = vmatprep.mubr.msk.bf16.mxu1 %vm637_vm8, %v622_v17  ;;  %v1543_v15 = vsel %vm885_vm9, %v1540_v28, %v1542_v29  ;;  %v1545_v42 = vsel %vm885_vm9, %v1542_v29, %v1544_v37  ;;  %v1369_v50 = vrot.slane %v1367_v46, 1  ;;  %v3632_v46 = vld [vmem:[#allocation2 + $0x50] ss:$0 sps:$4 sm:$0x11]  }
  0xb3   : > { %v630_v24 = vsel %vm562_vm7, %v625_v11, %v629_v45  ;;  %v4342_v11 = vld [vmem:[#allocation2 + $0x28] sm:$0xff]  }
  0xb4   : > { %3230 = vmatmul.mubr.msk.bf16.gmra.mrb[12].mxu1 %vm637_vm8, %v630_v24 }
  0xb5   : > { %3235 = vmatprep.mubr.msk.bf16.mxu1 %vm637_vm8, %v4092_v35  ;;  %v1355_v35 = vshrl.u32 %v3605_v63, 16  ;;  %v3612_v63 = vld [vmem:[#allocation2 + $0x20] sm:$0xff]  }
  0xb6   : > { %3312 = vmatmul.mubr.msk.bf16.gmra.mrb[4].mxu0 %vm637_vm8, %v1537_v18  ;;  %v3618_v18 = vld [vmem:[#allocation2 + $0x48] sm:$0xff]  }
  0xb7   : > { %3315 = vmatprep.mubr.msk.bf16.mxu0 %vm637_vm8, %v1539_v9  ;;  %v1357_v47 = vor.u32 %v1355_v35, %v1353_v34 }
  0xbc   : > { %3236 = vmatmul.mubr.msk.bf16.vlgmr.msra.gmra.mrb[0].mxu1 %vm637_vm8, %v4126_v55  ;;  %v1363_v55 = vshrl.u32 %v3606_v19, 16 }
  0xbd   : > { %3252 = vmatpush3.bf16.msra.mxu1 %v4151_v25  ;;  %3239 = vmatprep.mubr.msk.bf16.mxu1 %vm637_vm8, %v4136_v61  ;;  %v1371_v25 = vshrl.u32 %v3607_v20, 16  ;;  %v4301_v61 = vsel %vm562_vm7, %v1357_v47, %v1361_v30  ;;  %v1978_v20 = vshll.u32 %v4342_v11, 16 }
  0xbe   : > { %3316 = vmatmul.mubr.msk.bf16.gmra.mrb[8].mxu0 %vm637_vm8, %v1541_v6  ;;  %3269 = vmatprep.subr.bf16.mxu1 %v3614_v36  ;;  %v1365_v43 = vor.u32 %v1363_v55, %v1361_v30  ;;  %v1982_v6 = vshrl.u32 %v4342_v11, 16  ;;  %v3625_v30 = vld [vmem:[#allocation2 + $0x8] sm:$0xff]  }
  0xbf   : > { %3319 = vmatprep.mubr.msk.bf16.mxu0 %vm637_vm8, %v1543_v15  ;;  %v1373_v62 = vor.u32 %v1371_v25, %v1369_v50  ;;  %v1980_v28 = vrot.slane %v1978_v20, 1  ;;  %v2185_v20 = vrot.slane %v4374_v41, 1 }
  0xc0   : > { %v4308_v51 = vsel %vm562_vm7, %v1365_v43, %v1369_v50  ;;  %v3626_v50 = vld [vmem:[#allocation2 + $0x10] sm:$0xff]  }
  0xc1   : > { %v4313_v58 = vsel %vm562_vm7, %v1373_v62, %v1377_v4  ;;  %v1984_v38 = vor.u32 %v1982_v6, %v1980_v28  ;;  %v2014_v62 = vshrl.u32 %v4374_v41, 16 }
  0xc4   : > { %3240 = vmatmul.mubr.msk.bf16.gmra.mrb[4].mxu1 %vm637_vm8, %v4161_v33  ;;  %v1891_v33 = vld [vmem:[#allocation2 + $0x10] sm:$0xf] }
  0xc5   : > { %3243 = vmatprep.mubr.msk.bf16.mxu1 %vm637_vm8, %v4167_v39  ;;  %v4322_v39 = vld [vmem:[#allocation2 + $0x14] sm:$0xf] }
  0xc6   : > { %3320 = vmatmul.mubr.msk.bf16.gmra.mrb[12].mxu0 %vm637_vm8, %v1545_v42  ;;  %v3046_v8 = vcombine.low %v1891_v33, %v4322_v39  ;;  %v1998_v42 = vshrl.u32 %v4358_v22, 16 }
  0xc7   : > { %3325 = vmatprep.mubr.msk.bf16.mxu0 %vm637_vm8, %v3609_v44  ;;  %v2010_v44 = vshll.u32 %v4374_v41, 16 }
  0xc8   : > { %v1955_v13 = vshrl.u32 %v3046_v8, 16 }
  0xc9   : > { %v2012_v43 = vrot.slane %v2010_v44, 1 }
  0xcb   : > { %v2016_v33 = vor.u32 %v2014_v62, %v2012_v43 }
  0xcc   : > { %3244 = vmatmul.mubr.msk.bf16.gmra.mrb[8].mxu1 %vm637_vm8, %v4182_v48  ;;  %v4331_v48 = vld [vmem:[#allocation2 + $0x18] sm:$0xff]  }
  0xcd   : > { %3247 = vmatprep.mubr.msk.bf16.mxu1 %vm637_vm8, %v4194_v3  ;;  %v1957_v3 = vshll.u32 %v3046_v8, 16  ;;  %v1962_v16 = vshll.u32 %v4331_v48, 16  ;;  %v1966_v19 = vshrl.u32 %v4331_v48, 16 }
  0xce   : > { %3326 = vmatmul.mubr.msk.bf16.vlgmr.msra.gmra.mrb[0].mxu0 %vm637_vm8, %v3611_v60  ;;  %v2018_v60 = vshll.u32 %v3632_v46, 16 }
  0xcf   : > { %3342 = vmatpush3.bf16.msra.mxu0 %v4257_v0  ;;  %3329 = vmatprep.mubr.msk.bf16.mxu0 %vm637_vm8, %v3612_v63  ;;  %v3616_v0 = vld [vmem:[#allocation2 + $0x38] sm:$0xff]   ;;  %v1959_v14 = vrot.slane %v1957_v3, 1  ;;  %v1964_v17 = vrot.slane %v1962_v16, 1  ;;  %v2173_v3 = vrot.slane %v4331_v48, 1  ;;  %v2177_v16 = vrot.slane %v4342_v11, 1 }
  0xd0   : > { %3359 = vmatprep.subr.bf16.mxu0 %v3621_v23  ;;  %v3629_v63 = vld [vmem:[#allocation2 + $0x18] sm:$0xff]  }
  0xd1   : > { %v1968_v21 = vor.u32 %v1966_v19, %v1964_v17 }
  0xd4   : > { %3248 = vmatmul.mubr.msk.bf16.gmra.mrb[12].mxu1 %vm637_vm8, %v4259_v1  ;;  %v4338_v1 = vld [vmem:[#allocation2 + $0x20] sm:$0xff]  }
  0xd5   : > { %3253 = vmatprep.mubr.msk.bf16.mxu1 %vm637_vm8, %v4237_v52  ;;  %v1960_v52 = vor.u32 %v1959_v14, %v1955_v13  ;;  %v1970_v45 = vshll.u32 %v4338_v1, 16  ;;  %v1974_v9 = vshrl.u32 %v4338_v1, 16  ;;  %v3633_v13 = vld [vmem:[#allocation2 + $0x28] sm:$0xff]   ;;  %v2175_v14 = vrot.slane %v4338_v1, 1 }
  0xd6   : > { %3330 = vmatmul.mubr.msk.bf16.gmra.mrb[4].mxu0 %vm637_vm8, %v3613_v5  ;;  %v2020_v5 = vrot.slane %v2018_v60, 1  ;;  %v2181_v1 = vrot.slane %v4358_v22, 1 }
  0xd7   : > { %3333 = vmatprep.mubr.msk.bf16.mxu0 %vm637_vm8, %v3615_v7  ;;  %v3638_v7 = vld [vmem:[#allocation8 + $0x20] sm:$0xff]   ;;  %v2176_v48 = vsel %vm885_vm9, %v2173_v3, %v2175_v14 }
  0xdc   : > { %3254 = vmatmul.mubr.msk.bf16.vlgmr.msra.gmra.mrb[0].mxu1 %vm637_vm8, %v4240_v53  ;;  %v1965_v53 = vsel %vm562_vm7, %v1960_v52, %v1964_v17  ;;  %v3634_v52 = vld [vmem:[#allocation2 + $0x30] sm:$0xff]   ;;  %v3636_v17 = vld [vmem:[#allocation2 + $0x38] sm:$0xff]  }
  0xdd   : > { %3270 = vmatpush3.bf16.msra.mxu1 %v3614_v36  ;;  %3257 = vmatprep.mubr.msk.bf16.mxu1 %vm637_vm8, %v4243_v59  ;;  %v4351_v59 = vld [vmem:[#allocation2 + $0x30] sm:$0xff]  }
  0xde   : > { %3334 = vmatmul.mubr.msk.bf16.gmra.mrb[8].mxu0 %vm637_vm8, %v3616_v0  ;;  %3377 = vmatprep.subr.bf16.mxu1 %v4074_v2  ;;  %v1972_v2 = vrot.slane %v1970_v45, 1  ;;  %v1986_v29 = vshll.u32 %v4351_v59, 16  ;;  %v1990_v15 = vshrl.u32 %v4351_v59, 16  ;;  %v3630_v0 = vld [vmem:[#allocation2 + $0x20] sm:$0xff]   ;;  %v2179_v19 = vrot.slane %v4351_v59, 1 }
  0xdf   : > { %3337 = vmatprep.mubr.msk.bf16.mxu0 %vm637_vm8, %v3617_v12  ;;  %v2021_v12 = vsel %vm562_vm7, %v2016_v33, %v2020_v5  ;;  %v3637_v45 = vld [vmem:[#allocation2 + $0x40] sm:$0xff]  }
  0xe0   : > { %v1976_v24 = vor.u32 %v1974_v9, %v1972_v2  ;;  %v1973_v32 = vsel %vm562_vm7, %v1968_v21, %v1972_v2  ;;  %v1988_v37 = vrot.slane %v1986_v29, 1  ;;  %v2180_v11 = vsel %vm885_vm9, %v2177_v16, %v2179_v19 }
  0xe1   : > { %v2187_v2 = vrot.slane %v3632_v46, 1 }
  0xe2   : > { %v1981_v36 = vsel %vm562_vm7, %v1976_v24, %v1980_v28  ;;  %v1992_v40 = vor.u32 %v1990_v15, %v1988_v37  ;;  %v1989_v34 = vsel %vm562_vm7, %v1984_v38, %v1988_v37 }
  0xe4   : > { %3258 = vmatmul.mubr.msk.bf16.gmra.mrb[4].mxu1 %vm637_vm8, %v4246_v54  ;;  %v1994_v54 = vshll.u32 %v4358_v22, 16 }
  0xe5   : > { %3261 = vmatprep.mubr.msk.bf16.mxu1 %vm637_vm8, %v4249_v56  ;;  %v4367_v56 = vld [vmem:[#allocation2 + $0x40] sm:$0xff]  }
  0xe6   : > { %3338 = vmatmul.mubr.msk.bf16.gmra.mrb[12].mxu0 %vm637_vm8, %v3618_v18  ;;  %v1996_v35 = vrot.slane %v1994_v54, 1  ;;  %v2002_v31 = vshll.u32 %v4367_v56, 16  ;;  %v2006_v55 = vshrl.u32 %v4367_v56, 16  ;;  %v2178_v18 = vsel %vm885_vm9, %v2175_v14, %v2177_v16 }
  0xe7   : > { %3343 = vmatprep.mubr.msk.bf16.mxu0 %vm637_vm8, %v1965_v53  ;;  %v2182_v53 = vsel %vm885_vm9, %v2179_v19, %v2181_v1  ;;  %v2183_v9 = vrot.slane %v4367_v56, 1 }
  0xe8   : > { %v2000_v47 = vor.u32 %v1998_v42, %v1996_v35 }
  0xe9   : > { %v2184_v59 = vsel %vm885_vm9, %v2181_v1, %v2183_v9  ;;  %v2186_v21 = vsel %vm885_vm9, %v2183_v9, %v2185_v20 }
  0xec   : > { %3262 = vmatmul.mubr.msk.bf16.gmra.mrb[8].mxu1 %vm637_vm8, %v4252_v57  ;;  %v1997_v57 = vsel %vm562_vm7, %v1992_v40, %v1996_v35 }
  0xed   : > { %3265 = vmatprep.mubr.msk.bf16.mxu1 %vm637_vm8, %v4276_v26  ;;  %v2004_v26 = vrot.slane %v2002_v31, 1 }
  0xee   : > { %3344 = vmatmul.mubr.msk.bf16.vlgmr.msra.gmra.mrb[0].mxu0 %vm637_vm8, %v1973_v32 }
  0xef   : > { %3360 = vmatpush3.bf16.msra.mxu0 %v3621_v23  ;;  %3347 = vmatprep.mubr.msk.bf16.mxu0 %vm637_vm8, %v1981_v36  ;;  %v2008_v25 = vor.u32 %v2006_v55, %v2004_v26  ;;  %v2005_v4 = vsel %vm562_vm7, %v2000_v47, %v2004_v26 }
  0xf1   : > { %v2013_v23 = vsel %vm562_vm7, %v2008_v25, %v2012_v43 }
  0xf4   : > { %3266 = vmatmul.mubr.msk.bf16.gmra.mrb[12].mxu1 %vm637_vm8, %v4279_v27  ;;  %v3064_v27 = vcombine.low %v2165_v49, %v4322_v39 }
  0xf5   : > { %3271 = vmatprep.mubr.msk.bf16.mxu1 %vm637_vm8, %v3625_v30 }
  0xf6   : > { %3348 = vmatmul.mubr.msk.bf16.gmra.mrb[4].mxu0 %vm637_vm8, %v1989_v34  ;;  %v2172_v8 = vrot.slane %v3064_v27, 1 }
  0xf7   : > { %3351 = vmatprep.mubr.msk.bf16.mxu0 %vm637_vm8, %v1997_v57 }
  0xf8   : > { %v2174_v39 = vsel %vm885_vm9, %v2172_v8, %v2173_v3 }
  0xfc   : > { %3272 = vmatmul.mubr.msk.bf16.vlgmr.msra.gmra.mrb[0].mxu1 %vm637_vm8, %v3626_v50 }
  0xfd   : > { %3378 = vmatpush3.bf16.msra.mxu1 %v3638_v7  ;;  %3275 = vmatprep.mubr.msk.bf16.mxu1 %vm637_vm8, %v3629_v63 }
  0xfe   : > { %3352 = vmatmul.mubr.msk.bf16.gmra.mrb[8].mxu0 %vm637_vm8, %v2005_v4 }
  0xff   : > { %3355 = vmatprep.mubr.msk.bf16.mxu0 %vm637_vm8, %v2013_v23 }
 0x104   : > { %3276 = vmatmul.mubr.msk.bf16.gmra.mrb[4].mxu1 %vm637_vm8, %v3630_v0 }
 0x105   : > { %3279 = vmatprep.mubr.msk.bf16.mxu1 %vm637_vm8, %v3633_v13 }
 0x106   : > { %3356 = vmatmul.mubr.msk.bf16.gmra.mrb[12].mxu0 %vm637_vm8, %v2021_v12 }
 0x107   : > { %3361 = vmatprep.mubr.msk.bf16.mxu0 %vm637_vm8, %v2174_v39 }
 0x10c   : > { %3280 = vmatmul.mubr.msk.bf16.gmra.mrb[8].mxu1 %vm637_vm8, %v3634_v52 }
 0x10d   : > { %3283 = vmatprep.mubr.msk.bf16.mxu1 %vm637_vm8, %v3636_v17 }
 0x10e   : > { %3362 = vmatmul.mubr.msk.bf16.vlgmr.msra.gmra.mrb[0].mxu0 %vm637_vm8, %v2176_v48 }
 0x10f   : > { %3365 = vmatprep.mubr.msk.bf16.mxu0 %vm637_vm8, %v2178_v18 }
 0x114   : > { %3284 = vmatmul.mubr.msk.bf16.gmra.mrb[12].mxu1 %vm637_vm8, %v3637_v45 }
 0x115   : > { %3297 = vmatprep.mubr.msk.bf16.mxu1 %vm637_vm8, %v4298_v10  ;;  %v2188_v10 = vsel %vm885_vm9, %v2185_v20, %v2187_v2 }
 0x116   : > { %3366 = vmatmul.mubr.msk.bf16.gmra.mrb[4].mxu0 %vm637_vm8, %v2180_v11 }
 0x117   : > { %3369 = vmatprep.mubr.msk.bf16.mxu0 %vm637_vm8, %v2182_v53 }
 0x11c   : > { %3298 = vmatmul.mubr.msk.bf16.vlgmr.msra.gmra.mrb[8].mxu1 %vm637_vm8, %v4301_v61 }
 0x11d   : > { %3301 = vmatprep.mubr.msk.bf16.mxu1 %vm637_vm8, %v4308_v51 }
 0x11e   : > { %3370 = vmatmul.mubr.msk.bf16.gmra.mrb[8].mxu0 %vm637_vm8, %v2184_v59 }
 0x11f   : > { %3373 = vmatprep.mubr.msk.bf16.mxu0 %vm637_vm8, %v2186_v21 }
 0x124   : > { %3302 = vmatmul.mubr.msk.bf16.gmra.mrb[12].mxu1 %vm637_vm8, %v4313_v58 }
 0x126   : > { %3374 = vmatmul.mubr.msk.bf16.gmra.mrb[12].mxu0 %vm637_vm8, %v2188_v10 }
 0x1cf   : > { %v3273_v22 = vpop.f32.mrb[0].mxu1 }
 0x1d0   : > { %v1169_v24 = vpop.f32.mrb[1].mxu1 }
 0x1d1   : > { %v3274_v28 = vpop.f32.mrb[2].mxu1 }
 0x1d2   : > { %v1172_v29 = vpop.f32.mrb[3].mxu1 }
 0x1d7   : > { %v3277_v32 = vpop.f32.mrb[4].mxu1 }
 0x1d8   : > { %v1185_v6 = vpop.f32.mrb[5].mxu1 }
 0x1d9   : > { %v3278_v61 = vpop.f32.mrb[6].mxu1 }
 0x1da   : > { %v1188_v15 = vpop.f32.mrb[7].mxu1 }
 0x1e1   : > { %v3363_v54 = vpop.f32.mrb[0].mxu0 }
 0x1e2   : > { %v3379_v36 = vadd.f32 %v3363_v54, %v3273_v22  ;;  %v2253_v37 = vpop.f32.mrb[1].mxu0 }
 0x1e3   : > { %v3380_v51 = vadd.f32 %v2253_v37, %v1169_v24  ;;  %v3364_v56 = vpop.f32.mrb[2].mxu0 }
 0x1e4   : > { %v3100_v38 = vpack.c.bf16 %v3379_v36, %v3379_v36  ;;  %v2657_v40 = vsel %vm333_vm2, %v3379_v36, 0.0  ;;  %v2694_v35 = vmul.f32 %v3379_v36, %v3379_v36  ;;  %v3381_v58 = vadd.f32 %v3364_v56, %v3274_v28  ;;  %v2256_v41 = vpop.f32.mrb[3].mxu0 }
 0x1e5   : > { %v3098_v31 = vpack.c.bf16 %v3380_v51, %v3380_v51  ;;  %v2654_v34 = vsel %vm333_vm2, %v3380_v51, 0.0  ;;  %v2692_v42 = vmul.f32 %v3380_v51, %v3380_v51  ;;  %v3382_v30 = vadd.f32 %v2256_v41, %v1172_v29 }
 0x1e6   : > { %2399 = vst.msk [vmem:[%s4436_s29 + $0x8] sm:$0xf] %vm2396_vm10, %v3100_v38  ;;  %v2727_v57 = vsel %vm333_vm2, %v2694_v35, 0.0  ;;  %v2658_v55 = vadd.f32 %v2657_v40, %v2654_v34  ;;  %v3101_v44 = vpack.c.bf16 %v3381_v58, %v3381_v58 }
 0x1e7   : > { %2397 = vst.msk [vmem:[%s4436_s29] sm:$0xf] %vm2396_vm10, %v3098_v31  ;;  %v2724_v26 = vsel %vm333_vm2, %v2692_v42, 0.0  ;;  %v3099_v47 = vpack.c.bf16 %v3382_v30, %v3382_v30 }
 0x1e8   : > { %v2728_v46 = vadd.f32 %v2727_v57, %v2724_v26  ;;  %2400 = vst.msk [vmem:[%s4436_s29 + $0xc] sm:$0xf] %vm2396_vm10, %v3101_v44 }
 0x1e9   : > { %2398 = vst.msk [vmem:[%s4436_s29 + $0x4] sm:$0xf] %vm2396_vm10, %v3099_v47  ;;  %v3367_v25 = vpop.f32.mrb[4].mxu0 }
 0x1ea   : > { %v3383_v43 = vadd.f32 %v3367_v25, %v3277_v32  ;;  %v2269_v49 = vpop.f32.mrb[5].mxu0 }
 0x1eb   : > { %v3384_v50 = vadd.f32 %v2269_v49, %v1185_v6  ;;  %v3368_v4 = vpop.f32.mrb[6].mxu0 }
 0x1ec   : > { %v3104_v62 = vpack.c.bf16 %v3383_v43, %v3383_v43  ;;  %v2698_v60 = vmul.f32 %v3383_v43, %v3383_v43  ;;  %v3385_v63 = vadd.f32 %v3368_v4, %v3278_v61  ;;  %v2272_v23 = vpop.f32.mrb[7].mxu0  ;;  %v2665_v0 = vsel %vm333_vm2, %v3383_v43, 0.0 }
 0x1ed   : > { %v3102_v27 = vpack.c.bf16 %v3384_v50, %v3384_v50  ;;  %v2661_v33 = vsel %vm333_vm2, %v3384_v50, 0.0  ;;  %v2696_v5 = vmul.f32 %v3384_v50, %v3384_v50  ;;  %v3386_v7 = vadd.f32 %v2272_v23, %v1188_v15 }
 0x1ee   : > { %2403 = vst.msk [vmem:[%s4436_s29 + $0x18] sm:$0xf] %vm2396_vm10, %v3104_v62  ;;  %v2662_v8 = vadd.f32 %v2661_v33, %v2658_v55  ;;  %v3105_v3 = vpack.c.bf16 %v3385_v63, %v3385_v63  ;;  %v2735_v16 = vsel %vm333_vm2, %v2698_v60, 0.0 }
 0x1ef   : > { %2401 = vst.msk [vmem:[%s4436_s29 + $0x10] sm:$0xf] %vm2396_vm10, %v3102_v27  ;;  %v2731_v12 = vsel %vm333_vm2, %v2696_v5, 0.0  ;;  %v3103_v13 = vpack.c.bf16 %v3386_v7, %v3386_v7  ;;  %v3299_v48 = vpop.f32.mrb[8].mxu1 }
 0x1f0   : > { %v2732_v39 = vadd.f32 %v2731_v12, %v2728_v46  ;;  %2404 = vst.msk [vmem:[%s4436_s29 + $0x1c] sm:$0xf] %vm2396_vm10, %v3105_v3  ;;  %v2666_v14 = vadd.f32 %v2665_v0, %v2662_v8  ;;  %v1475_v19 = vpop.f32.mrb[9].mxu1 }
 0x1f1   : > { %2402 = vst.msk [vmem:[%s4436_s29 + $0x14] sm:$0xf] %vm2396_vm10, %v3103_v13  ;;  %v3371_v52 = vpop.f32.mrb[8].mxu0  ;;  %v3300_v11 = vpop.f32.mrb[10].mxu1 }
 0x1f2   : > { %v2285_v17 = vpop.f32.mrb[9].mxu0  ;;  %v2736_v18 = vadd.f32 %v2735_v16, %v2732_v39  ;;  %v3387_v1 = vadd.f32 %v3371_v52, %v3299_v48  ;;  %v1478_v21 = vpop.f32.mrb[11].mxu1 }
 0x1f3   : > { %v3372_v45 = vpop.f32.mrb[10].mxu0  ;;  %v3388_v53 = vadd.f32 %v2285_v17, %v1475_v19 }
 0x1f4   : > { %v2288_v9 = vpop.f32.mrb[11].mxu0  ;;  %v3108_v20 = vpack.c.bf16 %v3387_v1, %v3387_v1  ;;  %v2702_v59 = vmul.f32 %v3387_v1, %v3387_v1  ;;  %v3389_v2 = vadd.f32 %v3372_v45, %v3300_v11  ;;  %v2673_v6 = vsel %vm333_vm2, %v3387_v1, 0.0 }
 0x1f5   : > { %v3106_v10 = vpack.c.bf16 %v3388_v53, %v3388_v53  ;;  %v2669_v22 = vsel %vm333_vm2, %v3388_v53, 0.0  ;;  %v2700_v24 = vmul.f32 %v3388_v53, %v3388_v53  ;;  %v3390_v28 = vadd.f32 %v2288_v9, %v1478_v21 }
 0x1f6   : > { %2407 = vst.msk [vmem:[%s4436_s29 + $0x28] sm:$0xf] %vm2396_vm10, %v3108_v20  ;;  %v2670_v29 = vadd.f32 %v2669_v22, %v2666_v14  ;;  %v3109_v32 = vpack.c.bf16 %v3389_v2, %v3389_v2  ;;  %v2743_v51 = vsel %vm333_vm2, %v2702_v59, 0.0 }
 0x1f7   : > { %2405 = vst.msk [vmem:[%s4436_s29 + $0x20] sm:$0xf] %vm2396_vm10, %v3106_v10  ;;  %v2739_v61 = vsel %vm333_vm2, %v2700_v24, 0.0  ;;  %v3107_v15 = vpack.c.bf16 %v3390_v28, %v3390_v28  ;;  %v3303_v56 = vpop.f32.mrb[12].mxu1 }
 0x1f8   : > { %v2740_v54 = vadd.f32 %v2739_v61, %v2736_v18  ;;  %2408 = vst.msk [vmem:[%s4436_s29 + $0x2c] sm:$0xf] %vm2396_vm10, %v3109_v32  ;;  %v2674_v37 = vadd.f32 %v2673_v6, %v2670_v29  ;;  %v1491_v40 = vpop.f32.mrb[13].mxu1 }
 0x1f9   : > { %v3375_v36 = vpop.f32.mrb[12].mxu0  ;;  %2406 = vst.msk [vmem:[%s4436_s29 + $0x24] sm:$0xf] %vm2396_vm10, %v3107_v15  ;;  %v3304_v31 = vpop.f32.mrb[14].mxu1 }
 0x1fa   : > { %v2301_v38 = vpop.f32.mrb[13].mxu0  ;;  %v3391_v35 = vadd.f32 %v3375_v36, %v3303_v56  ;;  %v2744_v58 = vadd.f32 %v2743_v51, %v2740_v54  ;;  %v1494_v55 = vpop.f32.mrb[15].mxu1 }
 0x1fb   : > { %v3376_v41 = vpop.f32.mrb[14].mxu0  ;;  %v3392_v34 = vadd.f32 %v2301_v38, %v1491_v40 }
 0x1fc   : > { %v2304_v42 = vpop.f32.mrb[15].mxu0  ;;  %v3112_v30 = vpack.c.bf16 %v3391_v35, %v3391_v35  ;;  %v2706_v57 = vmul.f32 %v3391_v35, %v3391_v35  ;;  %v3393_v44 = vadd.f32 %v3376_v41, %v3304_v31  ;;  %v2681_v50 = vsel %vm333_vm2, %v3391_v35, 0.0 }
 0x1fd   : > { %v3110_v26 = vpack.c.bf16 %v3392_v34, %v3392_v34  ;;  %v2677_v47 = vsel %vm333_vm2, %v3392_v34, 0.0  ;;  %v2704_v46 = vmul.f32 %v3392_v34, %v3392_v34  ;;  %v3394_v25 = vadd.f32 %v2304_v42, %v1494_v55 }
 0x1fe   : > { %2411 = vst.msk [vmem:[%s4436_s29 + $0x38] sm:$0xf] %vm2396_vm10, %v3112_v30  ;;  %v2678_v43 = vadd.f32 %v2677_v47, %v2674_v37  ;;  %v3113_v49 = vpack.c.bf16 %v3393_v44, %v3393_v44  ;;  %v2751_v23 = vsel %vm333_vm2, %v2706_v57, 0.0 }
 0x1ff   : > { %2409 = vst.msk [vmem:[%s4436_s29 + $0x30] sm:$0xf] %vm2396_vm10, %v3110_v26  ;;  %v2747_v4 = vsel %vm333_vm2, %v2704_v46, 0.0  ;;  %v3111_v62 = vpack.c.bf16 %v3394_v25, %v3394_v25 }
 0x200   : > { %v2682_v60 = vadd.f32 %v2681_v50, %v2678_v43  ;;  %v2748_v63 = vadd.f32 %v2747_v4, %v2744_v58  ;;  %2412 = vst.msk [vmem:[%s4436_s29 + $0x3c] sm:$0xf] %vm2396_vm10, %v3113_v49 }
 0x201   : > { %2410 = vst.msk [vmem:[%s4436_s29 + $0x34] sm:$0xf] %vm2396_vm10, %v3111_v62 }
 0x202   : > { %v2685_v27 = vrot.slane %v2682_v60, 4  ;;  %v2752_v33 = vadd.f32 %v2751_v23, %v2748_v63 }
 0x203   : > { %3738 = shalt.err (!%p3735_p6)
}
 0x204   : > { %s3739_s14 = scalar_lea.hbm %s4480_s6, 1024  ;;  %s3743_s30 = scalar_lea.hbm %s4570_s3, 2048 }
 0x205   : > { %p3740_p12 = scmp.ne.s32.totalorder %s4480_s6, %s3739_s14  ;;  %p3744_p11 = scmp.lt.u32.totalorder %s4480_s6, %s4570_s3 }
 0x206   : > { %p3745_p7 = scmp.lt.u32.totalorder %s3743_s30, %s3739_s14  ;;  %p3747_p8 = scmp.lt.u32.totalorder %s3739_s14, %s4480_s6 }
 0x207   : > { %p3741_p13 = pnand %p3740_p12, %p4596_p4 }
 0x208   : > { %p3746_p3 = por %p3745_p7, %p3744_p11 }
 0x209   : > { %p3742_p1 = pneg %p3741_p13 }
 0x20a   : > { %p3748_p5 = por %p3747_p8, %p3746_p3 }
 0x20c   : > { %p3749_p10 = pnand %p3748_p5, %p3742_p1 }
 0x20e   : > { %3752 = shalt.err (!%p3749_p10)
}
 0x20f   : > { %s3836_s29 = smov 64   ;;  %s3837_s7 = smov 4   ;;  %v2686_v5 = vadd.f32 %v2685_v27, %v2682_v60  ;;  %v2755_v7 = vrot.slane %v2752_v33, 4  ;;  %vm2762_vm11 = vcmask 1040384   ;;  %vm2764_vm12 = vcmask 1041408  }
 0x210   : > { %3517 = dma.vmem_to_hbm [thread:$0]  (%p4596_p4), %s4482_s23, 1024, %s4480_s6, %s2768_s5, %s3836_s29, %s3836_s29, %s3837_s7  }
 0x211   : > { %v2687_v8 = vrot.slane %v2686_v5, 2  ;;  %v2756_v3 = vadd.f32 %v2755_v7, %v2752_v33  ;;  %s2936_s25 = sshll.u32 %s4039_s1, 3  ;;  %s3094_s20 = sshll.u32 %s3885_s19, 7 }
 0x212   : > { %s253_s12 = scalar_lea.vmem [#allocation10], %s2936_s25  ;;  %s4522_s5 = scalar_lea.hbm %s4571_s4, %s3094_s20 }
 0x213   : > { %v2688_v0 = vadd.f32 %v2687_v8, %v2686_v5  ;;  %v2757_v12 = vrot.slane %v2756_v3, 2  ;;  %s2802_s13 = sshll.u32 %s253_s12, 4  ;;  %s2773_s19 = scalar_lea.sflag [#allocation11], %s4039_s1  ;;  %s4524_s13 = int_to_ptr.vmem [resolvable:$true] %s2802_s13 }
 0x214   : > { %s3753_s8 = scalar_lea.vmem %s4524_s13, 128  ;;  %s3838_s11 = smov [#allocation10]  }
 0x215   : > { %v2689_v13 = vrot.slane %v2688_v0, 1  ;;  %v2758_v39 = vadd.f32 %v2757_v12, %v2756_v3  ;;  %p3754_p2 = scmp.ne.s32.totalorder %s4524_s13, %s3753_s8  ;;  %s3757_s14 = sshll.u32 %s3838_s11, 4  ;;  %s3758_s14 = int_to_ptr.vmem [resolvable:$false] %s3757_s14 }
 0x216   : > { %s3759_s22 = scalar_lea.vmem %s3758_s14, 256  ;;  %p3760_p6 = scmp.lt.s32.totalorder %s4524_s13, %s3758_s14 }
 0x217   : > { %v2759_v14 = vrot.slane %v2758_v39, 1  ;;  %v2690_v16 = vadd.f32 %v2689_v13, %v2688_v0  ;;  %p3755_p0 = pnand %p3754_p2, %p4596_p4  ;;  %p3761_p12 = scmp.lt.s32.totalorder %s3759_s22, %s3753_s8 }
 0x219   : > { %v2760_v52 = vadd.f32 %v2759_v14, %v2758_v39  ;;  %p3756_p9 = pneg %p3755_p0  ;;  %p3762_p13 = por %p3761_p12, %p3760_p6 }
 0x21b   : > { %v2763_v48 = vsel %vm2762_vm11, %v2690_v16, %v2760_v52  ;;  %p3763_p1 = pnand %p3762_p13, %p3756_p9 }
 0x21c   : > { %v2765_v17 = vsel %vm2764_vm12, %v2763_v48, 0.0 }
 0x21d   : > { %2766 = vst.msk [vmem:[%s253_s12] sm:$0xff] %vm333_vm2, %v2765_v17 }
 0x21e   : > { %3766 = shalt.err (!%p3763_p1)
}
 0x21f   : > { %s3767_s1 = scalar_lea.hbm %s4522_s5, 128  ;;  %s3771_s10 = scalar_lea.hbm %s4571_s4, 256 }
 0x220   : > { %p3768_p11 = scmp.ne.s32.totalorder %s4522_s5, %s3767_s1  ;;  %p3772_p8 = scmp.lt.u32.totalorder %s4522_s5, %s4571_s4 }
 0x221   : > { %p3773_p5 = scmp.lt.u32.totalorder %s3771_s10, %s3767_s1  ;;  %p3775_p2 = scmp.lt.u32.totalorder %s3767_s1, %s4522_s5 }
 0x222   : > { %p3769_p7 = pnand %p3768_p11, %p4596_p4 }
 0x223   : > { %p3774_p10 = por %p3773_p5, %p3772_p8 }
 0x224   : > { %p3770_p3 = pneg %p3769_p7 }
 0x225   : > { %p3776_p0 = por %p3775_p2, %p3774_p10 }
 0x227   : > { %p3777_p9 = pnand %p3776_p0, %p3770_p3 }
 0x229   : > { %3780 = shalt.err (!%p3777_p9)
}
 0x22a   : > { %3518 = dma.vmem_to_hbm [thread:$0]  (%p4596_p4), %s4524_s13, 128, %s4522_s5, %s2773_s19  }
 0x22b PF: > { %s2814_s7 = sand.u32 1, %s3815_s15   ;;  %p4597_p6 = scmp.ne.s32.totalorder %s4581_s28, 0 }
 0x22c   : > { %p4598_p12 = scmp.ge.s32.totalorder %s3827_s18, 2  ;;  %s2815_s25 = scalar_lea.sflag [#allocation5], %s2814_s7 }
 0x22e   : > { %p3533_p13 = pnand %p4598_p12, %p4597_p6 }
 0x230   : > { %3806 = dma.done.wait (!%p3533_p13), %s2815_s25, 1024  }
 0x231   : > { %3808 = vsyncadd (!%p3533_p13), %s2815_s25, 4294966272  ;;  %s2824_s20 = scalar_lea.sflag [#allocation11], %s2814_s7 }
 0x232   : > { %3810 = dma.done.wait (!%p3533_p13), %s2824_s20, 128  }
 0x233   : > { %3812 = vsyncadd (!%p3533_p13), %s2824_s20, 4294967168  ;;  %p22_p4 = scmp.ge.s32.totalorder %s3889_s21, 4   ;;  %s4599_s15 = smov %s3819_s16 }
 0x234   : > { %s4600_s16 = smov %s3823_s17  ;;  %s4601_s17 = smov %s3901_s24 }
 0x235   : > { %s4602_s18 = smov %s3889_s21  ;;  %24 = sbr.rel (!%p22_p4) target bundleno = 10 (0xa), region = 110 }
 0x23c   :  { %2829 = vsyncpa [#allocation4], 1 }
 0x23d   :  { %2831 = vsyncpa [#allocation4 + $0x1], 1 }
 0x23e   :  { %2832 = vsyncpa [#allocation7], 1 }
 0x23f   :  { %2833 = vsyncpa [#allocation5], 1 }
 0x240   :  { %2835 = vsyncpa [#allocation5 + $0x1], 1 }
 0x241   :  { %2836 = vsyncpa [#allocation11], 1 }
 0x242   :  { %2838 = vsyncpa [#allocation11 + $0x1], 1 }

</bundles_post_ra>
